<compile_context>
chip_gen: v7x
topology: tpu7x:2x2x1
jax: 0.10.0
libtpu: 0.0.40
codegen_flags: <defaults>
</compile_context>

<pallas_src>
import numpy as np
import jax
import jax.numpy as jnp
from jax.experimental import pallas as pl
from jax.experimental.pallas import tpu as pltpu

EPS = 1e-5
CP = 128   # channel lanes after zero padding (lane-dense stores / full MXU columns)
K3 = 9     # taps of a 3x3 conv


# ---------------------------------------------------------------------------
# Fused kernel
# ---------------------------------------------------------------------------
def _make_fused_kernel(n, hw1, hw2):
    """n: batch; hw1: positions/image after conv1; hw2: positions/image after conv31."""

    def bn_relu(y, g_row, b_row):
        # y: (rows, CP) f32.  Batch-stat BN (biased var, eps=1e-5) + ReLU as one
        # reduction pass (mean, E[y^2]) + one fused affine.  Padded lanes stay zero.
        mean = jnp.mean(y, axis=0, keepdims=True)
        mean_sq = jnp.mean(y * y, axis=0, keepdims=True)
        var = jnp.maximum(mean_sq - mean * mean, 0.0)
        scale = g_row * jax.lax.rsqrt(var + EPS)
        shift = b_row - mean * scale
        return jnp.maximum(y * scale + shift, 0.0)

    def kernel(p1_ref, w1_ref, s2_ref, s1_ref,
               w31_ref, w32_ref, w41_ref, w42_ref,
               g_ref, b_ref, latent_ref, pooled_ref, slab_ref):

        def gb(layer):
            return g_ref[pl.ds(layer, 1), :], b_ref[pl.ds(layer, 1), :]

        def conv3x3(x_f32, s_ref, w_ref, hw_in):
            # In-kernel im2col.  Per image: ONE stacked-tap 0/1 selection matmul
            # (exactly handles shift / stride-2 / zero padding) gathers all 9 taps,
            # then 9 lane-block copies (128-aligned, static offsets) build the slab
            # (n*hw2, 9*CP).  Finally ONE combined-K weight matmul on the MXU with
            # f32 accumulation.
            x16 = x_f32.astype(jnp.bfloat16)
            for bi in range(n):
                xb = x16[bi * hw_in:(bi + 1) * hw_in, :]            # (hw_in, CP) bf16
                g = jnp.dot(s_ref[...], xb,
                            preferred_element_type=jnp.float32)     # (9*hw2, CP)
                g16 = g.astype(jnp.bfloat16)                        # exact: 0/1 gather
                for t in range(K3):
                    slab_ref[pl.ds(bi * hw2, hw2), pl.ds(t * CP, CP)] = (
                        g16[t * hw2:(t + 1) * hw2, :])
            return jnp.dot(slab_ref[...], w_ref[...],
                           preferred_element_type=jnp.float32)      # (n*hw2, CP) f32

        # ---- layer 1: 7x7 stride-2 conv (host-side im2col patches) + BN + ReLU
        g, b = gb(0)
        y = jnp.dot(p1_ref[...], w1_ref[...], preferred_element_type=jnp.float32)
        x = bn_relu(y, g, b)                                        # (n*hw1, CP)

        # ---- layer 31: 3x3 stride-2 conv + BN + ReLU
        g, b = gb(1)
        x = bn_relu(conv3x3(x, s2_ref, w31_ref, hw1), g, b)         # (n*hw2, CP)

        # ---- layers 32 / 41 / 42: 3x3 stride-1 convs + BN + ReLU
        g, b = gb(2)
        x = bn_relu(conv3x3(x, s1_ref, w32_ref, hw2), g, b)
        g, b = gb(3)
        x = bn_relu(conv3x3(x, s1_ref, w41_ref, hw2), g, b)
        g, b = gb(4)
        x = bn_relu(conv3x3(x, s1_ref, w42_ref, hw2), g, b)

        latent_ref[...] = x                                         # lane-dense store

        # ---- AdaptiveAvgPool2d((1,1)) + flatten: per-image sublane mean (no matmul,
        #      no iota/where); the latent never leaves VMEM before pooling.
        for bi in range(n):
            pooled_ref[pl.ds(bi, 1), :] = jnp.mean(
                x[bi * hw2:(bi + 1) * hw2, :], axis=0, keepdims=True)

    return kernel


# ---------------------------------------------------------------------------
# Host-side (trace-time) constant builders and weight packing
# ---------------------------------------------------------------------------
def _gather_taps_stacked(ih, iw, oh, ow, stride, pad, k=3):
    """Per-image 0/1 selection matrix, all taps stacked on rows: shape
    (k*k*oh*ow, ih*iw).  Row t*oh*ow + o selects the input row feeding output
    position o for kernel tap t (all-zero row when the tap lands in zero padding).
    Batch-independent: O(1) in N."""
    s = np.zeros((k * k, oh * ow, ih * iw), np.float32)
    for oy in range(oh):
        for ox in range(ow):
            ro = oy * ow + ox
            for i in range(k):
                for j in range(k):
                    iy = oy * stride + i - pad
                    ix = ox * stride + j - pad
                    if 0 <= iy < ih and 0 <= ix < iw:
                        s[i * k + j, ro, iy * iw + ix] = 1.0
    return s.reshape(k * k * oh * ow, ih * iw)


def _pack_conv1(w, k1p):
    # PyTorch (Cout, Cin, KH, KW) -> (KH*KW*Cin, Cout), zero-padded to (k1p, CP), bf16.
    cout, cin, kh, kw = w.shape
    m = jnp.transpose(w, (2, 3, 1, 0)).reshape(kh * kw * cin, cout)
    return jnp.pad(m, ((0, k1p - kh * kw * cin), (0, CP - cout))).astype(jnp.bfloat16)


def _pack_conv3(w):
    # PyTorch (Cout, Cin, 3, 3) -> combined-K matrix (9*CP, CP) bf16: row block t holds
    # tap t's (Cin, Cout) weight (zero padded), matching slab lane block t.
    cout, cin = w.shape[0], w.shape[1]
    m = jnp.transpose(w, (2, 3, 1, 0)).reshape(9, cin, cout)
    m = jnp.pad(m, ((0, 0), (0, CP - cin), (0, CP - cout)))
    return m.reshape(9 * CP, CP).astype(jnp.bfloat16)


def _pack_bn(vs):
    # Per-layer (C,) vectors -> (5, CP) f32, zero padded.  Padded channels then stay
    # exactly zero through BN + ReLU in every layer.
    return jnp.stack([jnp.pad(v.astype(jnp.float32), (0, CP - v.shape[0])) for v in vs])


# ---------------------------------------------------------------------------
# Model
# ---------------------------------------------------------------------------
def init_params(key, image_channels=3, base_channels=16, n_classes=10, kernel_size=7):
    def conv_w(k, cout, cin, ks):
        fan_in = cin * ks * ks
        return (jax.random.normal(k, (cout, cin, ks, ks), jnp.float32)
                / jnp.sqrt(jnp.float32(fan_in)))

    def conv_b(k, cout, cin, ks):
        bound = 1.0 / jnp.sqrt(jnp.float32(cin * ks * ks))
        return jax.random.uniform(k, (cout,), jnp.float32, -bound, bound)

    ks = jax.random.split(key, 9)
    p = {}
    p["w1"] = conv_w(ks[0], base_channels, image_channels, kernel_size)   # bias=False
    p["g1"], p["b1"] = jnp.ones((base_channels,)), jnp.zeros((base_channels,))
    p["w31"] = conv_w(ks[1], base_channels, base_channels, 3)
    p["cb31"] = conv_b(ks[2], base_channels, base_channels, 3)
    p["g31"], p["b31"] = jnp.ones((base_channels,)), jnp.zeros((base_channels,))
    p["w32"] = conv_w(ks[3], base_channels, base_channels, 3)
    p["cb32"] = conv_b(ks[4], base_channels, base_channels, 3)
    p["g32"], p["b32"] = jnp.ones((base_channels,)), jnp.zeros((base_channels,))
    p["w41"] = conv_w(ks[5], base_channels, base_channels, 3)
    p["cb41"] = conv_b(ks[6], base_channels, base_channels, 3)
    p["g41"], p["b41"] = jnp.ones((base_channels,)), jnp.zeros((base_channels,))
    p["w42"] = conv_w(ks[7], n_classes, base_channels, 3)
    p["cb42"] = conv_b(ks[8], n_classes, base_channels, 3)
    p["g42"], p["b42"] = jnp.ones((n_classes,)), jnp.zeros((n_classes,))
    # NOTE: the conv biases (cb*) exist in the PyTorch module, but a bias added before
    # batch-statistics BatchNorm cancels exactly, so the fused kernel never reads them.
    return p


def asym_lnet5f_forward(x_nchw, params):
    n, cin, h, w = x_nchw.shape
    ks, st, pd = 7, 2, 3
    oh1 = (h + 2 * pd - ks) // st + 1
    ow1 = (w + 2 * pd - ks) // st + 1
    oh2 = (oh1 + 2 - 3) // 2 + 1
    ow2 = (ow1 + 2 - 3) // 2 + 1
    hw1, hw2 = oh1 * ow1, oh2 * ow2
    ncls = params["w42"].shape[0]

    # ---- layer-1 im2col in XLA (external input only; 3x3 layers gather in-kernel)
    xh = jnp.transpose(x_nchw, (0, 2, 3, 1)).astype(jnp.float32)
    xp = jnp.pad(xh, ((0, 0), (pd, pd), (pd, pd), (0, 0)))
    cols = [xp[:, i:i + st * oh1:st, j:j + st * ow1:st, :]
            for i in range(ks) for j in range(ks)]
    k1 = ks * ks * cin
    k1p = ((k1 + 127) // 128) * 128
    p1 = jnp.stack(cols, axis=3).reshape(n * hw1, k1)
    p1 = jnp.pad(p1, ((0, 0), (0, k1p - k1))).astype(jnp.bfloat16)

    # ---- packed weights / BN params (conv biases dropped: they cancel in batch-stat BN)
    w1 = _pack_conv1(params["w1"], k1p)
    w31, w32, w41, w42 = (_pack_conv3(params[k]) for k in ("w31", "w32", "w41", "w42"))
    gam = _pack_bn([params["g1"], params["g31"], params["g32"], params["g41"], params["g42"]])
    bet = _pack_bn([params["b1"], params["b31"], params["b32"], params["b41"], params["b42"]])

    # ---- per-image (batch-independent) tap-gather constants: O(1) in batch size
    s2 = jnp.asarray(_gather_taps_stacked(oh1, ow1, oh2, ow2, stride=2, pad=1), jnp.bfloat16)
    s1 = jnp.asarray(_gather_taps_stacked(oh2, ow2, oh2, ow2, stride=1, pad=1), jnp.bfloat16)

    r2 = n * hw2
    kernel = _make_fused_kernel(n, hw1, hw2)
    vmem = pl.BlockSpec(memory_space=pltpu.MemorySpace.VMEM)
    latent_p, pooled_p = pl.pallas_call(
        kernel,
        out_shape=(jax.ShapeDtypeStruct((r2, CP), jnp.float32),
                   jax.ShapeDtypeStruct((n, CP), jnp.float32)),
        in_specs=[vmem] * 10,
        out_specs=(vmem, vmem),
        scratch_shapes=[pltpu.VMEM((r2, K3 * CP), jnp.bfloat16)],   # im2col slab, reused
        compiler_params=pltpu.CompilerParams(vmem_limit_bytes=64 * 1024 * 1024),
    )(p1, w1, s2, s1, w31, w32, w41, w42, gam, bet)

    # Tiny XLA epilogue: un-pad the lanes and restore PyTorch's NCHW latent layout.
    latent = jnp.transpose(latent_p[:, :ncls].reshape(n, oh2, ow2, ncls), (0, 3, 1, 2))
    pooled = pooled_p[:, :ncls]
    return latent, pooled


if __name__ == "__main__":
    key = jax.random.PRNGKey(0)
    k_x, k_p = jax.random.split(key)

    batch, image_channels, spatial = 2, 3, 16
    base_channels, n_classes = 16, 10

    x = jax.random.normal(k_x, (batch, image_channels, spatial, spatial), jnp.float32)
    params = init_params(k_p, image_channels, base_channels, n_classes, kernel_size=7)

    fwd = jax.jit(asym_lnet5f_forward)
    latent, pooled = fwd(x, params)
    jax.block_until_ready((latent, pooled))

    # shape sanity: conv1 s2 -> 8x8, conv31 s2 -> 4x4, rest s1 -> 4x4
    assert latent.shape == (batch, n_classes, 4, 4), latent.shape
    assert pooled.shape == (batch, n_classes), pooled.shape
    assert bool(jnp.all(jnp.isfinite(latent))) and bool(jnp.all(jnp.isfinite(pooled)))
    # fused avg-pool must equal the spatial mean of the latent
    assert bool(jnp.allclose(pooled, jnp.mean(latent, axis=(2, 3)), atol=1e-4))
    print("KERNEL_OK")
</pallas_src>

<mosaic_0001>
module attributes {stable_mosaic.version = 11 : i64} {
  func.func @kernel(%arg0: memref<128x256xbf16, #tpu.memory_space<vmem>>, %arg1: memref<256x128xbf16, #tpu.memory_space<vmem>>, %arg2: memref<144x64xbf16, #tpu.memory_space<vmem>>, %arg3: memref<144x16xbf16, #tpu.memory_space<vmem>>, %arg4: memref<1152x128xbf16, #tpu.memory_space<vmem>>, %arg5: memref<1152x128xbf16, #tpu.memory_space<vmem>>, %arg6: memref<1152x128xbf16, #tpu.memory_space<vmem>>, %arg7: memref<1152x128xbf16, #tpu.memory_space<vmem>>, %arg8: memref<5x128xf32, #tpu.memory_space<vmem>>, %arg9: memref<5x128xf32, #tpu.memory_space<vmem>>, %arg10: memref<32x128xf32, #tpu.memory_space<vmem>>, %arg11: memref<2x128xf32, #tpu.memory_space<vmem>>, %arg12: memref<32x1152xbf16, #tpu.memory_space<vmem>>) attributes {dimension_semantics = [], scalar_prefetch = 0 : i64, scratch_operands = 1 : i64, tpu.core_type = #tpu.core_type<tc>} {
    %c0 = arith.constant 0 : index
    %c0_0 = arith.constant 0 : index
    %0 = vector.load %arg8[%c0, %c0_0] : memref<5x128xf32, #tpu.memory_space<vmem>>, vector<1x128xf32>
    %c0_1 = arith.constant 0 : index
    %c0_2 = arith.constant 0 : index
    %1 = vector.load %arg9[%c0_1, %c0_2] : memref<5x128xf32, #tpu.memory_space<vmem>>, vector<1x128xf32>
    %c0_3 = arith.constant 0 : index
    %c0_4 = arith.constant 0 : index
    %2 = vector.load %arg0[%c0_3, %c0_4] : memref<128x256xbf16, #tpu.memory_space<vmem>>, vector<128x256xbf16>
    %c0_5 = arith.constant 0 : index
    %c0_6 = arith.constant 0 : index
    %3 = vector.load %arg1[%c0_5, %c0_6] : memref<256x128xbf16, #tpu.memory_space<vmem>>, vector<256x128xbf16>
    %cst = arith.constant dense<0.000000e+00> : vector<128x128xf32>
    %4 = tpu.matmul %2, %3, %cst {dimension_numbers = #tpu.dot_dimension_numbers<[1], [0], [0], [1], [0, 0, 1, 1], [], []>} : vector<128x256xbf16>, vector<256x128xbf16>, vector<128x128xf32> -> vector<128x128xf32>
    %cst_7 = arith.constant dense<0.000000e+00> : vector<128xf32>
    %5 = vector.multi_reduction <add>, %4, %cst_7 [0] : vector<128x128xf32> to vector<128xf32>
    %6 = vector.shape_cast %5 : vector<128xf32> to vector<1x128xf32>
    %cst_8 = arith.constant 1.280000e+02 : f32
    %7 = vector.broadcast %cst_8 : f32 to vector<1x128xf32>
    %8 = arith.divf %6, %7 : vector<1x128xf32>
    %9 = arith.mulf %4, %4 : vector<128x128xf32>
    %cst_9 = arith.constant dense<0.000000e+00> : vector<128xf32>
    %10 = vector.multi_reduction <add>, %9, %cst_9 [0] : vector<128x128xf32> to vector<128xf32>
    %11 = vector.shape_cast %10 : vector<128xf32> to vector<1x128xf32>
    %cst_10 = arith.constant 1.280000e+02 : f32
    %12 = vector.broadcast %cst_10 : f32 to vector<1x128xf32>
    %13 = arith.divf %11, %12 : vector<1x128xf32>
    %14 = arith.mulf %8, %8 : vector<1x128xf32>
    %15 = arith.subf %13, %14 : vector<1x128xf32>
    %cst_11 = arith.constant 0.000000e+00 : f32
    %16 = vector.broadcast %cst_11 : f32 to vector<1x128xf32>
    %17 = arith.maximumf %15, %16 : vector<1x128xf32>
    %cst_12 = arith.constant 9.99999974E-6 : f32
    %18 = vector.broadcast %cst_12 : f32 to vector<1x128xf32>
    %19 = arith.addf %17, %18 : vector<1x128xf32>
    %20 = math.rsqrt %19 : vector<1x128xf32>
    %21 = arith.mulf %0, %20 : vector<1x128xf32>
    %22 = arith.mulf %8, %21 : vector<1x128xf32>
    %23 = arith.subf %1, %22 : vector<1x128xf32>
    %24 = vector.broadcast %21 : vector<1x128xf32> to vector<128x128xf32>
    %25 = arith.mulf %4, %24 : vector<128x128xf32>
    %26 = vector.broadcast %23 : vector<1x128xf32> to vector<128x128xf32>
    %27 = arith.addf %25, %26 : vector<128x128xf32>
    %cst_13 = arith.constant 0.000000e+00 : f32
    %28 = vector.broadcast %cst_13 : f32 to vector<128x128xf32>
    %29 = arith.maximumf %27, %28 : vector<128x128xf32>
    %c1 = arith.constant 1 : index
    %c0_14 = arith.constant 0 : index
    %30 = vector.load %arg8[%c1, %c0_14] : memref<5x128xf32, #tpu.memory_space<vmem>>, vector<1x128xf32>
    %c1_15 = arith.constant 1 : index
    %c0_16 = arith.constant 0 : index
    %31 = vector.load %arg9[%c1_15, %c0_16] : memref<5x128xf32, #tpu.memory_space<vmem>>, vector<1x128xf32>
    %32 = arith.truncf %29 : vector<128x128xf32> to vector<128x128xbf16>
    %33 = vector.extract_strided_slice %32 {offsets = [0, 0], sizes = [64, 128], strides = [1, 1]} : vector<128x128xbf16> to vector<64x128xbf16>
    %c0_17 = arith.constant 0 : index
    %c0_18 = arith.constant 0 : index
    %34 = vector.load %arg2[%c0_17, %c0_18] : memref<144x64xbf16, #tpu.memory_space<vmem>>, vector<144x64xbf16>
    %cst_19 = arith.constant dense<0.000000e+00> : vector<144x128xf32>
    %35 = tpu.matmul %34, %33, %cst_19 {dimension_numbers = #tpu.dot_dimension_numbers<[1], [0], [0], [1], [0, 0, 1, 1], [], []>} : vector<144x64xbf16>, vector<64x128xbf16>, vector<144x128xf32> -> vector<144x128xf32>
    %36 = arith.truncf %35 : vector<144x128xf32> to vector<144x128xbf16>
    %37 = vector.extract_strided_slice %36 {offsets = [0, 0], sizes = [16, 128], strides = [1, 1]} : vector<144x128xbf16> to vector<16x128xbf16>
    %c0_20 = arith.constant 0 : index
    %c0_21 = arith.constant 0 : index
    %38 = vector.load %arg12[%c0_20, %c0_21] : memref<32x1152xbf16, #tpu.memory_space<vmem>>, vector<16x128xbf16>
    tpu.vector_store %arg12[%c0_20, %c0_21], %37 {strides = array<i32>} : memref<32x1152xbf16, #tpu.memory_space<vmem>>, vector<16x128xbf16>,
    %39 = vector.extract_strided_slice %36 {offsets = [16, 0], sizes = [16, 128], strides = [1, 1]} : vector<144x128xbf16> to vector<16x128xbf16>
    %c0_22 = arith.constant 0 : index
    %c128 = arith.constant 128 : index
    %40 = vector.load %arg12[%c0_22, %c128] : memref<32x1152xbf16, #tpu.memory_space<vmem>>, vector<16x128xbf16>
    tpu.vector_store %arg12[%c0_22, %c128], %39 {strides = array<i32>} : memref<32x1152xbf16, #tpu.memory_space<vmem>>, vector<16x128xbf16>,
    %41 = vector.extract_strided_slice %36 {offsets = [32, 0], sizes = [16, 128], strides = [1, 1]} : vector<144x128xbf16> to vector<16x128xbf16>
    %c0_23 = arith.constant 0 : index
    %c256 = arith.constant 256 : index
    %42 = vector.load %arg12[%c0_23, %c256] : memref<32x1152xbf16, #tpu.memory_space<vmem>>, vector<16x128xbf16>
    tpu.vector_store %arg12[%c0_23, %c256], %41 {strides = array<i32>} : memref<32x1152xbf16, #tpu.memory_space<vmem>>, vector<16x128xbf16>,
    %43 = vector.extract_strided_slice %36 {offsets = [48, 0], sizes = [16, 128], strides = [1, 1]} : vector<144x128xbf16> to vector<16x128xbf16>
    %c0_24 = arith.constant 0 : index
    %c384 = arith.constant 384 : index
    %44 = vector.load %arg12[%c0_24, %c384] : memref<32x1152xbf16, #tpu.memory_space<vmem>>, vector<16x128xbf16>
    tpu.vector_store %arg12[%c0_24, %c384], %43 {strides = array<i32>} : memref<32x1152xbf16, #tpu.memory_space<vmem>>, vector<16x128xbf16>,
    %45 = vector.extract_strided_slice %36 {offsets = [64, 0], sizes = [16, 128], strides = [1, 1]} : vector<144x128xbf16> to vector<16x128xbf16>
    %c0_25 = arith.constant 0 : index
    %c512 = arith.constant 512 : index
    %46 = vector.load %arg12[%c0_25, %c512] : memref<32x1152xbf16, #tpu.memory_space<vmem>>, vector<16x128xbf16>
    tpu.vector_store %arg12[%c0_25, %c512], %45 {strides = array<i32>} : memref<32x1152xbf16, #tpu.memory_space<vmem>>, vector<16x128xbf16>,
    %47 = vector.extract_strided_slice %36 {offsets = [80, 0], sizes = [16, 128], strides = [1, 1]} : vector<144x128xbf16> to vector<16x128xbf16>
    %c0_26 = arith.constant 0 : index
    %c640 = arith.constant 640 : index
    %48 = vector.load %arg12[%c0_26, %c640] : memref<32x1152xbf16, #tpu.memory_space<vmem>>, vector<16x128xbf16>
    tpu.vector_store %arg12[%c0_26, %c640], %47 {strides = array<i32>} : memref<32x1152xbf16, #tpu.memory_space<vmem>>, vector<16x128xbf16>,
    %49 = vector.extract_strided_slice %36 {offsets = [96, 0], sizes = [16, 128], strides = [1, 1]} : vector<144x128xbf16> to vector<16x128xbf16>
    %c0_27 = arith.constant 0 : index
    %c768 = arith.constant 768 : index
    %50 = vector.load %arg12[%c0_27, %c768] : memref<32x1152xbf16, #tpu.memory_space<vmem>>, vector<16x128xbf16>
    tpu.vector_store %arg12[%c0_27, %c768], %49 {strides = array<i32>} : memref<32x1152xbf16, #tpu.memory_space<vmem>>, vector<16x128xbf16>,
    %51 = vector.extract_strided_slice %36 {offsets = [112, 0], sizes = [16, 128], strides = [1, 1]} : vector<144x128xbf16> to vector<16x128xbf16>
    %c0_28 = arith.constant 0 : index
    %c896 = arith.constant 896 : index
    %52 = vector.load %arg12[%c0_28, %c896] : memref<32x1152xbf16, #tpu.memory_space<vmem>>, vector<16x128xbf16>
    tpu.vector_store %arg12[%c0_28, %c896], %51 {strides = array<i32>} : memref<32x1152xbf16, #tpu.memory_space<vmem>>, vector<16x128xbf16>,
    %53 = vector.extract_strided_slice %36 {offsets = [128, 0], sizes = [16, 128], strides = [1, 1]} : vector<144x128xbf16> to vector<16x128xbf16>
    %c0_29 = arith.constant 0 : index
    %c1024 = arith.constant 1024 : index
    %54 = vector.load %arg12[%c0_29, %c1024] : memref<32x1152xbf16, #tpu.memory_space<vmem>>, vector<16x128xbf16>
    tpu.vector_store %arg12[%c0_29, %c1024], %53 {strides = array<i32>} : memref<32x1152xbf16, #tpu.memory_space<vmem>>, vector<16x128xbf16>,
    %55 = vector.extract_strided_slice %32 {offsets = [64, 0], sizes = [64, 128], strides = [1, 1]} : vector<128x128xbf16> to vector<64x128xbf16>
    %c0_30 = arith.constant 0 : index
    %c0_31 = arith.constant 0 : index
    %56 = vector.load %arg2[%c0_30, %c0_31] : memref<144x64xbf16, #tpu.memory_space<vmem>>, vector<144x64xbf16>
    %cst_32 = arith.constant dense<0.000000e+00> : vector<144x128xf32>
    %57 = tpu.matmul %56, %55, %cst_32 {dimension_numbers = #tpu.dot_dimension_numbers<[1], [0], [0], [1], [0, 0, 1, 1], [], []>} : vector<144x64xbf16>, vector<64x128xbf16>, vector<144x128xf32> -> vector<144x128xf32>
    %58 = arith.truncf %57 : vector<144x128xf32> to vector<144x128xbf16>
    %59 = vector.extract_strided_slice %58 {offsets = [0, 0], sizes = [16, 128], strides = [1, 1]} : vector<144x128xbf16> to vector<16x128xbf16>
    %c16 = arith.constant 16 : index
    %c0_33 = arith.constant 0 : index
    %60 = vector.load %arg12[%c16, %c0_33] : memref<32x1152xbf16, #tpu.memory_space<vmem>>, vector<16x128xbf16>
    tpu.vector_store %arg12[%c16, %c0_33], %59 {strides = array<i32>} : memref<32x1152xbf16, #tpu.memory_space<vmem>>, vector<16x128xbf16>,
    %61 = vector.extract_strided_slice %58 {offsets = [16, 0], sizes = [16, 128], strides = [1, 1]} : vector<144x128xbf16> to vector<16x128xbf16>
    %c16_34 = arith.constant 16 : index
    %c128_35 = arith.constant 128 : index
    %62 = vector.load %arg12[%c16_34, %c128_35] : memref<32x1152xbf16, #tpu.memory_space<vmem>>, vector<16x128xbf16>
    tpu.vector_store %arg12[%c16_34, %c128_35], %61 {strides = array<i32>} : memref<32x1152xbf16, #tpu.memory_space<vmem>>, vector<16x128xbf16>,
    %63 = vector.extract_strided_slice %58 {offsets = [32, 0], sizes = [16, 128], strides = [1, 1]} : vector<144x128xbf16> to vector<16x128xbf16>
    %c16_36 = arith.constant 16 : index
    %c256_37 = arith.constant 256 : index
    %64 = vector.load %arg12[%c16_36, %c256_37] : memref<32x1152xbf16, #tpu.memory_space<vmem>>, vector<16x128xbf16>
    tpu.vector_store %arg12[%c16_36, %c256_37], %63 {strides = array<i32>} : memref<32x1152xbf16, #tpu.memory_space<vmem>>, vector<16x128xbf16>,
    %65 = vector.extract_strided_slice %58 {offsets = [48, 0], sizes = [16, 128], strides = [1, 1]} : vector<144x128xbf16> to vector<16x128xbf16>
    %c16_38 = arith.constant 16 : index
    %c384_39 = arith.constant 384 : index
    %66 = vector.load %arg12[%c16_38, %c384_39] : memref<32x1152xbf16, #tpu.memory_space<vmem>>, vector<16x128xbf16>
    tpu.vector_store %arg12[%c16_38, %c384_39], %65 {strides = array<i32>} : memref<32x1152xbf16, #tpu.memory_space<vmem>>, vector<16x128xbf16>,
    %67 = vector.extract_strided_slice %58 {offsets = [64, 0], sizes = [16, 128], strides = [1, 1]} : vector<144x128xbf16> to vector<16x128xbf16>
    %c16_40 = arith.constant 16 : index
    %c512_41 = arith.constant 512 : index
    %68 = vector.load %arg12[%c16_40, %c512_41] : memref<32x1152xbf16, #tpu.memory_space<vmem>>, vector<16x128xbf16>
    tpu.vector_store %arg12[%c16_40, %c512_41], %67 {strides = array<i32>} : memref<32x1152xbf16, #tpu.memory_space<vmem>>, vector<16x128xbf16>,
    %69 = vector.extract_strided_slice %58 {offsets = [80, 0], sizes = [16, 128], strides = [1, 1]} : vector<144x128xbf16> to vector<16x128xbf16>
    %c16_42 = arith.constant 16 : index
    %c640_43 = arith.constant 640 : index
    %70 = vector.load %arg12[%c16_42, %c640_43] : memref<32x1152xbf16, #tpu.memory_space<vmem>>, vector<16x128xbf16>
    tpu.vector_store %arg12[%c16_42, %c640_43], %69 {strides = array<i32>} : memref<32x1152xbf16, #tpu.memory_space<vmem>>, vector<16x128xbf16>,
    %71 = vector.extract_strided_slice %58 {offsets = [96, 0], sizes = [16, 128], strides = [1, 1]} : vector<144x128xbf16> to vector<16x128xbf16>
    %c16_44 = arith.constant 16 : index
    %c768_45 = arith.constant 768 : index
    %72 = vector.load %arg12[%c16_44, %c768_45] : memref<32x1152xbf16, #tpu.memory_space<vmem>>, vector<16x128xbf16>
    tpu.vector_store %arg12[%c16_44, %c768_45], %71 {strides = array<i32>} : memref<32x1152xbf16, #tpu.memory_space<vmem>>, vector<16x128xbf16>,
    %73 = vector.extract_strided_slice %58 {offsets = [112, 0], sizes = [16, 128], strides = [1, 1]} : vector<144x128xbf16> to vector<16x128xbf16>
    %c16_46 = arith.constant 16 : index
    %c896_47 = arith.constant 896 : index
    %74 = vector.load %arg12[%c16_46, %c896_47] : memref<32x1152xbf16, #tpu.memory_space<vmem>>, vector<16x128xbf16>
    tpu.vector_store %arg12[%c16_46, %c896_47], %73 {strides = array<i32>} : memref<32x1152xbf16, #tpu.memory_space<vmem>>, vector<16x128xbf16>,
    %75 = vector.extract_strided_slice %58 {offsets = [128, 0], sizes = [16, 128], strides = [1, 1]} : vector<144x128xbf16> to vector<16x128xbf16>
    %c16_48 = arith.constant 16 : index
    %c1024_49 = arith.constant 1024 : index
    %76 = vector.load %arg12[%c16_48, %c1024_49] : memref<32x1152xbf16, #tpu.memory_space<vmem>>, vector<16x128xbf16>
    tpu.vector_store %arg12[%c16_48, %c1024_49], %75 {strides = array<i32>} : memref<32x1152xbf16, #tpu.memory_space<vmem>>, vector<16x128xbf16>,
    %c0_50 = arith.constant 0 : index
    %c0_51 = arith.constant 0 : index
    %77 = vector.load %arg12[%c0_50, %c0_51] : memref<32x1152xbf16, #tpu.memory_space<vmem>>, vector<32x1152xbf16>
    %c0_52 = arith.constant 0 : index
    %c0_53 = arith.constant 0 : index
    %78 = vector.load %arg4[%c0_52, %c0_53] : memref<1152x128xbf16, #tpu.memory_space<vmem>>, vector<1152x128xbf16>
    %cst_54 = arith.constant dense<0.000000e+00> : vector<32x128xf32>
    %79 = tpu.matmul %77, %78, %cst_54 {dimension_numbers = #tpu.dot_dimension_numbers<[1], [0], [0], [1], [0, 0, 1, 1], [], []>} : vector<32x1152xbf16>, vector<1152x128xbf16>, vector<32x128xf32> -> vector<32x128xf32>
    %cst_55 = arith.constant dense<0.000000e+00> : vector<128xf32>
    %80 = vector.multi_reduction <add>, %79, %cst_55 [0] : vector<32x128xf32> to vector<128xf32>
    %81 = vector.shape_cast %80 : vector<128xf32> to vector<1x128xf32>
    %cst_56 = arith.constant 3.200000e+01 : f32
    %82 = vector.broadcast %cst_56 : f32 to vector<1x128xf32>
    %83 = arith.divf %81, %82 : vector<1x128xf32>
    %84 = arith.mulf %79, %79 : vector<32x128xf32>
    %cst_57 = arith.constant dense<0.000000e+00> : vector<128xf32>
    %85 = vector.multi_reduction <add>, %84, %cst_57 [0] : vector<32x128xf32> to vector<128xf32>
    %86 = vector.shape_cast %85 : vector<128xf32> to vector<1x128xf32>
    %cst_58 = arith.constant 3.200000e+01 : f32
    %87 = vector.broadcast %cst_58 : f32 to vector<1x128xf32>
    %88 = arith.divf %86, %87 : vector<1x128xf32>
    %89 = arith.mulf %83, %83 : vector<1x128xf32>
    %90 = arith.subf %88, %89 : vector<1x128xf32>
    %cst_59 = arith.constant 0.000000e+00 : f32
    %91 = vector.broadcast %cst_59 : f32 to vector<1x128xf32>
    %92 = arith.maximumf %90, %91 : vector<1x128xf32>
    %cst_60 = arith.constant 9.99999974E-6 : f32
    %93 = vector.broadcast %cst_60 : f32 to vector<1x128xf32>
    %94 = arith.addf %92, %93 : vector<1x128xf32>
    %95 = math.rsqrt %94 : vector<1x128xf32>
    %96 = arith.mulf %30, %95 : vector<1x128xf32>
    %97 = arith.mulf %83, %96 : vector<1x128xf32>
    %98 = arith.subf %31, %97 : vector<1x128xf32>
    %99 = vector.broadcast %96 : vector<1x128xf32> to vector<32x128xf32>
    %100 = arith.mulf %79, %99 : vector<32x128xf32>
    %101 = vector.broadcast %98 : vector<1x128xf32> to vector<32x128xf32>
    %102 = arith.addf %100, %101 : vector<32x128xf32>
    %cst_61 = arith.constant 0.000000e+00 : f32
    %103 = vector.broadcast %cst_61 : f32 to vector<32x128xf32>
    %104 = arith.maximumf %102, %103 : vector<32x128xf32>
    %c2 = arith.constant 2 : index
    %c0_62 = arith.constant 0 : index
    %105 = vector.load %arg8[%c2, %c0_62] : memref<5x128xf32, #tpu.memory_space<vmem>>, vector<1x128xf32>
    %c2_63 = arith.constant 2 : index
    %c0_64 = arith.constant 0 : index
    %106 = vector.load %arg9[%c2_63, %c0_64] : memref<5x128xf32, #tpu.memory_space<vmem>>, vector<1x128xf32>
    %107 = arith.truncf %104 : vector<32x128xf32> to vector<32x128xbf16>
    %108 = vector.extract_strided_slice %107 {offsets = [0, 0], sizes = [16, 128], strides = [1, 1]} : vector<32x128xbf16> to vector<16x128xbf16>
    %c0_65 = arith.constant 0 : index
    %c0_66 = arith.constant 0 : index
    %109 = vector.load %arg3[%c0_65, %c0_66] : memref<144x16xbf16, #tpu.memory_space<vmem>>, vector<144x16xbf16>
    %cst_67 = arith.constant dense<0.000000e+00> : vector<144x128xf32>
    %110 = tpu.matmul %109, %108, %cst_67 {dimension_numbers = #tpu.dot_dimension_numbers<[1], [0], [0], [1], [0, 0, 1, 1], [], []>} : vector<144x16xbf16>, vector<16x128xbf16>, vector<144x128xf32> -> vector<144x128xf32>
    %111 = arith.truncf %110 : vector<144x128xf32> to vector<144x128xbf16>
    %112 = vector.extract_strided_slice %111 {offsets = [0, 0], sizes = [16, 128], strides = [1, 1]} : vector<144x128xbf16> to vector<16x128xbf16>
    %c0_68 = arith.constant 0 : index
    %c0_69 = arith.constant 0 : index
    %113 = vector.load %arg12[%c0_68, %c0_69] : memref<32x1152xbf16, #tpu.memory_space<vmem>>, vector<16x128xbf16>
    tpu.vector_store %arg12[%c0_68, %c0_69], %112 {strides = array<i32>} : memref<32x1152xbf16, #tpu.memory_space<vmem>>, vector<16x128xbf16>,
    %114 = vector.extract_strided_slice %111 {offsets = [16, 0], sizes = [16, 128], strides = [1, 1]} : vector<144x128xbf16> to vector<16x128xbf16>
    %c0_70 = arith.constant 0 : index
    %c128_71 = arith.constant 128 : index
    %115 = vector.load %arg12[%c0_70, %c128_71] : memref<32x1152xbf16, #tpu.memory_space<vmem>>, vector<16x128xbf16>
    tpu.vector_store %arg12[%c0_70, %c128_71], %114 {strides = array<i32>} : memref<32x1152xbf16, #tpu.memory_space<vmem>>, vector<16x128xbf16>,
    %116 = vector.extract_strided_slice %111 {offsets = [32, 0], sizes = [16, 128], strides = [1, 1]} : vector<144x128xbf16> to vector<16x128xbf16>
    %c0_72 = arith.constant 0 : index
    %c256_73 = arith.constant 256 : index
    %117 = vector.load %arg12[%c0_72, %c256_73] : memref<32x1152xbf16, #tpu.memory_space<vmem>>, vector<16x128xbf16>
    tpu.vector_store %arg12[%c0_72, %c256_73], %116 {strides = array<i32>} : memref<32x1152xbf16, #tpu.memory_space<vmem>>, vector<16x128xbf16>,
    %118 = vector.extract_strided_slice %111 {offsets = [48, 0], sizes = [16, 128], strides = [1, 1]} : vector<144x128xbf16> to vector<16x128xbf16>
    %c0_74 = arith.constant 0 : index
    %c384_75 = arith.constant 384 : index
    %119 = vector.load %arg12[%c0_74, %c384_75] : memref<32x1152xbf16, #tpu.memory_space<vmem>>, vector<16x128xbf16>
    tpu.vector_store %arg12[%c0_74, %c384_75], %118 {strides = array<i32>} : memref<32x1152xbf16, #tpu.memory_space<vmem>>, vector<16x128xbf16>,
    %120 = vector.extract_strided_slice %111 {offsets = [64, 0], sizes = [16, 128], strides = [1, 1]} : vector<144x128xbf16> to vector<16x128xbf16>
    %c0_76 = arith.constant 0 : index
    %c512_77 = arith.constant 512 : index
    %121 = vector.load %arg12[%c0_76, %c512_77] : memref<32x1152xbf16, #tpu.memory_space<vmem>>, vector<16x128xbf16>
    tpu.vector_store %arg12[%c0_76, %c512_77], %120 {strides = array<i32>} : memref<32x1152xbf16, #tpu.memory_space<vmem>>, vector<16x128xbf16>,
    %122 = vector.extract_strided_slice %111 {offsets = [80, 0], sizes = [16, 128], strides = [1, 1]} : vector<144x128xbf16> to vector<16x128xbf16>
    %c0_78 = arith.constant 0 : index
    %c640_79 = arith.constant 640 : index
    %123 = vector.load %arg12[%c0_78, %c640_79] : memref<32x1152xbf16, #tpu.memory_space<vmem>>, vector<16x128xbf16>
    tpu.vector_store %arg12[%c0_78, %c640_79], %122 {strides = array<i32>} : memref<32x1152xbf16, #tpu.memory_space<vmem>>, vector<16x128xbf16>,
    %124 = vector.extract_strided_slice %111 {offsets = [96, 0], sizes = [16, 128], strides = [1, 1]} : vector<144x128xbf16> to vector<16x128xbf16>
    %c0_80 = arith.constant 0 : index
    %c768_81 = arith.constant 768 : index
    %125 = vector.load %arg12[%c0_80, %c768_81] : memref<32x1152xbf16, #tpu.memory_space<vmem>>, vector<16x128xbf16>
    tpu.vector_store %arg12[%c0_80, %c768_81], %124 {strides = array<i32>} : memref<32x1152xbf16, #tpu.memory_space<vmem>>, vector<16x128xbf16>,
    %126 = vector.extract_strided_slice %111 {offsets = [112, 0], sizes = [16, 128], strides = [1, 1]} : vector<144x128xbf16> to vector<16x128xbf16>
    %c0_82 = arith.constant 0 : index
    %c896_83 = arith.constant 896 : index
    %127 = vector.load %arg12[%c0_82, %c896_83] : memref<32x1152xbf16, #tpu.memory_space<vmem>>, vector<16x128xbf16>
    tpu.vector_store %arg12[%c0_82, %c896_83], %126 {strides = array<i32>} : memref<32x1152xbf16, #tpu.memory_space<vmem>>, vector<16x128xbf16>,
    %128 = vector.extract_strided_slice %111 {offsets = [128, 0], sizes = [16, 128], strides = [1, 1]} : vector<144x128xbf16> to vector<16x128xbf16>
    %c0_84 = arith.constant 0 : index
    %c1024_85 = arith.constant 1024 : index
    %129 = vector.load %arg12[%c0_84, %c1024_85] : memref<32x1152xbf16, #tpu.memory_space<vmem>>, vector<16x128xbf16>
    tpu.vector_store %arg12[%c0_84, %c1024_85], %128 {strides = array<i32>} : memref<32x1152xbf16, #tpu.memory_space<vmem>>, vector<16x128xbf16>,
    %130 = vector.extract_strided_slice %107 {offsets = [16, 0], sizes = [16, 128], strides = [1, 1]} : vector<32x128xbf16> to vector<16x128xbf16>
    %c0_86 = arith.constant 0 : index
    %c0_87 = arith.constant 0 : index
    %131 = vector.load %arg3[%c0_86, %c0_87] : memref<144x16xbf16, #tpu.memory_space<vmem>>, vector<144x16xbf16>
    %cst_88 = arith.constant dense<0.000000e+00> : vector<144x128xf32>
    %132 = tpu.matmul %131, %130, %cst_88 {dimension_numbers = #tpu.dot_dimension_numbers<[1], [0], [0], [1], [0, 0, 1, 1], [], []>} : vector<144x16xbf16>, vector<16x128xbf16>, vector<144x128xf32> -> vector<144x128xf32>
    %133 = arith.truncf %132 : vector<144x128xf32> to vector<144x128xbf16>
    %134 = vector.extract_strided_slice %133 {offsets = [0, 0], sizes = [16, 128], strides = [1, 1]} : vector<144x128xbf16> to vector<16x128xbf16>
    %c16_89 = arith.constant 16 : index
    %c0_90 = arith.constant 0 : index
    %135 = vector.load %arg12[%c16_89, %c0_90] : memref<32x1152xbf16, #tpu.memory_space<vmem>>, vector<16x128xbf16>
    tpu.vector_store %arg12[%c16_89, %c0_90], %134 {strides = array<i32>} : memref<32x1152xbf16, #tpu.memory_space<vmem>>, vector<16x128xbf16>,
    %136 = vector.extract_strided_slice %133 {offsets = [16, 0], sizes = [16, 128], strides = [1, 1]} : vector<144x128xbf16> to vector<16x128xbf16>
    %c16_91 = arith.constant 16 : index
    %c128_92 = arith.constant 128 : index
    %137 = vector.load %arg12[%c16_91, %c128_92] : memref<32x1152xbf16, #tpu.memory_space<vmem>>, vector<16x128xbf16>
    tpu.vector_store %arg12[%c16_91, %c128_92], %136 {strides = array<i32>} : memref<32x1152xbf16, #tpu.memory_space<vmem>>, vector<16x128xbf16>,
    %138 = vector.extract_strided_slice %133 {offsets = [32, 0], sizes = [16, 128], strides = [1, 1]} : vector<144x128xbf16> to vector<16x128xbf16>
    %c16_93 = arith.constant 16 : index
    %c256_94 = arith.constant 256 : index
    %139 = vector.load %arg12[%c16_93, %c256_94] : memref<32x1152xbf16, #tpu.memory_space<vmem>>, vector<16x128xbf16>
    tpu.vector_store %arg12[%c16_93, %c256_94], %138 {strides = array<i32>} : memref<32x1152xbf16, #tpu.memory_space<vmem>>, vector<16x128xbf16>,
    %140 = vector.extract_strided_slice %133 {offsets = [48, 0], sizes = [16, 128], strides = [1, 1]} : vector<144x128xbf16> to vector<16x128xbf16>
    %c16_95 = arith.constant 16 : index
    %c384_96 = arith.constant 384 : index
    %141 = vector.load %arg12[%c16_95, %c384_96] : memref<32x1152xbf16, #tpu.memory_space<vmem>>, vector<16x128xbf16>
    tpu.vector_store %arg12[%c16_95, %c384_96], %140 {strides = array<i32>} : memref<32x1152xbf16, #tpu.memory_space<vmem>>, vector<16x128xbf16>,
    %142 = vector.extract_strided_slice %133 {offsets = [64, 0], sizes = [16, 128], strides = [1, 1]} : vector<144x128xbf16> to vector<16x128xbf16>
    %c16_97 = arith.constant 16 : index
    %c512_98 = arith.constant 512 : index
    %143 = vector.load %arg12[%c16_97, %c512_98] : memref<32x1152xbf16, #tpu.memory_space<vmem>>, vector<16x128xbf16>
    tpu.vector_store %arg12[%c16_97, %c512_98], %142 {strides = array<i32>} : memref<32x1152xbf16, #tpu.memory_space<vmem>>, vector<16x128xbf16>,
    %144 = vector.extract_strided_slice %133 {offsets = [80, 0], sizes = [16, 128], strides = [1, 1]} : vector<144x128xbf16> to vector<16x128xbf16>
    %c16_99 = arith.constant 16 : index
    %c640_100 = arith.constant 640 : index
    %145 = vector.load %arg12[%c16_99, %c640_100] : memref<32x1152xbf16, #tpu.memory_space<vmem>>, vector<16x128xbf16>
    tpu.vector_store %arg12[%c16_99, %c640_100], %144 {strides = array<i32>} : memref<32x1152xbf16, #tpu.memory_space<vmem>>, vector<16x128xbf16>,
    %146 = vector.extract_strided_slice %133 {offsets = [96, 0], sizes = [16, 128], strides = [1, 1]} : vector<144x128xbf16> to vector<16x128xbf16>
    %c16_101 = arith.constant 16 : index
    %c768_102 = arith.constant 768 : index
    %147 = vector.load %arg12[%c16_101, %c768_102] : memref<32x1152xbf16, #tpu.memory_space<vmem>>, vector<16x128xbf16>
    tpu.vector_store %arg12[%c16_101, %c768_102], %146 {strides = array<i32>} : memref<32x1152xbf16, #tpu.memory_space<vmem>>, vector<16x128xbf16>,
    %148 = vector.extract_strided_slice %133 {offsets = [112, 0], sizes = [16, 128], strides = [1, 1]} : vector<144x128xbf16> to vector<16x128xbf16>
    %c16_103 = arith.constant 16 : index
    %c896_104 = arith.constant 896 : index
    %149 = vector.load %arg12[%c16_103, %c896_104] : memref<32x1152xbf16, #tpu.memory_space<vmem>>, vector<16x128xbf16>
    tpu.vector_store %arg12[%c16_103, %c896_104], %148 {strides = array<i32>} : memref<32x1152xbf16, #tpu.memory_space<vmem>>, vector<16x128xbf16>,
    %150 = vector.extract_strided_slice %133 {offsets = [128, 0], sizes = [16, 128], strides = [1, 1]} : vector<144x128xbf16> to vector<16x128xbf16>
    %c16_105 = arith.constant 16 : index
    %c1024_106 = arith.constant 1024 : index
    %151 = vector.load %arg12[%c16_105, %c1024_106] : memref<32x1152xbf16, #tpu.memory_space<vmem>>, vector<16x128xbf16>
    tpu.vector_store %arg12[%c16_105, %c1024_106], %150 {strides = array<i32>} : memref<32x1152xbf16, #tpu.memory_space<vmem>>, vector<16x128xbf16>,
    %c0_107 = arith.constant 0 : index
    %c0_108 = arith.constant 0 : index
    %152 = vector.load %arg12[%c0_107, %c0_108] : memref<32x1152xbf16, #tpu.memory_space<vmem>>, vector<32x1152xbf16>
    %c0_109 = arith.constant 0 : index
    %c0_110 = arith.constant 0 : index
    %153 = vector.load %arg5[%c0_109, %c0_110] : memref<1152x128xbf16, #tpu.memory_space<vmem>>, vector<1152x128xbf16>
    %cst_111 = arith.constant dense<0.000000e+00> : vector<32x128xf32>
    %154 = tpu.matmul %152, %153, %cst_111 {dimension_numbers = #tpu.dot_dimension_numbers<[1], [0], [0], [1], [0, 0, 1, 1], [], []>} : vector<32x1152xbf16>, vector<1152x128xbf16>, vector<32x128xf32> -> vector<32x128xf32>
    %cst_112 = arith.constant dense<0.000000e+00> : vector<128xf32>
    %155 = vector.multi_reduction <add>, %154, %cst_112 [0] : vector<32x128xf32> to vector<128xf32>
    %156 = vector.shape_cast %155 : vector<128xf32> to vector<1x128xf32>
    %cst_113 = arith.constant 3.200000e+01 : f32
    %157 = vector.broadcast %cst_113 : f32 to vector<1x128xf32>
    %158 = arith.divf %156, %157 : vector<1x128xf32>
    %159 = arith.mulf %154, %154 : vector<32x128xf32>
    %cst_114 = arith.constant dense<0.000000e+00> : vector<128xf32>
    %160 = vector.multi_reduction <add>, %159, %cst_114 [0] : vector<32x128xf32> to vector<128xf32>
    %161 = vector.shape_cast %160 : vector<128xf32> to vector<1x128xf32>
    %cst_115 = arith.constant 3.200000e+01 : f32
    %162 = vector.broadcast %cst_115 : f32 to vector<1x128xf32>
    %163 = arith.divf %161, %162 : vector<1x128xf32>
    %164 = arith.mulf %158, %158 : vector<1x128xf32>
    %165 = arith.subf %163, %164 : vector<1x128xf32>
    %cst_116 = arith.constant 0.000000e+00 : f32
    %166 = vector.broadcast %cst_116 : f32 to vector<1x128xf32>
    %167 = arith.maximumf %165, %166 : vector<1x128xf32>
    %cst_117 = arith.constant 9.99999974E-6 : f32
    %168 = vector.broadcast %cst_117 : f32 to vector<1x128xf32>
    %169 = arith.addf %167, %168 : vector<1x128xf32>
    %170 = math.rsqrt %169 : vector<1x128xf32>
    %171 = arith.mulf %105, %170 : vector<1x128xf32>
    %172 = arith.mulf %158, %171 : vector<1x128xf32>
    %173 = arith.subf %106, %172 : vector<1x128xf32>
    %174 = vector.broadcast %171 : vector<1x128xf32> to vector<32x128xf32>
    %175 = arith.mulf %154, %174 : vector<32x128xf32>
    %176 = vector.broadcast %173 : vector<1x128xf32> to vector<32x128xf32>
    %177 = arith.addf %175, %176 : vector<32x128xf32>
    %cst_118 = arith.constant 0.000000e+00 : f32
    %178 = vector.broadcast %cst_118 : f32 to vector<32x128xf32>
    %179 = arith.maximumf %177, %178 : vector<32x128xf32>
    %c3 = arith.constant 3 : index
    %c0_119 = arith.constant 0 : index
    %180 = vector.load %arg8[%c3, %c0_119] : memref<5x128xf32, #tpu.memory_space<vmem>>, vector<1x128xf32>
    %c3_120 = arith.constant 3 : index
    %c0_121 = arith.constant 0 : index
    %181 = vector.load %arg9[%c3_120, %c0_121] : memref<5x128xf32, #tpu.memory_space<vmem>>, vector<1x128xf32>
    %182 = arith.truncf %179 : vector<32x128xf32> to vector<32x128xbf16>
    %183 = vector.extract_strided_slice %182 {offsets = [0, 0], sizes = [16, 128], strides = [1, 1]} : vector<32x128xbf16> to vector<16x128xbf16>
    %c0_122 = arith.constant 0 : index
    %c0_123 = arith.constant 0 : index
    %184 = vector.load %arg3[%c0_122, %c0_123] : memref<144x16xbf16, #tpu.memory_space<vmem>>, vector<144x16xbf16>
    %cst_124 = arith.constant dense<0.000000e+00> : vector<144x128xf32>
    %185 = tpu.matmul %184, %183, %cst_124 {dimension_numbers = #tpu.dot_dimension_numbers<[1], [0], [0], [1], [0, 0, 1, 1], [], []>} : vector<144x16xbf16>, vector<16x128xbf16>, vector<144x128xf32> -> vector<144x128xf32>
    %186 = arith.truncf %185 : vector<144x128xf32> to vector<144x128xbf16>
    %187 = vector.extract_strided_slice %186 {offsets = [0, 0], sizes = [16, 128], strides = [1, 1]} : vector<144x128xbf16> to vector<16x128xbf16>
    %c0_125 = arith.constant 0 : index
    %c0_126 = arith.constant 0 : index
    %188 = vector.load %arg12[%c0_125, %c0_126] : memref<32x1152xbf16, #tpu.memory_space<vmem>>, vector<16x128xbf16>
    tpu.vector_store %arg12[%c0_125, %c0_126], %187 {strides = array<i32>} : memref<32x1152xbf16, #tpu.memory_space<vmem>>, vector<16x128xbf16>,
    %189 = vector.extract_strided_slice %186 {offsets = [16, 0], sizes = [16, 128], strides = [1, 1]} : vector<144x128xbf16> to vector<16x128xbf16>
    %c0_127 = arith.constant 0 : index
    %c128_128 = arith.constant 128 : index
    %190 = vector.load %arg12[%c0_127, %c128_128] : memref<32x1152xbf16, #tpu.memory_space<vmem>>, vector<16x128xbf16>
    tpu.vector_store %arg12[%c0_127, %c128_128], %189 {strides = array<i32>} : memref<32x1152xbf16, #tpu.memory_space<vmem>>, vector<16x128xbf16>,
    %191 = vector.extract_strided_slice %186 {offsets = [32, 0], sizes = [16, 128], strides = [1, 1]} : vector<144x128xbf16> to vector<16x128xbf16>
    %c0_129 = arith.constant 0 : index
    %c256_130 = arith.constant 256 : index
    %192 = vector.load %arg12[%c0_129, %c256_130] : memref<32x1152xbf16, #tpu.memory_space<vmem>>, vector<16x128xbf16>
    tpu.vector_store %arg12[%c0_129, %c256_130], %191 {strides = array<i32>} : memref<32x1152xbf16, #tpu.memory_space<vmem>>, vector<16x128xbf16>,
    %193 = vector.extract_strided_slice %186 {offsets = [48, 0], sizes = [16, 128], strides = [1, 1]} : vector<144x128xbf16> to vector<16x128xbf16>
    %c0_131 = arith.constant 0 : index
    %c384_132 = arith.constant 384 : index
    %194 = vector.load %arg12[%c0_131, %c384_132] : memref<32x1152xbf16, #tpu.memory_space<vmem>>, vector<16x128xbf16>
    tpu.vector_store %arg12[%c0_131, %c384_132], %193 {strides = array<i32>} : memref<32x1152xbf16, #tpu.memory_space<vmem>>, vector<16x128xbf16>,
    %195 = vector.extract_strided_slice %186 {offsets = [64, 0], sizes = [16, 128], strides = [1, 1]} : vector<144x128xbf16> to vector<16x128xbf16>
    %c0_133 = arith.constant 0 : index
    %c512_134 = arith.constant 512 : index
    %196 = vector.load %arg12[%c0_133, %c512_134] : memref<32x1152xbf16, #tpu.memory_space<vmem>>, vector<16x128xbf16>
    tpu.vector_store %arg12[%c0_133, %c512_134], %195 {strides = array<i32>} : memref<32x1152xbf16, #tpu.memory_space<vmem>>, vector<16x128xbf16>,
    %197 = vector.extract_strided_slice %186 {offsets = [80, 0], sizes = [16, 128], strides = [1, 1]} : vector<144x128xbf16> to vector<16x128xbf16>
    %c0_135 = arith.constant 0 : index
    %c640_136 = arith.constant 640 : index
    %198 = vector.load %arg12[%c0_135, %c640_136] : memref<32x1152xbf16, #tpu.memory_space<vmem>>, vector<16x128xbf16>
    tpu.vector_store %arg12[%c0_135, %c640_136], %197 {strides = array<i32>} : memref<32x1152xbf16, #tpu.memory_space<vmem>>, vector<16x128xbf16>,
    %199 = vector.extract_strided_slice %186 {offsets = [96, 0], sizes = [16, 128], strides = [1, 1]} : vector<144x128xbf16> to vector<16x128xbf16>
    %c0_137 = arith.constant 0 : index
    %c768_138 = arith.constant 768 : index
    %200 = vector.load %arg12[%c0_137, %c768_138] : memref<32x1152xbf16, #tpu.memory_space<vmem>>, vector<16x128xbf16>
    tpu.vector_store %arg12[%c0_137, %c768_138], %199 {strides = array<i32>} : memref<32x1152xbf16, #tpu.memory_space<vmem>>, vector<16x128xbf16>,
    %201 = vector.extract_strided_slice %186 {offsets = [112, 0], sizes = [16, 128], strides = [1, 1]} : vector<144x128xbf16> to vector<16x128xbf16>
    %c0_139 = arith.constant 0 : index
    %c896_140 = arith.constant 896 : index
    %202 = vector.load %arg12[%c0_139, %c896_140] : memref<32x1152xbf16, #tpu.memory_space<vmem>>, vector<16x128xbf16>
    tpu.vector_store %arg12[%c0_139, %c896_140], %201 {strides = array<i32>} : memref<32x1152xbf16, #tpu.memory_space<vmem>>, vector<16x128xbf16>,
    %203 = vector.extract_strided_slice %186 {offsets = [128, 0], sizes = [16, 128], strides = [1, 1]} : vector<144x128xbf16> to vector<16x128xbf16>
    %c0_141 = arith.constant 0 : index
    %c1024_142 = arith.constant 1024 : index
    %204 = vector.load %arg12[%c0_141, %c1024_142] : memref<32x1152xbf16, #tpu.memory_space<vmem>>, vector<16x128xbf16>
    tpu.vector_store %arg12[%c0_141, %c1024_142], %203 {strides = array<i32>} : memref<32x1152xbf16, #tpu.memory_space<vmem>>, vector<16x128xbf16>,
    %205 = vector.extract_strided_slice %182 {offsets = [16, 0], sizes = [16, 128], strides = [1, 1]} : vector<32x128xbf16> to vector<16x128xbf16>
    %c0_143 = arith.constant 0 : index
    %c0_144 = arith.constant 0 : index
    %206 = vector.load %arg3[%c0_143, %c0_144] : memref<144x16xbf16, #tpu.memory_space<vmem>>, vector<144x16xbf16>
    %cst_145 = arith.constant dense<0.000000e+00> : vector<144x128xf32>
    %207 = tpu.matmul %206, %205, %cst_145 {dimension_numbers = #tpu.dot_dimension_numbers<[1], [0], [0], [1], [0, 0, 1, 1], [], []>} : vector<144x16xbf16>, vector<16x128xbf16>, vector<144x128xf32> -> vector<144x128xf32>
    %208 = arith.truncf %207 : vector<144x128xf32> to vector<144x128xbf16>
    %209 = vector.extract_strided_slice %208 {offsets = [0, 0], sizes = [16, 128], strides = [1, 1]} : vector<144x128xbf16> to vector<16x128xbf16>
    %c16_146 = arith.constant 16 : index
    %c0_147 = arith.constant 0 : index
    %210 = vector.load %arg12[%c16_146, %c0_147] : memref<32x1152xbf16, #tpu.memory_space<vmem>>, vector<16x128xbf16>
    tpu.vector_store %arg12[%c16_146, %c0_147], %209 {strides = array<i32>} : memref<32x1152xbf16, #tpu.memory_space<vmem>>, vector<16x128xbf16>,
    %211 = vector.extract_strided_slice %208 {offsets = [16, 0], sizes = [16, 128], strides = [1, 1]} : vector<144x128xbf16> to vector<16x128xbf16>
    %c16_148 = arith.constant 16 : index
    %c128_149 = arith.constant 128 : index
    %212 = vector.load %arg12[%c16_148, %c128_149] : memref<32x1152xbf16, #tpu.memory_space<vmem>>, vector<16x128xbf16>
    tpu.vector_store %arg12[%c16_148, %c128_149], %211 {strides = array<i32>} : memref<32x1152xbf16, #tpu.memory_space<vmem>>, vector<16x128xbf16>,
    %213 = vector.extract_strided_slice %208 {offsets = [32, 0], sizes = [16, 128], strides = [1, 1]} : vector<144x128xbf16> to vector<16x128xbf16>
    %c16_150 = arith.constant 16 : index
    %c256_151 = arith.constant 256 : index
    %214 = vector.load %arg12[%c16_150, %c256_151] : memref<32x1152xbf16, #tpu.memory_space<vmem>>, vector<16x128xbf16>
    tpu.vector_store %arg12[%c16_150, %c256_151], %213 {strides = array<i32>} : memref<32x1152xbf16, #tpu.memory_space<vmem>>, vector<16x128xbf16>,
    %215 = vector.extract_strided_slice %208 {offsets = [48, 0], sizes = [16, 128], strides = [1, 1]} : vector<144x128xbf16> to vector<16x128xbf16>
    %c16_152 = arith.constant 16 : index
    %c384_153 = arith.constant 384 : index
    %216 = vector.load %arg12[%c16_152, %c384_153] : memref<32x1152xbf16, #tpu.memory_space<vmem>>, vector<16x128xbf16>
    tpu.vector_store %arg12[%c16_152, %c384_153], %215 {strides = array<i32>} : memref<32x1152xbf16, #tpu.memory_space<vmem>>, vector<16x128xbf16>,
    %217 = vector.extract_strided_slice %208 {offsets = [64, 0], sizes = [16, 128], strides = [1, 1]} : vector<144x128xbf16> to vector<16x128xbf16>
    %c16_154 = arith.constant 16 : index
    %c512_155 = arith.constant 512 : index
    %218 = vector.load %arg12[%c16_154, %c512_155] : memref<32x1152xbf16, #tpu.memory_space<vmem>>, vector<16x128xbf16>
    tpu.vector_store %arg12[%c16_154, %c512_155], %217 {strides = array<i32>} : memref<32x1152xbf16, #tpu.memory_space<vmem>>, vector<16x128xbf16>,
    %219 = vector.extract_strided_slice %208 {offsets = [80, 0], sizes = [16, 128], strides = [1, 1]} : vector<144x128xbf16> to vector<16x128xbf16>
    %c16_156 = arith.constant 16 : index
    %c640_157 = arith.constant 640 : index
    %220 = vector.load %arg12[%c16_156, %c640_157] : memref<32x1152xbf16, #tpu.memory_space<vmem>>, vector<16x128xbf16>
    tpu.vector_store %arg12[%c16_156, %c640_157], %219 {strides = array<i32>} : memref<32x1152xbf16, #tpu.memory_space<vmem>>, vector<16x128xbf16>,
    %221 = vector.extract_strided_slice %208 {offsets = [96, 0], sizes = [16, 128], strides = [1, 1]} : vector<144x128xbf16> to vector<16x128xbf16>
    %c16_158 = arith.constant 16 : index
    %c768_159 = arith.constant 768 : index
    %222 = vector.load %arg12[%c16_158, %c768_159] : memref<32x1152xbf16, #tpu.memory_space<vmem>>, vector<16x128xbf16>
    tpu.vector_store %arg12[%c16_158, %c768_159], %221 {strides = array<i32>} : memref<32x1152xbf16, #tpu.memory_space<vmem>>, vector<16x128xbf16>,
    %223 = vector.extract_strided_slice %208 {offsets = [112, 0], sizes = [16, 128], strides = [1, 1]} : vector<144x128xbf16> to vector<16x128xbf16>
    %c16_160 = arith.constant 16 : index
    %c896_161 = arith.constant 896 : index
    %224 = vector.load %arg12[%c16_160, %c896_161] : memref<32x1152xbf16, #tpu.memory_space<vmem>>, vector<16x128xbf16>
    tpu.vector_store %arg12[%c16_160, %c896_161], %223 {strides = array<i32>} : memref<32x1152xbf16, #tpu.memory_space<vmem>>, vector<16x128xbf16>,
    %225 = vector.extract_strided_slice %208 {offsets = [128, 0], sizes = [16, 128], strides = [1, 1]} : vector<144x128xbf16> to vector<16x128xbf16>
    %c16_162 = arith.constant 16 : index
    %c1024_163 = arith.constant 1024 : index
    %226 = vector.load %arg12[%c16_162, %c1024_163] : memref<32x1152xbf16, #tpu.memory_space<vmem>>, vector<16x128xbf16>
    tpu.vector_store %arg12[%c16_162, %c1024_163], %225 {strides = array<i32>} : memref<32x1152xbf16, #tpu.memory_space<vmem>>, vector<16x128xbf16>,
    %c0_164 = arith.constant 0 : index
    %c0_165 = arith.constant 0 : index
    %227 = vector.load %arg12[%c0_164, %c0_165] : memref<32x1152xbf16, #tpu.memory_space<vmem>>, vector<32x1152xbf16>
    %c0_166 = arith.constant 0 : index
    %c0_167 = arith.constant 0 : index
    %228 = vector.load %arg6[%c0_166, %c0_167] : memref<1152x128xbf16, #tpu.memory_space<vmem>>, vector<1152x128xbf16>
    %cst_168 = arith.constant dense<0.000000e+00> : vector<32x128xf32>
    %229 = tpu.matmul %227, %228, %cst_168 {dimension_numbers = #tpu.dot_dimension_numbers<[1], [0], [0], [1], [0, 0, 1, 1], [], []>} : vector<32x1152xbf16>, vector<1152x128xbf16>, vector<32x128xf32> -> vector<32x128xf32>
    %cst_169 = arith.constant dense<0.000000e+00> : vector<128xf32>
    %230 = vector.multi_reduction <add>, %229, %cst_169 [0] : vector<32x128xf32> to vector<128xf32>
    %231 = vector.shape_cast %230 : vector<128xf32> to vector<1x128xf32>
    %cst_170 = arith.constant 3.200000e+01 : f32
    %232 = vector.broadcast %cst_170 : f32 to vector<1x128xf32>
    %233 = arith.divf %231, %232 : vector<1x128xf32>
    %234 = arith.mulf %229, %229 : vector<32x128xf32>
    %cst_171 = arith.constant dense<0.000000e+00> : vector<128xf32>
    %235 = vector.multi_reduction <add>, %234, %cst_171 [0] : vector<32x128xf32> to vector<128xf32>
    %236 = vector.shape_cast %235 : vector<128xf32> to vector<1x128xf32>
    %cst_172 = arith.constant 3.200000e+01 : f32
    %237 = vector.broadcast %cst_172 : f32 to vector<1x128xf32>
    %238 = arith.divf %236, %237 : vector<1x128xf32>
    %239 = arith.mulf %233, %233 : vector<1x128xf32>
    %240 = arith.subf %238, %239 : vector<1x128xf32>
    %cst_173 = arith.constant 0.000000e+00 : f32
    %241 = vector.broadcast %cst_173 : f32 to vector<1x128xf32>
    %242 = arith.maximumf %240, %241 : vector<1x128xf32>
    %cst_174 = arith.constant 9.99999974E-6 : f32
    %243 = vector.broadcast %cst_174 : f32 to vector<1x128xf32>
    %244 = arith.addf %242, %243 : vector<1x128xf32>
    %245 = math.rsqrt %244 : vector<1x128xf32>
    %246 = arith.mulf %180, %245 : vector<1x128xf32>
    %247 = arith.mulf %233, %246 : vector<1x128xf32>
    %248 = arith.subf %181, %247 : vector<1x128xf32>
    %249 = vector.broadcast %246 : vector<1x128xf32> to vector<32x128xf32>
    %250 = arith.mulf %229, %249 : vector<32x128xf32>
    %251 = vector.broadcast %248 : vector<1x128xf32> to vector<32x128xf32>
    %252 = arith.addf %250, %251 : vector<32x128xf32>
    %cst_175 = arith.constant 0.000000e+00 : f32
    %253 = vector.broadcast %cst_175 : f32 to vector<32x128xf32>
    %254 = arith.maximumf %252, %253 : vector<32x128xf32>
    %c4 = arith.constant 4 : index
    %c0_176 = arith.constant 0 : index
    %255 = vector.load %arg8[%c4, %c0_176] : memref<5x128xf32, #tpu.memory_space<vmem>>, vector<1x128xf32>
    %c4_177 = arith.constant 4 : index
    %c0_178 = arith.constant 0 : index
    %256 = vector.load %arg9[%c4_177, %c0_178] : memref<5x128xf32, #tpu.memory_space<vmem>>, vector<1x128xf32>
    %257 = arith.truncf %254 : vector<32x128xf32> to vector<32x128xbf16>
    %258 = vector.extract_strided_slice %257 {offsets = [0, 0], sizes = [16, 128], strides = [1, 1]} : vector<32x128xbf16> to vector<16x128xbf16>
    %c0_179 = arith.constant 0 : index
    %c0_180 = arith.constant 0 : index
    %259 = vector.load %arg3[%c0_179, %c0_180] : memref<144x16xbf16, #tpu.memory_space<vmem>>, vector<144x16xbf16>
    %cst_181 = arith.constant dense<0.000000e+00> : vector<144x128xf32>
    %260 = tpu.matmul %259, %258, %cst_181 {dimension_numbers = #tpu.dot_dimension_numbers<[1], [0], [0], [1], [0, 0, 1, 1], [], []>} : vector<144x16xbf16>, vector<16x128xbf16>, vector<144x128xf32> -> vector<144x128xf32>
    %261 = arith.truncf %260 : vector<144x128xf32> to vector<144x128xbf16>
    %262 = vector.extract_strided_slice %261 {offsets = [0, 0], sizes = [16, 128], strides = [1, 1]} : vector<144x128xbf16> to vector<16x128xbf16>
    %c0_182 = arith.constant 0 : index
    %c0_183 = arith.constant 0 : index
    %263 = vector.load %arg12[%c0_182, %c0_183] : memref<32x1152xbf16, #tpu.memory_space<vmem>>, vector<16x128xbf16>
    tpu.vector_store %arg12[%c0_182, %c0_183], %262 {strides = array<i32>} : memref<32x1152xbf16, #tpu.memory_space<vmem>>, vector<16x128xbf16>,
    %264 = vector.extract_strided_slice %261 {offsets = [16, 0], sizes = [16, 128], strides = [1, 1]} : vector<144x128xbf16> to vector<16x128xbf16>
    %c0_184 = arith.constant 0 : index
    %c128_185 = arith.constant 128 : index
    %265 = vector.load %arg12[%c0_184, %c128_185] : memref<32x1152xbf16, #tpu.memory_space<vmem>>, vector<16x128xbf16>
    tpu.vector_store %arg12[%c0_184, %c128_185], %264 {strides = array<i32>} : memref<32x1152xbf16, #tpu.memory_space<vmem>>, vector<16x128xbf16>,
    %266 = vector.extract_strided_slice %261 {offsets = [32, 0], sizes = [16, 128], strides = [1, 1]} : vector<144x128xbf16> to vector<16x128xbf16>
    %c0_186 = arith.constant 0 : index
    %c256_187 = arith.constant 256 : index
    %267 = vector.load %arg12[%c0_186, %c256_187] : memref<32x1152xbf16, #tpu.memory_space<vmem>>, vector<16x128xbf16>
    tpu.vector_store %arg12[%c0_186, %c256_187], %266 {strides = array<i32>} : memref<32x1152xbf16, #tpu.memory_space<vmem>>, vector<16x128xbf16>,
    %268 = vector.extract_strided_slice %261 {offsets = [48, 0], sizes = [16, 128], strides = [1, 1]} : vector<144x128xbf16> to vector<16x128xbf16>
    %c0_188 = arith.constant 0 : index
    %c384_189 = arith.constant 384 : index
    %269 = vector.load %arg12[%c0_188, %c384_189] : memref<32x1152xbf16, #tpu.memory_space<vmem>>, vector<16x128xbf16>
    tpu.vector_store %arg12[%c0_188, %c384_189], %268 {strides = array<i32>} : memref<32x1152xbf16, #tpu.memory_space<vmem>>, vector<16x128xbf16>,
    %270 = vector.extract_strided_slice %261 {offsets = [64, 0], sizes = [16, 128], strides = [1, 1]} : vector<144x128xbf16> to vector<16x128xbf16>
    %c0_190 = arith.constant 0 : index
    %c512_191 = arith.constant 512 : index
    %271 = vector.load %arg12[%c0_190, %c512_191] : memref<32x1152xbf16, #tpu.memory_space<vmem>>, vector<16x128xbf16>
    tpu.vector_store %arg12[%c0_190, %c512_191], %270 {strides = array<i32>} : memref<32x1152xbf16, #tpu.memory_space<vmem>>, vector<16x128xbf16>,
    %272 = vector.extract_strided_slice %261 {offsets = [80, 0], sizes = [16, 128], strides = [1, 1]} : vector<144x128xbf16> to vector<16x128xbf16>
    %c0_192 = arith.constant 0 : index
    %c640_193 = arith.constant 640 : index
    %273 = vector.load %arg12[%c0_192, %c640_193] : memref<32x1152xbf16, #tpu.memory_space<vmem>>, vector<16x128xbf16>
    tpu.vector_store %arg12[%c0_192, %c640_193], %272 {strides = array<i32>} : memref<32x1152xbf16, #tpu.memory_space<vmem>>, vector<16x128xbf16>,
    %274 = vector.extract_strided_slice %261 {offsets = [96, 0], sizes = [16, 128], strides = [1, 1]} : vector<144x128xbf16> to vector<16x128xbf16>
    %c0_194 = arith.constant 0 : index
    %c768_195 = arith.constant 768 : index
    %275 = vector.load %arg12[%c0_194, %c768_195] : memref<32x1152xbf16, #tpu.memory_space<vmem>>, vector<16x128xbf16>
    tpu.vector_store %arg12[%c0_194, %c768_195], %274 {strides = array<i32>} : memref<32x1152xbf16, #tpu.memory_space<vmem>>, vector<16x128xbf16>,
    %276 = vector.extract_strided_slice %261 {offsets = [112, 0], sizes = [16, 128], strides = [1, 1]} : vector<144x128xbf16> to vector<16x128xbf16>
    %c0_196 = arith.constant 0 : index
    %c896_197 = arith.constant 896 : index
    %277 = vector.load %arg12[%c0_196, %c896_197] : memref<32x1152xbf16, #tpu.memory_space<vmem>>, vector<16x128xbf16>
    tpu.vector_store %arg12[%c0_196, %c896_197], %276 {strides = array<i32>} : memref<32x1152xbf16, #tpu.memory_space<vmem>>, vector<16x128xbf16>,
    %278 = vector.extract_strided_slice %261 {offsets = [128, 0], sizes = [16, 128], strides = [1, 1]} : vector<144x128xbf16> to vector<16x128xbf16>
    %c0_198 = arith.constant 0 : index
    %c1024_199 = arith.constant 1024 : index
    %279 = vector.load %arg12[%c0_198, %c1024_199] : memref<32x1152xbf16, #tpu.memory_space<vmem>>, vector<16x128xbf16>
    tpu.vector_store %arg12[%c0_198, %c1024_199], %278 {strides = array<i32>} : memref<32x1152xbf16, #tpu.memory_space<vmem>>, vector<16x128xbf16>,
    %280 = vector.extract_strided_slice %257 {offsets = [16, 0], sizes = [16, 128], strides = [1, 1]} : vector<32x128xbf16> to vector<16x128xbf16>
    %c0_200 = arith.constant 0 : index
    %c0_201 = arith.constant 0 : index
    %281 = vector.load %arg3[%c0_200, %c0_201] : memref<144x16xbf16, #tpu.memory_space<vmem>>, vector<144x16xbf16>
    %cst_202 = arith.constant dense<0.000000e+00> : vector<144x128xf32>
    %282 = tpu.matmul %281, %280, %cst_202 {dimension_numbers = #tpu.dot_dimension_numbers<[1], [0], [0], [1], [0, 0, 1, 1], [], []>} : vector<144x16xbf16>, vector<16x128xbf16>, vector<144x128xf32> -> vector<144x128xf32>
    %283 = arith.truncf %282 : vector<144x128xf32> to vector<144x128xbf16>
    %284 = vector.extract_strided_slice %283 {offsets = [0, 0], sizes = [16, 128], strides = [1, 1]} : vector<144x128xbf16> to vector<16x128xbf16>
    %c16_203 = arith.constant 16 : index
    %c0_204 = arith.constant 0 : index
    %285 = vector.load %arg12[%c16_203, %c0_204] : memref<32x1152xbf16, #tpu.memory_space<vmem>>, vector<16x128xbf16>
    tpu.vector_store %arg12[%c16_203, %c0_204], %284 {strides = array<i32>} : memref<32x1152xbf16, #tpu.memory_space<vmem>>, vector<16x128xbf16>,
    %286 = vector.extract_strided_slice %283 {offsets = [16, 0], sizes = [16, 128], strides = [1, 1]} : vector<144x128xbf16> to vector<16x128xbf16>
    %c16_205 = arith.constant 16 : index
    %c128_206 = arith.constant 128 : index
    %287 = vector.load %arg12[%c16_205, %c128_206] : memref<32x1152xbf16, #tpu.memory_space<vmem>>, vector<16x128xbf16>
    tpu.vector_store %arg12[%c16_205, %c128_206], %286 {strides = array<i32>} : memref<32x1152xbf16, #tpu.memory_space<vmem>>, vector<16x128xbf16>,
    %288 = vector.extract_strided_slice %283 {offsets = [32, 0], sizes = [16, 128], strides = [1, 1]} : vector<144x128xbf16> to vector<16x128xbf16>
    %c16_207 = arith.constant 16 : index
    %c256_208 = arith.constant 256 : index
    %289 = vector.load %arg12[%c16_207, %c256_208] : memref<32x1152xbf16, #tpu.memory_space<vmem>>, vector<16x128xbf16>
    tpu.vector_store %arg12[%c16_207, %c256_208], %288 {strides = array<i32>} : memref<32x1152xbf16, #tpu.memory_space<vmem>>, vector<16x128xbf16>,
    %290 = vector.extract_strided_slice %283 {offsets = [48, 0], sizes = [16, 128], strides = [1, 1]} : vector<144x128xbf16> to vector<16x128xbf16>
    %c16_209 = arith.constant 16 : index
    %c384_210 = arith.constant 384 : index
    %291 = vector.load %arg12[%c16_209, %c384_210] : memref<32x1152xbf16, #tpu.memory_space<vmem>>, vector<16x128xbf16>
    tpu.vector_store %arg12[%c16_209, %c384_210], %290 {strides = array<i32>} : memref<32x1152xbf16, #tpu.memory_space<vmem>>, vector<16x128xbf16>,
    %292 = vector.extract_strided_slice %283 {offsets = [64, 0], sizes = [16, 128], strides = [1, 1]} : vector<144x128xbf16> to vector<16x128xbf16>
    %c16_211 = arith.constant 16 : index
    %c512_212 = arith.constant 512 : index
    %293 = vector.load %arg12[%c16_211, %c512_212] : memref<32x1152xbf16, #tpu.memory_space<vmem>>, vector<16x128xbf16>
    tpu.vector_store %arg12[%c16_211, %c512_212], %292 {strides = array<i32>} : memref<32x1152xbf16, #tpu.memory_space<vmem>>, vector<16x128xbf16>,
    %294 = vector.extract_strided_slice %283 {offsets = [80, 0], sizes = [16, 128], strides = [1, 1]} : vector<144x128xbf16> to vector<16x128xbf16>
    %c16_213 = arith.constant 16 : index
    %c640_214 = arith.constant 640 : index
    %295 = vector.load %arg12[%c16_213, %c640_214] : memref<32x1152xbf16, #tpu.memory_space<vmem>>, vector<16x128xbf16>
    tpu.vector_store %arg12[%c16_213, %c640_214], %294 {strides = array<i32>} : memref<32x1152xbf16, #tpu.memory_space<vmem>>, vector<16x128xbf16>,
    %296 = vector.extract_strided_slice %283 {offsets = [96, 0], sizes = [16, 128], strides = [1, 1]} : vector<144x128xbf16> to vector<16x128xbf16>
    %c16_215 = arith.constant 16 : index
    %c768_216 = arith.constant 768 : index
    %297 = vector.load %arg12[%c16_215, %c768_216] : memref<32x1152xbf16, #tpu.memory_space<vmem>>, vector<16x128xbf16>
    tpu.vector_store %arg12[%c16_215, %c768_216], %296 {strides = array<i32>} : memref<32x1152xbf16, #tpu.memory_space<vmem>>, vector<16x128xbf16>,
    %298 = vector.extract_strided_slice %283 {offsets = [112, 0], sizes = [16, 128], strides = [1, 1]} : vector<144x128xbf16> to vector<16x128xbf16>
    %c16_217 = arith.constant 16 : index
    %c896_218 = arith.constant 896 : index
    %299 = vector.load %arg12[%c16_217, %c896_218] : memref<32x1152xbf16, #tpu.memory_space<vmem>>, vector<16x128xbf16>
    tpu.vector_store %arg12[%c16_217, %c896_218], %298 {strides = array<i32>} : memref<32x1152xbf16, #tpu.memory_space<vmem>>, vector<16x128xbf16>,
    %300 = vector.extract_strided_slice %283 {offsets = [128, 0], sizes = [16, 128], strides = [1, 1]} : vector<144x128xbf16> to vector<16x128xbf16>
    %c16_219 = arith.constant 16 : index
    %c1024_220 = arith.constant 1024 : index
    %301 = vector.load %arg12[%c16_219, %c1024_220] : memref<32x1152xbf16, #tpu.memory_space<vmem>>, vector<16x128xbf16>
    tpu.vector_store %arg12[%c16_219, %c1024_220], %300 {strides = array<i32>} : memref<32x1152xbf16, #tpu.memory_space<vmem>>, vector<16x128xbf16>,
    %c0_221 = arith.constant 0 : index
    %c0_222 = arith.constant 0 : index
    %302 = vector.load %arg12[%c0_221, %c0_222] : memref<32x1152xbf16, #tpu.memory_space<vmem>>, vector<32x1152xbf16>
    %c0_223 = arith.constant 0 : index
    %c0_224 = arith.constant 0 : index
    %303 = vector.load %arg7[%c0_223, %c0_224] : memref<1152x128xbf16, #tpu.memory_space<vmem>>, vector<1152x128xbf16>
    %cst_225 = arith.constant dense<0.000000e+00> : vector<32x128xf32>
    %304 = tpu.matmul %302, %303, %cst_225 {dimension_numbers = #tpu.dot_dimension_numbers<[1], [0], [0], [1], [0, 0, 1, 1], [], []>} : vector<32x1152xbf16>, vector<1152x128xbf16>, vector<32x128xf32> -> vector<32x128xf32>
    %cst_226 = arith.constant dense<0.000000e+00> : vector<128xf32>
    %305 = vector.multi_reduction <add>, %304, %cst_226 [0] : vector<32x128xf32> to vector<128xf32>
    %306 = vector.shape_cast %305 : vector<128xf32> to vector<1x128xf32>
    %cst_227 = arith.constant 3.200000e+01 : f32
    %307 = vector.broadcast %cst_227 : f32 to vector<1x128xf32>
    %308 = arith.divf %306, %307 : vector<1x128xf32>
    %309 = arith.mulf %304, %304 : vector<32x128xf32>
    %cst_228 = arith.constant dense<0.000000e+00> : vector<128xf32>
    %310 = vector.multi_reduction <add>, %309, %cst_228 [0] : vector<32x128xf32> to vector<128xf32>
    %311 = vector.shape_cast %310 : vector<128xf32> to vector<1x128xf32>
    %cst_229 = arith.constant 3.200000e+01 : f32
    %312 = vector.broadcast %cst_229 : f32 to vector<1x128xf32>
    %313 = arith.divf %311, %312 : vector<1x128xf32>
    %314 = arith.mulf %308, %308 : vector<1x128xf32>
    %315 = arith.subf %313, %314 : vector<1x128xf32>
    %cst_230 = arith.constant 0.000000e+00 : f32
    %316 = vector.broadcast %cst_230 : f32 to vector<1x128xf32>
    %317 = arith.maximumf %315, %316 : vector<1x128xf32>
    %cst_231 = arith.constant 9.99999974E-6 : f32
    %318 = vector.broadcast %cst_231 : f32 to vector<1x128xf32>
    %319 = arith.addf %317, %318 : vector<1x128xf32>
    %320 = math.rsqrt %319 : vector<1x128xf32>
    %321 = arith.mulf %255, %320 : vector<1x128xf32>
    %322 = arith.mulf %308, %321 : vector<1x128xf32>
    %323 = arith.subf %256, %322 : vector<1x128xf32>
    %324 = vector.broadcast %321 : vector<1x128xf32> to vector<32x128xf32>
    %325 = arith.mulf %304, %324 : vector<32x128xf32>
    %326 = vector.broadcast %323 : vector<1x128xf32> to vector<32x128xf32>
    %327 = arith.addf %325, %326 : vector<32x128xf32>
    %cst_232 = arith.constant 0.000000e+00 : f32
    %328 = vector.broadcast %cst_232 : f32 to vector<32x128xf32>
    %329 = arith.maximumf %327, %328 : vector<32x128xf32>
    %c0_233 = arith.constant 0 : index
    %c0_234 = arith.constant 0 : index
    %330 = vector.load %arg10[%c0_233, %c0_234] : memref<32x128xf32, #tpu.memory_space<vmem>>, vector<32x128xf32>
    tpu.vector_store %arg10[%c0_233, %c0_234], %329 {strides = array<i32>} : memref<32x128xf32, #tpu.memory_space<vmem>>, vector<32x128xf32>,
    %331 = vector.extract_strided_slice %329 {offsets = [0, 0], sizes = [16, 128], strides = [1, 1]} : vector<32x128xf32> to vector<16x128xf32>
    %cst_235 = arith.constant dense<0.000000e+00> : vector<128xf32>
    %332 = vector.multi_reduction <add>, %331, %cst_235 [0] : vector<16x128xf32> to vector<128xf32>
    %333 = vector.shape_cast %332 : vector<128xf32> to vector<1x128xf32>
    %cst_236 = arith.constant 1.600000e+01 : f32
    %334 = vector.broadcast %cst_236 : f32 to vector<1x128xf32>
    %335 = arith.divf %333, %334 : vector<1x128xf32>
    %c0_237 = arith.constant 0 : index
    %c0_238 = arith.constant 0 : index
    %336 = vector.load %arg11[%c0_237, %c0_238] : memref<2x128xf32, #tpu.memory_space<vmem>>, vector<1x128xf32>
    tpu.vector_store %arg11[%c0_237, %c0_238], %335 {strides = array<i32>} : memref<2x128xf32, #tpu.memory_space<vmem>>, vector<1x128xf32>,
    %337 = vector.extract_strided_slice %329 {offsets = [16, 0], sizes = [16, 128], strides = [1, 1]} : vector<32x128xf32> to vector<16x128xf32>
    %cst_239 = arith.constant dense<0.000000e+00> : vector<128xf32>
    %338 = vector.multi_reduction <add>, %337, %cst_239 [0] : vector<16x128xf32> to vector<128xf32>
    %339 = vector.shape_cast %338 : vector<128xf32> to vector<1x128xf32>
    %cst_240 = arith.constant 1.600000e+01 : f32
    %340 = vector.broadcast %cst_240 : f32 to vector<1x128xf32>
    %341 = arith.divf %339, %340 : vector<1x128xf32>
    %c1_241 = arith.constant 1 : index
    %c0_242 = arith.constant 0 : index
    %342 = vector.load %arg11[%c1_241, %c0_242] : memref<2x128xf32, #tpu.memory_space<vmem>>, vector<1x128xf32>
    tpu.vector_store %arg11[%c1_241, %c0_242], %341 {strides = array<i32>} : memref<2x128xf32, #tpu.memory_space<vmem>>, vector<1x128xf32>,
    return
  }
}

</mosaic_0001>

<bundles_post_ra>
// kernel: asym_lnet5f_forward.1
= control target key start
LH: loop header
LB: loop body
LE: loop exit
PB: predicated region body
PF: predicated region fallthrough
CT: control target
= control target key end

     0   :  { %17 = vsyncpa [#allocation4], 0  ;;  %s8819_s0 = inlined_call_operand.hbm [shape: bf16[128,256], index: 0, kind: input, shape index: {}]   ;;  %s8820_s1 = inlined_call_operand.hbm [shape: bf16[256,128], index: 1, kind: input, shape index: {}]   ;;  %s8821_s2 = inlined_call_operand.hbm [shape: bf16[144,64], index: 2, kind: input, shape index: {}]   ;;  %s8822_s3 = inlined_call_operand.hbm [shape: bf16[144,16], index: 3, kind: input, shape index: {}]   ;;  %s8823_s4 = inlined_call_operand.hbm [shape: bf16[1152,128], index: 4, kind: input, shape index: {}]   ;;  %s8824_s5 = inlined_call_operand.hbm [shape: bf16[1152,128], index: 5, kind: input, shape index: {}]   ;;  %s8825_s6 = inlined_call_operand.hbm [shape: bf16[1152,128], index: 6, kind: input, shape index: {}]   ;;  %s8826_s7 = inlined_call_operand.hbm [shape: bf16[1152,128], index: 7, kind: input, shape index: {}]   ;;  %s8827_s8 = inlined_call_operand.hbm [shape: f32[5,128], index: 8, kind: input, shape index: {}]   ;;  %s8828_s9 = inlined_call_operand.hbm [shape: f32[5,128], index: 9, kind: input, shape index: {}]   ;;  %s8829_s10 = inlined_call_operand.hbm [shape: f32[32,128], index: 10, kind: output, shape index: {0}]   ;;  %s8830_s11 = inlined_call_operand.hbm [shape: f32[2,128], index: 11, kind: output, shape index: {1}]  }
   0x1   :  { %18 = vsyncpa [#allocation7], 0 }
   0x2   :  { %19 = vsyncpa [#allocation10], 0 }
   0x3   :  { %20 = vsyncpa [#allocation13], 0 }
   0x4   :  { %21 = vsyncpa [#allocation16], 0 }
   0x5   :  { %22 = vsyncpa [#allocation19], 0 }
   0x6   :  { %23 = vsyncpa [#allocation5], 0 }
   0x7   :  { %24 = vsyncpa [#allocation22], 0  ;;  %s8178_s17 = smov [#allocation6]   ;;  %s7898_s21 = scalar_lea.hbm %s8820_s1, 2048 }
   0x8   :  { %s42_s18 = sshll.u32 %s8178_s17, 4  ;;  %p7899_p0 = scmp.ne.s32.totalorder %s8820_s1, %s7898_s21  ;;  %s43_s18 = int_to_ptr.vmem [resolvable:$true] %s42_s18 }
   0x9   :  { %p7902_p1 = scmp.lt.u32.totalorder %s7898_s21, %s8820_s1 }
   0xb   :  { %p7904_p2 = pnand %p7902_p1, %p7899_p0 }
   0xd   :  { %7907 = shalt.err (!%p7904_p2)
}
   0xe   :  { %s7908_s26 = scalar_lea.vmem %s43_s18, 2048  ;;  %p7913_p4 = scmp.lt.s32.totalorder %s43_s18, %s43_s18 }
   0xf   :  { %p7909_p3 = scmp.ne.s32.totalorder %s43_s18, %s7908_s26  ;;  %p7914_p5 = scmp.lt.s32.totalorder %s7908_s26, %s7908_s26 }
  0x11   :  { %p7915_p6 = por %p7914_p5, %p7913_p4 }
  0x13   :  { %p7916_p7 = pnand %p7915_p6, %p7909_p3 }
  0x15   :  { %7919 = shalt.err (!%p7916_p7)
}
  0x16   :  { %s8179_s27 = smov 64   ;;  %s8180_s28 = smov 4  }
  0x17   :  { %48 = dma.hbm_to_vmem [thread:$0]  %s8820_s1, 2048, %s43_s18, [#allocation7], %s8179_s27, %s8179_s27, %s8180_s28  }
  0x18   :  { %s8181_s12 = smov [#allocation9]   ;;  %s8182_s14 = smov [#allocation12]  }
  0x19   :  { %s66_s13 = sshll.u32 %s8181_s12, 4  ;;  %s90_s15 = sshll.u32 %s8182_s14, 4  ;;  %s67_s13 = int_to_ptr.vmem [resolvable:$true] %s66_s13  ;;  %s91_s15 = int_to_ptr.vmem [resolvable:$true] %s90_s15 }
  0x1a   :  { %s7920_s19 = scalar_lea.hbm %s8822_s3, 1152 }
  0x1b   :  { %p7921_p8 = scmp.ne.s32.totalorder %s8822_s3, %s7920_s19  ;;  %p7924_p9 = scmp.lt.u32.totalorder %s7920_s19, %s8822_s3 }
  0x1d   :  { %p7926_p10 = pnand %p7924_p9, %p7921_p8 }
  0x1f   :  { %7929 = shalt.err (!%p7926_p10)
}
  0x20   :  { %s7930_s1 = scalar_lea.vmem %s67_s13, 1152  ;;  %p7935_p12 = scmp.lt.s32.totalorder %s67_s13, %s67_s13 }
  0x21   :  { %p7931_p11 = scmp.ne.s32.totalorder %s67_s13, %s7930_s1  ;;  %p7936_p13 = scmp.lt.s32.totalorder %s7930_s1, %s7930_s1 }
  0x23   :  { %p7937_p0 = por %p7936_p13, %p7935_p12 }
  0x25   :  { %p7938_p1 = pnand %p7937_p0, %p7931_p11 }
  0x27   :  { %7941 = shalt.err (!%p7938_p1)
}
  0x28   :  { %72 = dma.hbm_to_vmem [thread:$0]  %s8822_s3, 1152, %s67_s13, [#allocation10], %s8179_s27, %s8179_s27, %s8180_s28  }
  0x29   :  { %s7942_s29 = scalar_lea.hbm %s8824_s5, 9216 }
  0x2a   :  { %p7943_p2 = scmp.ne.s32.totalorder %s8824_s5, %s7942_s29  ;;  %p7946_p3 = scmp.lt.u32.totalorder %s7942_s29, %s8824_s5 }
  0x2c   :  { %p7948_p4 = pnand %p7946_p3, %p7943_p2 }
  0x2e   :  { %7951 = shalt.err (!%p7948_p4)
}
  0x2f   :  { %s7952_s17 = scalar_lea.vmem %s91_s15, 9216  ;;  %p7957_p6 = scmp.lt.s32.totalorder %s91_s15, %s91_s15 }
  0x30   :  { %p7953_p5 = scmp.ne.s32.totalorder %s91_s15, %s7952_s17  ;;  %p7958_p7 = scmp.lt.s32.totalorder %s7952_s17, %s7952_s17 }
  0x32   :  { %p7959_p8 = por %p7958_p7, %p7957_p6 }
  0x34   :  { %p7960_p9 = pnand %p7959_p8, %p7953_p5 }
  0x36   :  { %7963 = shalt.err (!%p7960_p9)
}
  0x37   :  { %96 = dma.hbm_to_vmem [thread:$0]  %s8824_s5, 9216, %s91_s15, [#allocation13], %s8179_s27, %s8179_s27, %s8180_s28  }
  0x38   :  { %s8183_s19 = smov [#allocation15]   ;;  %s8184_s21 = smov [#allocation3]  }
  0x39   :  { %s114_s20 = sshll.u32 %s8183_s19, 4  ;;  %s30_s22 = sshll.u32 %s8184_s21, 4  ;;  %s115_s20 = int_to_ptr.vmem [resolvable:$true] %s114_s20  ;;  %s31_s22 = int_to_ptr.vmem [resolvable:$true] %s30_s22 }
  0x3a   :  { %s7964_s18 = scalar_lea.hbm %s8826_s7, 9216 }
  0x3b   :  { %p7965_p10 = scmp.ne.s32.totalorder %s8826_s7, %s7964_s18  ;;  %p7968_p11 = scmp.lt.u32.totalorder %s7964_s18, %s8826_s7 }
  0x3d   :  { %p7970_p12 = pnand %p7968_p11, %p7965_p10 }
  0x3f   :  { %7973 = shalt.err (!%p7970_p12)
}
  0x40   :  { %s7974_s5 = scalar_lea.vmem %s115_s20, 9216  ;;  %p7979_p0 = scmp.lt.s32.totalorder %s115_s20, %s115_s20 }
  0x41   :  { %p7975_p13 = scmp.ne.s32.totalorder %s115_s20, %s7974_s5  ;;  %p7980_p1 = scmp.lt.s32.totalorder %s7974_s5, %s7974_s5 }
  0x43   :  { %p7981_p2 = por %p7980_p1, %p7979_p0 }
  0x45   :  { %p7982_p3 = pnand %p7981_p2, %p7975_p13 }
  0x47   :  { %7985 = shalt.err (!%p7982_p3)
}
  0x48   :  { %120 = dma.hbm_to_vmem [thread:$0]  %s8826_s7, 9216, %s115_s20, [#allocation16], %s8179_s27, %s8179_s27, %s8180_s28  }
  0x49   :  { %s7986_s16 = scalar_lea.hbm %s8819_s0, 2048 }
  0x4a   :  { %p7987_p4 = scmp.ne.s32.totalorder %s8819_s0, %s7986_s16  ;;  %p7990_p5 = scmp.lt.u32.totalorder %s7986_s16, %s8819_s0 }
  0x4c   :  { %p7992_p6 = pnand %p7990_p5, %p7987_p4 }
  0x4e   :  { %7995 = shalt.err (!%p7992_p6)
}
  0x4f   :  { %s7996_s21 = scalar_lea.vmem %s31_s22, 2048  ;;  %p8001_p8 = scmp.lt.s32.totalorder %s31_s22, %s31_s22 }
  0x50   :  { %p7997_p7 = scmp.ne.s32.totalorder %s31_s22, %s7996_s21  ;;  %p8002_p9 = scmp.lt.s32.totalorder %s7996_s21, %s7996_s21 }
  0x52   :  { %p8003_p10 = por %p8002_p9, %p8001_p8 }
  0x54   :  { %p8004_p11 = pnand %p8003_p10, %p7997_p7 }
  0x56   :  { %8007 = shalt.err (!%p8004_p11)
}
  0x57   :  { %s8185_s7 = smov 128   ;;  %s8186_s20 = smov 8  }
  0x58   :  { %36 = dma.hbm_to_vmem [thread:$0]  %s8819_s0, 2048, %s31_s22, [#allocation4], %s8185_s7, %s8185_s7, %s8186_s20  }
  0x59   :  { %s8187_s18 = smov [#allocation8]   ;;  %s8188_s25 = smov [#allocation11]  }
  0x5a   :  { %s54_s24 = sshll.u32 %s8187_s18, 4  ;;  %s78_s26 = sshll.u32 %s8188_s25, 4  ;;  %s55_s24 = int_to_ptr.vmem [resolvable:$true] %s54_s24  ;;  %s79_s26 = int_to_ptr.vmem [resolvable:$true] %s78_s26 }
  0x5b   :  { %s8008_s15 = scalar_lea.hbm %s8821_s2, 1152 }
  0x5c   :  { %p8009_p12 = scmp.ne.s32.totalorder %s8821_s2, %s8008_s15  ;;  %p8012_p13 = scmp.lt.u32.totalorder %s8008_s15, %s8821_s2 }
  0x5e   :  { %p8014_p0 = pnand %p8012_p13, %p8009_p12 }
  0x60   :  { %8017 = shalt.err (!%p8014_p0)
}
  0x61   :  { %s8018_s0 = scalar_lea.vmem %s55_s24, 1152  ;;  %p8023_p2 = scmp.lt.s32.totalorder %s55_s24, %s55_s24 }
  0x62   :  { %p8019_p1 = scmp.ne.s32.totalorder %s55_s24, %s8018_s0  ;;  %p8024_p3 = scmp.lt.s32.totalorder %s8018_s0, %s8018_s0 }
  0x64   :  { %p8025_p4 = por %p8024_p3, %p8023_p2 }
  0x66   :  { %p8026_p5 = pnand %p8025_p4, %p8019_p1 }
  0x68   :  { %8029 = shalt.err (!%p8026_p5)
}
  0x69   :  { %60 = dma.hbm_to_vmem [thread:$0]  %s8821_s2, 1152, %s55_s24, [#allocation7], %s8179_s27, %s8179_s27, %s8180_s28  }
  0x6a   :  { %s8030_s19 = scalar_lea.hbm %s8823_s4, 9216 }
  0x6b   :  { %p8031_p6 = scmp.ne.s32.totalorder %s8823_s4, %s8030_s19  ;;  %p8034_p7 = scmp.lt.u32.totalorder %s8030_s19, %s8823_s4 }
  0x6d   :  { %p8036_p8 = pnand %p8034_p7, %p8031_p6 }
  0x6f   :  { %8039 = shalt.err (!%p8036_p8)
}
  0x70   :  { %s8040_s25 = scalar_lea.vmem %s79_s26, 9216  ;;  %p8045_p10 = scmp.lt.s32.totalorder %s79_s26, %s79_s26 }
  0x71   :  { %p8041_p9 = scmp.ne.s32.totalorder %s79_s26, %s8040_s25  ;;  %p8046_p11 = scmp.lt.s32.totalorder %s8040_s25, %s8040_s25 }
  0x73   :  { %p8047_p12 = por %p8046_p11, %p8045_p10 }
  0x75   :  { %p8048_p13 = pnand %p8047_p12, %p8041_p9 }
  0x77   :  { %8051 = shalt.err (!%p8048_p13)
}
  0x78   :  { %84 = dma.hbm_to_vmem [thread:$0]  %s8823_s4, 9216, %s79_s26, [#allocation10], %s8179_s27, %s8179_s27, %s8180_s28  }
  0x79   :  { %s8189_s29 = smov [#allocation14]   ;;  %s8190_s15 = smov [#allocation17]  }
  0x7a   :  { %s102_s5 = sshll.u32 %s8189_s29, 4  ;;  %s127_s30 = sshll.u32 %s8190_s15, 4  ;;  %s103_s5 = int_to_ptr.vmem [resolvable:$true] %s102_s5  ;;  %s128_s30 = int_to_ptr.vmem [resolvable:$true] %s127_s30 }
  0x7b   :  { %s8052_s16 = scalar_lea.hbm %s8825_s6, 9216 }
  0x7c   :  { %p8053_p0 = scmp.ne.s32.totalorder %s8825_s6, %s8052_s16  ;;  %p8056_p1 = scmp.lt.u32.totalorder %s8052_s16, %s8825_s6 }
  0x7e   :  { %p8058_p2 = pnand %p8056_p1, %p8053_p0 }
  0x80   :  { %8061 = shalt.err (!%p8058_p2)
}
  0x81   :  { %s8062_s4 = scalar_lea.vmem %s103_s5, 9216  ;;  %p8067_p4 = scmp.lt.s32.totalorder %s103_s5, %s103_s5 }
  0x82   :  { %p8063_p3 = scmp.ne.s32.totalorder %s103_s5, %s8062_s4  ;;  %p8068_p5 = scmp.lt.s32.totalorder %s8062_s4, %s8062_s4 }
  0x84   :  { %p8069_p6 = por %p8068_p5, %p8067_p4 }
  0x86   :  { %p8070_p7 = pnand %p8069_p6, %p8063_p3 }
  0x88   :  { %8073 = shalt.err (!%p8070_p7)
}
  0x89   :  { %108 = dma.hbm_to_vmem [thread:$0]  %s8825_s6, 9216, %s103_s5, [#allocation13], %s8179_s27, %s8179_s27, %s8180_s28  }
  0x8a   :  { %s8074_s23 = scalar_lea.hbm %s8827_s8, 128 }
  0x8b   :  { %p8075_p8 = scmp.ne.s32.totalorder %s8827_s8, %s8074_s23  ;;  %p8078_p9 = scmp.lt.u32.totalorder %s8074_s23, %s8827_s8 }
  0x8d   :  { %p8080_p10 = pnand %p8078_p9, %p8075_p8 }
  0x8f   :  { %8083 = shalt.err (!%p8080_p10)
}
  0x90   :  { %s8084_s24 = scalar_lea.vmem %s128_s30, 128  ;;  %p8089_p12 = scmp.lt.s32.totalorder %s128_s30, %s128_s30 }
  0x91   :  { %p8085_p11 = scmp.ne.s32.totalorder %s128_s30, %s8084_s24  ;;  %p8090_p13 = scmp.lt.s32.totalorder %s8084_s24, %s8084_s24 }
  0x93   :  { %p8091_p0 = por %p8090_p13, %p8089_p12 }
  0x95   :  { %p8092_p1 = pnand %p8091_p0, %p8085_p11 }
  0x97   :  { %8095 = shalt.err (!%p8092_p1)
}
  0x98   :  { %130 = dma.hbm_to_vmem [thread:$0]  %s8827_s8, 128, %s128_s30, [#allocation16]  }
  0x99   :  { %s8191_s28 = smov [#allocation18]   ;;  %s8096_s12 = scalar_lea.hbm %s8828_s9, 128 }
  0x9a   :  { %s137_s29 = sshll.u32 %s8191_s28, 4  ;;  %p8097_p2 = scmp.ne.s32.totalorder %s8828_s9, %s8096_s12  ;;  %s138_s29 = int_to_ptr.vmem [resolvable:$true] %s137_s29 }
  0x9b   :  { %p8100_p3 = scmp.lt.u32.totalorder %s8096_s12, %s8828_s9 }
  0x9d   :  { %p8102_p4 = pnand %p8100_p3, %p8097_p2 }
  0x9f   :  { %8105 = shalt.err (!%p8102_p4)
}
  0xa0   :  { %s8106_s17 = scalar_lea.vmem %s138_s29, 128  ;;  %p8111_p6 = scmp.lt.s32.totalorder %s138_s29, %s138_s29 }
  0xa1   :  { %p8107_p5 = scmp.ne.s32.totalorder %s138_s29, %s8106_s17  ;;  %p8112_p7 = scmp.lt.s32.totalorder %s8106_s17, %s8106_s17 }
  0xa3   :  { %p8113_p8 = por %p8112_p7, %p8111_p6 }
  0xa5   :  { %p8114_p9 = pnand %p8113_p8, %p8107_p5 }
  0xa7   :  { %8117 = shalt.err (!%p8114_p9)
}
  0xa8   :  { %140 = dma.hbm_to_vmem [thread:$0]  %s8828_s9, 128, %s138_s29, [#allocation19]  }
  0xa9   :  { %8162 = dma.done.wait [#allocation4], 2048  }
  0xaa   :  { %8163 = vsyncadd [#allocation4], 4294965248 }
  0xab   :  { %8164 = dma.done.wait [#allocation7], 3200  }
  0xac   :  { %8165 = vsyncadd [#allocation7], 4294964096 }
  0xad   :  { %8166 = dma.done.wait [#allocation10], 10368  }
  0xae   :  { %8167 = vsyncadd [#allocation10], 4294956928 }
  0xaf   :  { %8168 = dma.done.wait [#allocation13], 18432  }
  0xb0   :  { %8169 = vsyncadd [#allocation13], 4294948864 }
  0xb1   :  { %8170 = dma.done.wait [#allocation16], 9344  }
  0xb2   :  { %8171 = vsyncadd [#allocation16], 4294957952 }
  0xb3   :  { %8172 = dma.done.wait [#allocation19], 128  }
  0xb4   :  { %8173 = vsyncadd [#allocation19], 4294967168  ;;  %v7488_v0 = vld [vmem:[#allocation6 + $0x40] sm:$0xff]   ;;  %v7490_v2 = vld [vmem:[#allocation6 + $0x48] sm:$0xff]   ;;  %v8192_v32 = vmov 0.0   ;;  %vm8193_vm0 = vmmov 0  }
  0xb5   :  { %v7489_v1 = vld [vmem:[#allocation6] sm:$0xff]   ;;  %6436 = vmatprep.subr.bf16.mxu0 %v7488_v0  ;;  %v7491_v3 = vld [vmem:[#allocation6 + $0x8] sm:$0xff]   ;;  %v7492_v4 = vld [vmem:[#allocation6 + $0x50] sm:$0xff]   ;;  %7074 = vmatprep.subr.bf16.mxu1 %v8192_v32  ;;  %vm693_vm1 = vcmask 523264   ;;  %vm2016_vm2 = vcmask 130048   ;;  %s8194_s9 = smov [#allocation20]  }
  0xb6   :  { %6437 = vmatpush3.bf16.msra.mxu0 %v7489_v1  ;;  %v7493_v5 = vld [vmem:[#allocation6 + $0x10] sm:$0xff]   ;;  %v7494_v6 = vld [vmem:[#allocation6 + $0x58] sm:$0xff]   ;;  %v7496_v8 = vld [vmem:[#allocation6 + $0x60] sm:$0xff]   ;;  %7082 = vmatprep.mubr.msk.bf16.mxu1 %vm8193_vm0, %v8192_v32  ;;  %s5941_s3 = sshll.u32 %s8194_s9, 4  ;;  %s5942_s3 = int_to_ptr.vmem [resolvable:$true] %s5941_s3 }
  0xb7   :  { %6438 = vmatprep.subr.bf16.mxu0 %v7490_v2  ;;  %v7495_v7 = vld [vmem:[#allocation6 + $0x18] sm:$0xff]   ;;  %v7497_v9 = vld [vmem:[#allocation6 + $0x20] sm:$0xff]   ;;  %v7498_v10 = vld [vmem:[#allocation6 + $0x68] sm:$0xff]   ;;  %s8118_s4 = scalar_lea.vmem %s5942_s3, 512  ;;  %p8123_p11 = scmp.lt.s32.totalorder %s5942_s3, %s5942_s3 }
  0xb8   :  { %v7506_v11 = vld [vmem:[#allocation3 + $0x4] ss:$8 sps:$4 sm:$0xff]   ;;  %v7500_v13 = vld [vmem:[#allocation6 + $0x70] sm:$0xff]   ;;  %v7502_v15 = vld [vmem:[#allocation6 + $0x78] sm:$0xff]   ;;  %p8119_p10 = scmp.ne.s32.totalorder %s5942_s3, %s8118_s4  ;;  %p8124_p12 = scmp.lt.s32.totalorder %s8118_s4, %s8118_s4 }
  0xb9   :  { %v7499_v12 = vld [vmem:[#allocation6 + $0x28] sm:$0xff]   ;;  %430 = vmatprep.mubr.bf16.mxu0 %v7506_v11  ;;  %v7501_v14 = vld [vmem:[#allocation6 + $0x30] sm:$0xff]   ;;  %v7503_v16 = vld [vmem:[#allocation6 + $0x38] sm:$0xff]  }
  0xba   :  { %6439 = vmatpush3.bf16.msra.mxu0 %v7491_v3  ;;  %v7504_v17 = vld [vmem:[#allocation3] ss:$8 sps:$4 sm:$0xff]   ;;  %v7507_v18 = vld [vmem:[#allocation3 + $0x14] ss:$8 sps:$4 sm:$0xff]   ;;  %v7509_v19 = vld [vmem:[#allocation3 + $0x10] ss:$8 sps:$4 sm:$0xff]   ;;  %p8125_p13 = por %p8124_p12, %p8123_p11 }
  0xbb   :  { %6440 = vmatprep.subr.bf16.mxu0 %v7492_v4  ;;  %v7510_v20 = vld [vmem:[#allocation3 + $0x24] ss:$8 sps:$4 sm:$0xff]   ;;  %v7512_v21 = vld [vmem:[#allocation3 + $0x20] ss:$8 sps:$4 sm:$0xff]   ;;  %v7513_v22 = vld [vmem:[#allocation3 + $0x34] ss:$8 sps:$4 sm:$0xff]  }
  0xbc   :  { %v7515_v23 = vld [vmem:[#allocation3 + $0x30] ss:$8 sps:$4 sm:$0xff]   ;;  %v7516_v24 = vld [vmem:[#allocation3 + $0x44] ss:$8 sps:$4 sm:$0xff]   ;;  %v7518_v25 = vld [vmem:[#allocation3 + $0x40] ss:$8 sps:$4 sm:$0xff]   ;;  %p8126_p0 = pnand %p8125_p13, %p8119_p10 }
  0xbd   :  { %v7519_v26 = vld [vmem:[#allocation3 + $0x54] ss:$8 sps:$4 sm:$0xff]   ;;  %v7521_v27 = vld [vmem:[#allocation3 + $0x50] ss:$8 sps:$4 sm:$0xff]   ;;  %v7522_v28 = vld [vmem:[#allocation3 + $0x64] ss:$8 sps:$4 sm:$0xff]  }
  0xbe   :  { %6441 = vmatpush3.bf16.msra.mxu0 %v7493_v5  ;;  %v7524_v29 = vld [vmem:[#allocation3 + $0x60] ss:$8 sps:$4 sm:$0xff]   ;;  %v7525_v30 = vld [vmem:[#allocation3 + $0x74] ss:$8 sps:$4 sm:$0xff]   ;;  %v7527_v31 = vld [vmem:[#allocation3 + $0x70] ss:$8 sps:$4 sm:$0xff]  }
  0xbf   :  { %6442 = vmatprep.subr.bf16.mxu0 %v7494_v6 }
  0xc2   :  { %6443 = vmatpush3.bf16.msra.mxu0 %v7495_v7 }
  0xc3   :  { %6444 = vmatprep.subr.bf16.mxu0 %v7496_v8 }
  0xc6   :  { %6445 = vmatpush3.bf16.msra.mxu0 %v7497_v9 }
  0xc7   :  { %6446 = vmatprep.subr.bf16.mxu0 %v7498_v10 }
  0xca   :  { %6447 = vmatpush3.bf16.msra.mxu0 %v7499_v12 }
  0xcb   :  { %6448 = vmatprep.subr.bf16.mxu0 %v7500_v13 }
  0xce   :  { %6449 = vmatpush3.bf16.msra.mxu0 %v7501_v14 }
  0xcf   :  { %6450 = vmatprep.subr.bf16.mxu0 %v7502_v15 }
  0xd2   :  { %6451 = vmatpush3.bf16.msra.mxu0 %v7503_v16 }
  0xd5   :  { %431 = vmatmul.mubr.bf16.vlgmr.msra.gmra.mrb[0].mxu0 %v7504_v17 }
  0xd6   :  { %438 = vmatprep.mubr.bf16.mxu0 %v7507_v18 }
  0xdd   :  { %439 = vmatmul.mubr.bf16.gmra.mrb[4].mxu0 %v7509_v19 }
  0xde   :  { %446 = vmatprep.mubr.bf16.mxu0 %v7510_v20 }
  0xe5   :  { %447 = vmatmul.mubr.bf16.gmra.mrb[8].mxu0 %v7512_v21 }
  0xe6   :  { %454 = vmatprep.mubr.bf16.mxu0 %v7513_v22 }
  0xed   :  { %455 = vmatmul.mubr.bf16.gmra.mrb[12].mxu0 %v7515_v23 }
  0xee   :  { %462 = vmatprep.mubr.bf16.mxu0 %v7516_v24 }
  0xf5   :  { %463 = vmatmul.mubr.bf16.gmra.mrb[16].mxu0 %v7518_v25 }
  0xf6   :  { %470 = vmatprep.mubr.bf16.mxu0 %v7519_v26 }
  0xfd   :  { %471 = vmatmul.mubr.bf16.gmra.mrb[20].mxu0 %v7521_v27 }
  0xfe   :  { %478 = vmatprep.mubr.bf16.mxu0 %v7522_v28 }
 0x105   :  { %479 = vmatmul.mubr.bf16.gmra.mrb[24].mxu0 %v7524_v29 }
 0x106   :  { %486 = vmatprep.mubr.bf16.mxu0 %v7525_v30 }
 0x10d   :  { %487 = vmatmul.mubr.bf16.gmra.mrb[28].mxu0 %v7527_v31 }
 0x1a8   :  { %v6452_v33 = vpop.f32.mrb[0].mxu0 }
 0x1a9   :  { %v6453_v34 = vpop.f32.mrb[1].mxu0 }
 0x1aa   :  { %v8403_v35 = vadd.f32 %v6453_v34, %v6452_v33  ;;  %v6455_v36 = vpop.f32.mrb[2].mxu0 }
 0x1ab   :  { %v6456_v37 = vpop.f32.mrb[3].mxu0 }
 0x1ac   :  { %v8405_v38 = vadd.f32 %v6456_v37, %v6455_v36  ;;  %v518_v48 = vmul.f32 %v8403_v35, %v8403_v35 }
 0x1ae   :  { %v519_v45 = vmul.f32 %v8405_v38, %v8405_v38  ;;  %v495_v49 = vadd.f32 %v8405_v38, %v8403_v35 }
 0x1b0   :  { %v6458_v39 = vpop.f32.mrb[4].mxu0  ;;  %v534_v54 = vadd.f32 %v519_v45, %v518_v48 }
 0x1b1   :  { %v6459_v40 = vpop.f32.mrb[5].mxu0 }
 0x1b2   :  { %v8407_v41 = vadd.f32 %v6459_v40, %v6458_v39  ;;  %v6461_v42 = vpop.f32.mrb[6].mxu0 }
 0x1b3   :  { %v6462_v43 = vpop.f32.mrb[7].mxu0 }
 0x1b4   :  { %v8409_v44 = vadd.f32 %v6462_v43, %v6461_v42  ;;  %v520_v50 = vmul.f32 %v8407_v41, %v8407_v41  ;;  %v496_v55 = vadd.f32 %v8407_v41, %v495_v49 }
 0x1b6   :  { %v535_v57 = vadd.f32 %v534_v54, %v520_v50  ;;  %v521_v58 = vmul.f32 %v8409_v44, %v8409_v44  ;;  %v497_v59 = vadd.f32 %v8409_v44, %v496_v55 }
 0x1b8   :  { %v6464_v46 = vpop.f32.mrb[8].mxu0  ;;  %v536_v63 = vadd.f32 %v535_v57, %v521_v58 }
 0x1b9   :  { %v6465_v47 = vpop.f32.mrb[9].mxu0 }
 0x1ba   :  { %v8419_v51 = vadd.f32 %v6465_v47, %v6464_v46  ;;  %v6467_v52 = vpop.f32.mrb[10].mxu0 }
 0x1bb   :  { %v6468_v53 = vpop.f32.mrb[11].mxu0 }
 0x1bc   :  { %v8422_v56 = vadd.f32 %v6468_v53, %v6467_v52  ;;  %v522_v60 = vmul.f32 %v8419_v51, %v8419_v51  ;;  %v498_v0 = vadd.f32 %v8419_v51, %v497_v59 }
 0x1be   :  { %v537_v4 = vadd.f32 %v536_v63, %v522_v60  ;;  %v523_v5 = vmul.f32 %v8422_v56, %v8422_v56  ;;  %v499_v7 = vadd.f32 %v8422_v56, %v498_v0 }
 0x1c0   :  { %v6470_v61 = vpop.f32.mrb[12].mxu0  ;;  %v538_v9 = vadd.f32 %v537_v4, %v523_v5 }
 0x1c1   :  { %v6471_v62 = vpop.f32.mrb[13].mxu0 }
 0x1c2   :  { %v8430_v1 = vadd.f32 %v6471_v62, %v6470_v61  ;;  %v6473_v2 = vpop.f32.mrb[14].mxu0 }
 0x1c3   :  { %v6474_v3 = vpop.f32.mrb[15].mxu0 }
 0x1c4   :  { %v8434_v6 = vadd.f32 %v6474_v3, %v6473_v2  ;;  %v524_v8 = vmul.f32 %v8430_v1, %v8430_v1  ;;  %v500_v10 = vadd.f32 %v8430_v1, %v499_v7 }
 0x1c6   :  { %v539_v13 = vadd.f32 %v538_v9, %v524_v8  ;;  %v525_v14 = vmul.f32 %v8434_v6, %v8434_v6  ;;  %v501_v18 = vadd.f32 %v8434_v6, %v500_v10 }
 0x1c8   :  { %v6476_v11 = vpop.f32.mrb[16].mxu0  ;;  %v540_v21 = vadd.f32 %v539_v13, %v525_v14 }
 0x1c9   :  { %v6477_v12 = vpop.f32.mrb[17].mxu0 }
 0x1ca   :  { %v8442_v15 = vadd.f32 %v6477_v12, %v6476_v11  ;;  %v6479_v16 = vpop.f32.mrb[18].mxu0 }
 0x1cb   :  { %v6480_v17 = vpop.f32.mrb[19].mxu0 }
 0x1cc   :  { %v526_v19 = vmul.f32 %v8442_v15, %v8442_v15  ;;  %v8447_v20 = vadd.f32 %v6480_v17, %v6479_v16  ;;  %v502_v22 = vadd.f32 %v8442_v15, %v501_v18 }
 0x1ce   :  { %v541_v23 = vadd.f32 %v540_v21, %v526_v19  ;;  %v527_v24 = vmul.f32 %v8447_v20, %v8447_v20  ;;  %v503_v27 = vadd.f32 %v8447_v20, %v502_v22 }
 0x1d0   :  { %v6482_v25 = vpop.f32.mrb[20].mxu0  ;;  %v542_v31 = vadd.f32 %v541_v23, %v527_v24 }
 0x1d1   :  { %v6483_v26 = vpop.f32.mrb[21].mxu0 }
 0x1d2   :  { %v8453_v28 = vadd.f32 %v6483_v26, %v6482_v25  ;;  %v6485_v29 = vpop.f32.mrb[22].mxu0 }
 0x1d3   :  { %v6486_v30 = vpop.f32.mrb[23].mxu0 }
 0x1d4   :  { %v504_v33 = vadd.f32 %v8453_v28, %v503_v27  ;;  %v528_v34 = vmul.f32 %v8453_v28, %v8453_v28  ;;  %v8458_v36 = vadd.f32 %v6486_v30, %v6485_v29  ;;  %v564_v29 = vlaneseq }
 0x1d6   :  { %v543_v37 = vadd.f32 %v542_v31, %v528_v34  ;;  %v505_v39 = vadd.f32 %v8458_v36, %v504_v33  ;;  %v529_v40 = vmul.f32 %v8458_v36, %v8458_v36  ;;  %v565_v30 = vshrl.u32 %v564_v29, 7  ;;  %v172_v31 = vld [vmem:[#allocation17] sm:$0x1] }
 0x1d8   :  { %v544_v42 = vadd.f32 %v543_v37, %v529_v40  ;;  %v6488_v43 = vpop.f32.mrb[24].mxu0  ;;  %v8478_v33 = vsub.s32 0, %v565_v30 }
 0x1d9   :  { %v6489_v45 = vpop.f32.mrb[25].mxu0 }
 0x1da   :  { %v8463_v46 = vadd.f32 %v6489_v45, %v6488_v43  ;;  %v6491_v47 = vpop.f32.mrb[26].mxu0 }
 0x1db   :  { %v6492_v48 = vpop.f32.mrb[27].mxu0 }
 0x1dc   :  { %v506_v49 = vadd.f32 %v8463_v46, %v505_v39  ;;  %v530_v50 = vmul.f32 %v8463_v46, %v8463_v46  ;;  %v8468_v52 = vadd.f32 %v6492_v48, %v6491_v47  ;;  %v173_v39 = vld [vmem:[#allocation18] sm:$0x1] }
 0x1de   :  { %v545_v53 = vadd.f32 %v544_v42, %v530_v50  ;;  %v507_v54 = vadd.f32 %v8468_v52, %v506_v49  ;;  %v531_v55 = vmul.f32 %v8468_v52, %v8468_v52 }
 0x1e0   :  { %v546_v57 = vadd.f32 %v545_v53, %v531_v55  ;;  %v6494_v58 = vpop.f32.mrb[28].mxu0 }
 0x1e1   :  { %v6495_v59 = vpop.f32.mrb[29].mxu0 }
 0x1e2   :  { %v8473_v60 = vadd.f32 %v6495_v59, %v6494_v58  ;;  %v6497_v61 = vpop.f32.mrb[30].mxu0 }
 0x1e3   :  { %v6498_v62 = vpop.f32.mrb[31].mxu0 }
 0x1e4   :  { %v508_v63 = vadd.f32 %v8473_v60, %v507_v54  ;;  %v532_v0 = vmul.f32 %v8473_v60, %v8473_v60  ;;  %v6499_v2 = vadd.f32 %v6498_v62, %v6497_v61 }
 0x1e6   :  { %v547_v3 = vadd.f32 %v546_v57, %v532_v0  ;;  %v509_v4 = vadd.f32 %v6499_v2, %v508_v63  ;;  %v533_v5 = vmul.f32 %v6499_v2, %v6499_v2 }
 0x1e8   :  { %v510_v7 = vrot.slane %v509_v4, 4  ;;  %v548_v8 = vadd.f32 %v547_v3, %v533_v5 }
 0x1ea   :  { %v511_v9 = vadd.f32 %v510_v7, %v509_v4  ;;  %v549_v10 = vrot.slane %v548_v8, 4 }
 0x1ec   :  { %v512_v11 = vrot.slane %v511_v9, 2  ;;  %v550_v12 = vadd.f32 %v549_v10, %v548_v8 }
 0x1ee   :  { %v513_v13 = vadd.f32 %v512_v11, %v511_v9  ;;  %v551_v14 = vrot.slane %v550_v12, 2 }
 0x1f0   :  { %v514_v16 = vrot.slane %v513_v13, 1  ;;  %v552_v17 = vadd.f32 %v551_v14, %v550_v12 }
 0x1f2   :  { %v515_v18 = vadd.f32 %v514_v16, %v513_v13  ;;  %v553_v19 = vrot.slane %v552_v17, 1 }
 0x1f4   :  { %v517_v21 = vmul.f32 0.0078125, %v515_v18  ;;  %v554_v22 = vadd.f32 %v553_v19, %v552_v17 }
 0x1f6   :  { %v555_v23 = vmul.f32 0.0078125, %v554_v22  ;;  %v556_v24 = vmul.f32 %v517_v21, %v517_v21 }
 0x1f8   :  { %v557_v25 = vsub.f32 %v555_v23, %v556_v24 }
 0x1fa   :  { %v558_v26 = vmax.f32 %v557_v25, 0.0 }
 0x1fc   :  { %v559_v27 = vadd.f32 1e-05, %v558_v26 }
 0x1fe   :  { %7888 = vrsqrt.f32 %v559_v27 }
 0x208   :  { %v7889_v34 = vpop.eup %7888 }
 0x209   :  { %v561_v37 = vmul.f32 %v7889_v34, %v172_v31 }
 0x20b   :  { %v562_v40 = vmul.f32 %v561_v37, %v517_v21  ;;  %v567_v42 = vrot.slane %v561_v37, %v8478_v33 }
 0x20d   :  { %v563_v43 = vsub.f32 %v173_v39, %v562_v40  ;;  %v583_v45 = vmul.f32 %v6499_v2, %v567_v42  ;;  %v568_v47 = vmul.f32 %v8403_v35, %v567_v42  ;;  %v569_v48 = vmul.f32 %v8405_v38, %v567_v42  ;;  %v7528_v39 = vld [vmem:[#allocation8] sm:$0xff]   ;;  %v7546_v40 = vld [vmem:[#allocation11 + $0x40] sm:$0xff]  }
 0x20e   :  { %v570_v49 = vmul.f32 %v8407_v41, %v567_v42  ;;  %v571_v50 = vmul.f32 %v8409_v44, %v567_v42  ;;  %v572_v53 = vmul.f32 %v8419_v51, %v567_v42  ;;  %v573_v55 = vmul.f32 %v8422_v56, %v567_v42  ;;  %6526 = vmatprep.subr.bf16.mxu0 %v7546_v40 }
 0x20f   :  { %v587_v54 = vrot.slane %v563_v43, %v8478_v33  ;;  %v574_v57 = vmul.f32 %v8430_v1, %v567_v42  ;;  %v575_v58 = vmul.f32 %v8434_v6, %v567_v42  ;;  %v576_v59 = vmul.f32 %v8442_v15, %v567_v42  ;;  %v7548_v43 = vld [vmem:[#allocation11 + $0x48] sm:$0xff]  }
 0x210   :  { %v578_v35 = vmul.f32 %v8453_v28, %v567_v42  ;;  %v579_v38 = vmul.f32 %v8458_v36, %v567_v42  ;;  %v580_v41 = vmul.f32 %v8463_v46, %v567_v42  ;;  %v577_v6 = vmul.f32 %v8447_v20, %v567_v42 }
 0x211   :  { %v603_v61 = vadd.f32 %v587_v54, %v583_v45  ;;  %v588_v44 = vadd.f32 %v587_v54, %v568_v47  ;;  %v589_v62 = vadd.f32 %v587_v54, %v569_v48  ;;  %v590_v51 = vadd.f32 %v587_v54, %v570_v49  ;;  %v7549_v45 = vld [vmem:[#allocation11 + $0x8] sm:$0xff]   ;;  %v7530_v47 = vld [vmem:[#allocation8 + $0x10] sm:$0xff]   ;;  %v7550_v48 = vld [vmem:[#allocation11 + $0x50] sm:$0xff]  }
 0x212   :  { %v591_v63 = vadd.f32 %v587_v54, %v571_v50  ;;  %v592_v0 = vadd.f32 %v587_v54, %v572_v53  ;;  %v593_v2 = vadd.f32 %v587_v54, %v573_v55  ;;  %v594_v56 = vadd.f32 %v587_v54, %v574_v57  ;;  %v7551_v49 = vld [vmem:[#allocation11 + $0x10] sm:$0xff]   ;;  %v7552_v50 = vld [vmem:[#allocation11 + $0x58] sm:$0xff]   ;;  %v7554_v55 = vld [vmem:[#allocation11 + $0x60] sm:$0xff]  }
 0x213   :  { %v604_v3 = vmax.f32 %v588_v44, 0.0  ;;  %v605_v1 = vmax.f32 %v589_v62, 0.0  ;;  %v606_v4 = vmax.f32 %v590_v51, 0.0  ;;  %v595_v7 = vadd.f32 %v587_v54, %v575_v58  ;;  %v7553_v53 = vld [vmem:[#allocation11 + $0x18] sm:$0xff]   ;;  %v7555_v57 = vld [vmem:[#allocation11 + $0x20] sm:$0xff]   ;;  %v7532_v58 = vld [vmem:[#allocation8 + $0x20] sm:$0xff]  }
 0x214   :  { %v607_v15 = vmax.f32 %v591_v63, 0.0  ;;  %v608_v5 = vmax.f32 %v592_v0, 0.0  ;;  %v609_v28 = vmax.f32 %v593_v2, 0.0  ;;  %v610_v8 = vmax.f32 %v594_v56, 0.0  ;;  %v7538_v44 = vld [vmem:[#allocation8 + $0x8] sm:$0xff]   ;;  %v7539_v62 = vld [vmem:[#allocation8 + $0x10] sm:$0xff]  }
 0x215   :  { %v622_v36 = vpack.c.bf16 %v605_v1, %v604_v3  ;;  %v596_v46 = vadd.f32 %v587_v54, %v576_v59  ;;  %v597_v9 = vadd.f32 %v587_v54, %v577_v6  ;;  %v611_v12 = vmax.f32 %v595_v7, 0.0  ;;  %v7533_v59 = vld [vmem:[#allocation8 + $0x28] sm:$0xff]   ;;  %v7556_v51 = vld [vmem:[#allocation11 + $0x68] sm:$0xff]   ;;  %v7558_v0 = vld [vmem:[#allocation11 + $0x70] sm:$0xff]  }
 0x216   :  { %v623_v10 = vpack.c.bf16 %v607_v15, %v606_v4  ;;  %v624_v11 = vpack.c.bf16 %v609_v28, %v608_v5  ;;  %v598_v13 = vadd.f32 %v587_v54, %v578_v35  ;;  %v599_v17 = vadd.f32 %v587_v54, %v579_v38  ;;  %v7534_v35 = vld [vmem:[#allocation8 + $0x30] sm:$0xff]   ;;  %v7535_v38 = vld [vmem:[#allocation8 + $0x38] sm:$0xff]   ;;  %v7559_v2 = vld [vmem:[#allocation11 + $0x30] sm:$0xff]  }
 0x217   :  { %7075 = vmatpush3.bf16.msra.mxu1 %v622_v36  ;;  %v612_v14 = vmax.f32 %v596_v46, 0.0  ;;  %v613_v16 = vmax.f32 %v597_v9, 0.0  ;;  %v581_v18 = vmul.f32 %v8468_v52, %v567_v42  ;;  %v625_v20 = vpack.c.bf16 %v611_v12, %v610_v8  ;;  %v7557_v63 = vld [vmem:[#allocation11 + $0x28] sm:$0xff]   ;;  %v7560_v3 = vld [vmem:[#allocation11 + $0x78] sm:$0xff]   ;;  %v7541_v4 = vld [vmem:[#allocation8 + $0x20] sm:$0xff]  }
 0x218   :  { %7076 = vmatprep.subr.bf16.mxu1 %v8192_v32  ;;  %v614_v19 = vmax.f32 %v598_v13, 0.0  ;;  %v600_v21 = vadd.f32 %v587_v54, %v580_v41  ;;  %v582_v22 = vmul.f32 %v8473_v60, %v567_v42  ;;  %v615_v24 = vmax.f32 %v599_v17, 0.0  ;;  %v7529_v60 = vld [vmem:[#allocation8 + $0x8] sm:$0xff]   ;;  %v7547_v42 = vld [vmem:[#allocation11] sm:$0xff]   ;;  %v7536_v41 = vld [vmem:[#allocation8 + $0x40] sm:$0xff]  }
 0x219   :  { %v626_v23 = vpack.c.bf16 %v613_v16, %v612_v14  ;;  %v601_v25 = vadd.f32 %v587_v54, %v581_v18  ;;  %v619_v26 = vmax.f32 %v603_v61, 0.0  ;;  %6527 = vmatpush3.bf16.msra.mxu0 %v7547_v42  ;;  %v7537_v61 = vld [vmem:[#allocation8] sm:$0xff]   ;;  %v7540_v56 = vld [vmem:[#allocation8 + $0x18] sm:$0xff]   ;;  %v7561_v1 = vld [vmem:[#allocation11 + $0x38] sm:$0xff]  }
 0x21a   :  { %v616_v27 = vmax.f32 %v600_v21, 0.0  ;;  %v602_v29 = vadd.f32 %v587_v54, %v582_v22  ;;  %v627_v30 = vpack.c.bf16 %v615_v24, %v614_v19  ;;  %6528 = vmatprep.subr.bf16.mxu0 %v7548_v43  ;;  %v7531_v54 = vld [vmem:[#allocation8 + $0x18] sm:$0xff]   ;;  %v7542_v6 = vld [vmem:[#allocation8 + $0x28] sm:$0xff]   ;;  %v7562_v15 = vld [vmem:[#allocation11 + $0x1c0] sm:$0xff]  }
 0x21b   :  { %7077 = vmatpush3.bf16.msra.mxu1 %v623_v10  ;;  %v617_v31 = vmax.f32 %v601_v25, 0.0  ;;  %v7563_v5 = vld [vmem:[#allocation11 + $0x180] sm:$0xff]   ;;  %v7564_v7 = vld [vmem:[#allocation11 + $0x1c8] sm:$0xff]   ;;  %v7566_v8 = vld [vmem:[#allocation11 + $0x1d0] sm:$0xff]  }
 0x21c   :  { %7078 = vmatprep.subr.bf16.mxu1 %v8192_v32  ;;  %v618_v34 = vmax.f32 %v602_v29, 0.0  ;;  %v7543_v28 = vld [vmem:[#allocation8 + $0x30] sm:$0xff]   ;;  %v7565_v36 = vld [vmem:[#allocation11 + $0x188] sm:$0xff]   ;;  %v7567_v46 = vld [vmem:[#allocation11 + $0x190] sm:$0xff]  }
 0x21d   :  { %v628_v52 = vpack.c.bf16 %v617_v31, %v616_v27  ;;  %6529 = vmatpush3.bf16.msra.mxu0 %v7549_v45  ;;  %v7544_v9 = vld [vmem:[#allocation8 + $0x38] sm:$0xff]   ;;  %v7568_v10 = vld [vmem:[#allocation11 + $0x1d8] sm:$0xff]   ;;  %v7570_v12 = vld [vmem:[#allocation11 + $0x1e0] sm:$0xff]  }
 0x21e   :  { %v629_v37 = vpack.c.bf16 %v619_v26, %v618_v34  ;;  %6530 = vmatprep.subr.bf16.mxu0 %v7550_v48  ;;  %v7571_v13 = vld [vmem:[#allocation11 + $0x1a0] sm:$0xff]   ;;  %v7545_v14 = vld [vmem:[#allocation8 + $0x40] sm:$0xff]   ;;  %v7572_v16 = vld [vmem:[#allocation11 + $0x1e8] sm:$0xff]  }
 0x21f   :  { %7079 = vmatpush3.bf16.msra.mxu1 %v624_v11  ;;  %v7569_v11 = vld [vmem:[#allocation11 + $0x198] sm:$0xff]   ;;  %v7573_v17 = vld [vmem:[#allocation11 + $0x1a8] sm:$0xff]   ;;  %v7574_v18 = vld [vmem:[#allocation11 + $0x1f0] sm:$0xff]  }
 0x220   :  { %7080 = vmatprep.subr.bf16.mxu1 %v8192_v32  ;;  %v7576_v19 = vld [vmem:[#allocation11 + $0x1f8] sm:$0xff]   ;;  %v7578_v22 = vld [vmem:[#allocation11 + $0xc0] sm:$0xff]   ;;  %v7582_v42 = vld [vmem:[#allocation11 + $0xd0] sm:$0xff]  }
 0x221   :  { %6531 = vmatpush3.bf16.msra.mxu0 %v7551_v49  ;;  %v7577_v21 = vld [vmem:[#allocation11 + $0x1b8] sm:$0xff]   ;;  %v7583_v49 = vld [vmem:[#allocation11 + $0x90] sm:$0xff]  }
 0x222   :  { %6532 = vmatprep.subr.bf16.mxu0 %v7552_v50  ;;  %v7584_v50 = vld [vmem:[#allocation11 + $0xd8] sm:$0xff]  }
 0x223   :  { %7081 = vmatpush3.bf16.msra.mxu1 %v625_v20  ;;  %v7575_v20 = vld [vmem:[#allocation11 + $0x1b0] sm:$0xff]  }
 0x224   :  { %7118 = vmatprep.subr.bf16.mxu1 %v8192_v32 }
 0x225   :  { %6533 = vmatpush3.bf16.msra.mxu0 %v7553_v53  ;;  %v7585_v53 = vld [vmem:[#allocation11 + $0x98] sm:$0xff]  }
 0x226   :  { %7083 = vmatmul.mubr.msk.bf16.vlgmr.msra.gmra.mrb[0].mxu1 %vm693_vm1, %v7528_v39  ;;  %6534 = vmatprep.subr.bf16.mxu0 %v7554_v55  ;;  %v7580_v39 = vld [vmem:[#allocation11 + $0xc8] sm:$0xff]   ;;  %v7586_v55 = vld [vmem:[#allocation11 + $0xe0] sm:$0xff]  }
 0x227   :  { %7119 = vmatpush3.bf16.msra.mxu1 %v626_v23  ;;  %7086 = vmatprep.mubr.msk.bf16.mxu1 %vm8193_vm0, %v8192_v32 }
 0x228   :  { %7120 = vmatprep.subr.bf16.mxu1 %v8192_v32 }
 0x229   :  { %6535 = vmatpush3.bf16.msra.mxu0 %v7555_v57 }
 0x22a   :  { %6536 = vmatprep.subr.bf16.mxu0 %v7556_v51 }
 0x22b   :  { %7121 = vmatpush3.bf16.msra.mxu1 %v627_v30 }
 0x22c   :  { %7122 = vmatprep.subr.bf16.mxu1 %v8192_v32 }
 0x22d   :  { %6537 = vmatpush3.bf16.msra.mxu0 %v7557_v63 }
 0x22e   :  { %7087 = vmatmul.mubr.msk.bf16.gmra.mrb[4].mxu1 %vm693_vm1, %v7529_v60  ;;  %6538 = vmatprep.subr.bf16.mxu0 %v7558_v0  ;;  %v7581_v60 = vld [vmem:[#allocation11 + $0x88] sm:$0xff]  }
 0x22f   :  { %7123 = vmatpush3.bf16.msra.mxu1 %v628_v52  ;;  %7090 = vmatprep.mubr.msk.bf16.mxu1 %vm8193_vm0, %v8192_v32 }
 0x230   :  { %7124 = vmatprep.subr.bf16.mxu1 %v8192_v32 }
 0x231   :  { %6539 = vmatpush3.bf16.msra.mxu0 %v7559_v2 }
 0x232   :  { %6540 = vmatprep.subr.bf16.mxu0 %v7560_v3  ;;  %v7592_v3 = vld [vmem:[#allocation11 + $0xf8] sm:$0xff]  }
 0x233   :  { %7125 = vmatpush3.bf16.msra.mxu1 %v629_v37  ;;  %v7579_v37 = vld [vmem:[#allocation11 + $0x80] sm:$0xff]  }
 0x234   :  { %6610 = vmatprep.subr.bf16.mxu1 %v7562_v15 }
 0x235   :  { %6541 = vmatpush3.bf16.msra.mxu0 %v7561_v1  ;;  %v7593_v1 = vld [vmem:[#allocation11 + $0xb8] sm:$0xff]  }
 0x236   :  { %7091 = vmatmul.mubr.msk.bf16.gmra.mrb[8].mxu1 %vm693_vm1, %v7530_v47  ;;  %6554 = vmatprep.subr.bf16.mxu0 %v7578_v22 }
 0x237   :  { %7094 = vmatprep.mubr.msk.bf16.mxu1 %vm8193_vm0, %v8192_v32 }
 0x23e   :  { %7095 = vmatmul.mubr.msk.bf16.gmra.mrb[12].mxu1 %vm693_vm1, %v7531_v54 }
 0x23f   :  { %7098 = vmatprep.mubr.msk.bf16.mxu1 %vm8193_vm0, %v8192_v32 }
 0x246   :  { %7099 = vmatmul.mubr.msk.bf16.gmra.mrb[16].mxu1 %vm693_vm1, %v7532_v58 }
 0x247   :  { %7102 = vmatprep.mubr.msk.bf16.mxu1 %vm8193_vm0, %v8192_v32 }
 0x24e   :  { %7103 = vmatmul.mubr.msk.bf16.gmra.mrb[20].mxu1 %vm693_vm1, %v7533_v59 }
 0x24f   :  { %7106 = vmatprep.mubr.msk.bf16.mxu1 %vm8193_vm0, %v8192_v32 }
 0x256   :  { %7107 = vmatmul.mubr.msk.bf16.gmra.mrb[24].mxu1 %vm693_vm1, %v7534_v35 }
 0x257   :  { %7110 = vmatprep.mubr.msk.bf16.mxu1 %vm8193_vm0, %v8192_v32 }
 0x25e   :  { %7111 = vmatmul.mubr.msk.bf16.gmra.mrb[28].mxu1 %vm693_vm1, %v7535_v38  ;;  %v7587_v38 = vld [vmem:[#allocation11 + $0xa0] sm:$0xff]  }
 0x25f   :  { %7114 = vmatprep.mubr.msk.bf16.mxu1 %vm8193_vm0, %v8192_v32 }
 0x266   :  { %7115 = vmatmul.mubr.msk.bf16.gmra.mrb[32].mxu1 %vm693_vm1, %v7536_v41  ;;  %v7588_v41 = vld [vmem:[#allocation11 + $0xe8] sm:$0xff]  }
 0x267   :  { %7126 = vmatprep.mubr.msk.bf16.mxu1 %vm8193_vm0, %v8192_v32 }
 0x26e   :  { %7127 = vmatmul.mubr.msk.bf16.vlgmr.msra.gmra.mrb[36].mxu1 %vm693_vm1, %v7537_v61  ;;  %v7589_v61 = vld [vmem:[#allocation11 + $0xa8] sm:$0xff]  }
 0x26f   :  { %7130 = vmatprep.mubr.msk.bf16.mxu1 %vm8193_vm0, %v8192_v32  ;;  %6611 = vmatpush3.bf16.msra.mxu1 %v7563_v5 }
 0x270   :  { %6612 = vmatprep.subr.bf16.mxu1 %v7564_v7 }
 0x273   :  { %6613 = vmatpush3.bf16.msra.mxu1 %v7565_v36 }
 0x274   :  { %6614 = vmatprep.subr.bf16.mxu1 %v7566_v8 }
 0x276   :  { %7131 = vmatmul.mubr.msk.bf16.gmra.mrb[40].mxu1 %vm693_vm1, %v7538_v44 }
 0x277   :  { %7134 = vmatprep.mubr.msk.bf16.mxu1 %vm8193_vm0, %v8192_v32  ;;  %6615 = vmatpush3.bf16.msra.mxu1 %v7567_v46 }
 0x278   :  { %6616 = vmatprep.subr.bf16.mxu1 %v7568_v10 }
 0x27b   :  { %6617 = vmatpush3.bf16.msra.mxu1 %v7569_v11 }
 0x27c   :  { %6618 = vmatprep.subr.bf16.mxu1 %v7570_v12 }
 0x27e   :  { %7135 = vmatmul.mubr.msk.bf16.gmra.mrb[44].mxu1 %vm693_vm1, %v7539_v62  ;;  %v7590_v62 = vld [vmem:[#allocation11 + $0xf0] sm:$0xff]  }
 0x27f   :  { %7138 = vmatprep.mubr.msk.bf16.mxu1 %vm8193_vm0, %v8192_v32  ;;  %6619 = vmatpush3.bf16.msra.mxu1 %v7571_v13 }
 0x280   :  { %6620 = vmatprep.subr.bf16.mxu1 %v7572_v16 }
 0x283   :  { %6621 = vmatpush3.bf16.msra.mxu1 %v7573_v17 }
 0x284   :  { %6622 = vmatprep.subr.bf16.mxu1 %v7574_v18 }
 0x286   :  { %7139 = vmatmul.mubr.msk.bf16.gmra.mrb[48].mxu1 %vm693_vm1, %v7540_v56  ;;  %v7591_v56 = vld [vmem:[#allocation11 + $0xb0] sm:$0xff]  }
 0x287   :  { %7142 = vmatprep.mubr.msk.bf16.mxu1 %vm8193_vm0, %v8192_v32  ;;  %6623 = vmatpush3.bf16.msra.mxu1 %v7575_v20 }
 0x288   :  { %6624 = vmatprep.subr.bf16.mxu1 %v7576_v19 }
 0x28b   :  { %6625 = vmatpush3.bf16.msra.mxu1 %v7577_v21 }
 0x28c   :  { %7182 = vmatprep.subr.bf16.mxu1 %v8192_v32 }
 0x28e   :  { %7143 = vmatmul.mubr.msk.bf16.gmra.mrb[52].mxu1 %vm693_vm1, %v7541_v4 }
 0x28f   :  { %7146 = vmatprep.mubr.msk.bf16.mxu1 %vm8193_vm0, %v8192_v32 }
 0x296   :  { %7147 = vmatmul.mubr.msk.bf16.gmra.mrb[56].mxu1 %vm693_vm1, %v7542_v6  ;;  %v7594_v6 = vld [vmem:[#allocation11 + $0x140] sm:$0xff]  }
 0x297   :  { %7150 = vmatprep.mubr.msk.bf16.mxu1 %vm8193_vm0, %v8192_v32 }
 0x29e   :  { %7151 = vmatmul.mubr.msk.bf16.gmra.mrb[60].mxu1 %vm693_vm1, %v7543_v28 }
 0x29f   :  { %7154 = vmatprep.mubr.msk.bf16.mxu1 %vm8193_vm0, %v8192_v32 }
 0x2a6   :  { %7155 = vmatmul.mubr.msk.bf16.gmra.mrb[64].mxu1 %vm693_vm1, %v7544_v9 }
 0x2a7   :  { %7158 = vmatprep.mubr.msk.bf16.mxu1 %vm8193_vm0, %v8192_v32 }
 0x2ae   :  { %7159 = vmatmul.mubr.msk.bf16.gmra.mrb[68].mxu1 %vm693_vm1, %v7545_v14 }
 0x2f9   :  { %v755_v23 = vpop.f32.mrb[0].mxu1 }
 0x2fa   :  { %v7084_v24 = vpop.f32.mrb[1].mxu1 }
 0x2fb   :  { %v758_v25 = vpop.f32.mrb[2].mxu1 }
 0x2fc   :  { %v826_v26 = vpack.c.bf16 %v758_v25, %v755_v23  ;;  %v7085_v27 = vpop.f32.mrb[3].mxu1 }
 0x301   :  { %v763_v29 = vpop.f32.mrb[4].mxu1 }
 0x302   :  { %v7088_v30 = vpop.f32.mrb[5].mxu1 }
 0x303   :  { %v766_v31 = vpop.f32.mrb[6].mxu1 }
 0x304   :  { %v827_v34 = vpack.c.bf16 %v766_v31, %v763_v29  ;;  %v7089_v52 = vpop.f32.mrb[7].mxu1 }
 0x306   :  { %1683 = vmatprep.mubr.bf16.mxu0 %v827_v34 }
 0x307   :  { %1684 = vmatmul.mubr.bf16.vlgmr.msra.gmra.mrb[32].mxu0 %v826_v26 }
 0x308   :  { %6555 = vmatpush3.bf16.msra.mxu0 %v7579_v37 }
 0x309   :  { %v8557_v40 = vpop.f32.mrb[8].mxu1  ;;  %6556 = vmatprep.subr.bf16.mxu0 %v7580_v39 }
 0x30a   :  { %v7092_v43 = vpop.f32.mrb[9].mxu1 }
 0x30b   :  { %v8559_v45 = vpop.f32.mrb[10].mxu1 }
 0x30c   :  { %v828_v47 = vpack.c.bf16 %v8559_v45, %v8557_v40  ;;  %v7093_v48 = vpop.f32.mrb[11].mxu1  ;;  %6557 = vmatpush3.bf16.msra.mxu0 %v7581_v60  ;;  %v7602_v40 = vld [vmem:[#allocation11 + $0x160] sm:$0xff]  }
 0x30d   :  { %6558 = vmatprep.subr.bf16.mxu0 %v7582_v42  ;;  %v7595_v42 = vld [vmem:[#allocation11 + $0x100] sm:$0xff]   ;;  %v7596_v48 = vld [vmem:[#allocation11 + $0x148] sm:$0xff]  }
 0x310   :  { %6559 = vmatpush3.bf16.msra.mxu0 %v7583_v49  ;;  %v7597_v49 = vld [vmem:[#allocation11 + $0x108] sm:$0xff]  }
 0x311   :  { %v8563_v54 = vpop.f32.mrb[12].mxu1  ;;  %6560 = vmatprep.subr.bf16.mxu0 %v7584_v50 }
 0x312   :  { %v7096_v57 = vpop.f32.mrb[13].mxu1 }
 0x313   :  { %v782_v58 = vpop.f32.mrb[14].mxu1 }
 0x314   :  { %v829_v59 = vpack.c.bf16 %v782_v58, %v8563_v54  ;;  %v7097_v35 = vpop.f32.mrb[15].mxu1  ;;  %6561 = vmatpush3.bf16.msra.mxu0 %v7585_v53  ;;  %v7598_v53 = vld [vmem:[#allocation11 + $0x150] sm:$0xff]  }
 0x315   :  { %6562 = vmatprep.subr.bf16.mxu0 %v7586_v55  ;;  %v7599_v58 = vld [vmem:[#allocation11 + $0x110] sm:$0xff]   ;;  %v7600_v35 = vld [vmem:[#allocation11 + $0x158] sm:$0xff]  }
 0x318   :  { %6563 = vmatpush3.bf16.msra.mxu0 %v7587_v38  ;;  %v7601_v38 = vld [vmem:[#allocation11 + $0x118] sm:$0xff]  }
 0x319   :  { %v8566_v44 = vpop.f32.mrb[16].mxu1  ;;  %6564 = vmatprep.subr.bf16.mxu0 %v7588_v41 }
 0x31a   :  { %v7100_v51 = vpop.f32.mrb[17].mxu1 }
 0x31b   :  { %v8568_v63 = vpop.f32.mrb[18].mxu1 }
 0x31c   :  { %v830_v0 = vpack.c.bf16 %v8568_v63, %v8566_v44  ;;  %v7101_v2 = vpop.f32.mrb[19].mxu1  ;;  %6565 = vmatpush3.bf16.msra.mxu0 %v7589_v61  ;;  %v7603_v61 = vld [vmem:[#allocation11 + $0x120] sm:$0xff]  }
 0x31d   :  { %6566 = vmatprep.subr.bf16.mxu0 %v7590_v62  ;;  %v7604_v2 = vld [vmem:[#allocation11 + $0x168] sm:$0xff]   ;;  %v7614_v44 = vld [vmem:[#allocation11 + $0x220] sm:$0xff]  }
 0x320   :  { %6567 = vmatpush3.bf16.msra.mxu0 %v7591_v56  ;;  %v7605_v56 = vld [vmem:[#allocation11 + $0x128] sm:$0xff]  }
 0x321   :  { %v8572_v4 = vpop.f32.mrb[20].mxu1  ;;  %6568 = vmatprep.subr.bf16.mxu0 %v7592_v3  ;;  %v7606_v3 = vld [vmem:[#allocation11 + $0x170] sm:$0xff]  }
 0x322   :  { %v7104_v15 = vpop.f32.mrb[21].mxu1 }
 0x323   :  { %v798_v5 = vpop.f32.mrb[22].mxu1  ;;  %v7607_v15 = vld [vmem:[#allocation11 + $0x130] sm:$0xff]  }
 0x324   :  { %v831_v28 = vpack.c.bf16 %v798_v5, %v8572_v4  ;;  %v7105_v7 = vpop.f32.mrb[23].mxu1  ;;  %6569 = vmatpush3.bf16.msra.mxu0 %v7593_v1 }
 0x325   :  { %6582 = vmatprep.subr.bf16.mxu0 %v7594_v6  ;;  %v7608_v7 = vld [vmem:[#allocation11 + $0x178] sm:$0xff]  }
 0x329   :  { %v803_v36 = vpop.f32.mrb[24].mxu1 }
 0x32a   :  { %v7108_v8 = vpop.f32.mrb[25].mxu1 }
 0x32b   :  { %v806_v46 = vpop.f32.mrb[26].mxu1 }
 0x32c   :  { %v832_v9 = vpack.c.bf16 %v806_v46, %v803_v36  ;;  %v7109_v10 = vpop.f32.mrb[27].mxu1  ;;  %v7609_v36 = vld [vmem:[#allocation11 + $0x138] sm:$0xff]   ;;  %v7610_v46 = vld [vmem:[#allocation11 + $0x200] sm:$0xff]  }
 0x331   :  { %v811_v11 = vpop.f32.mrb[28].mxu1 }
 0x332   :  { %v7112_v12 = vpop.f32.mrb[29].mxu1 }
 0x333   :  { %v814_v13 = vpop.f32.mrb[30].mxu1 }
 0x334   :  { %v833_v14 = vpack.c.bf16 %v814_v13, %v811_v11  ;;  %v7113_v16 = vpop.f32.mrb[31].mxu1  ;;  %v7611_v13 = vld [vmem:[#allocation11 + $0x208] sm:$0xff]  }
 0x335   :  { %v7612_v16 = vld [vmem:[#allocation11 + $0x210] sm:$0xff]  }
 0x336   :  { %1830 = vmatprep.mubr.bf16.mxu1 %v833_v14 }
 0x337   :  { %1831 = vmatmul.mubr.bf16.vlgmr.msra.gmra.mrb[72].mxu1 %v832_v9 }
 0x339   :  { %v8575_v17 = vpop.f32.mrb[32].mxu1 }
 0x33a   :  { %v7116_v18 = vpop.f32.mrb[33].mxu1 }
 0x33b   :  { %v8577_v20 = vpop.f32.mrb[34].mxu1 }
 0x33c   :  { %v834_v19 = vpack.c.bf16 %v8577_v20, %v8575_v17  ;;  %v7117_v21 = vpop.f32.mrb[35].mxu1  ;;  %v7617_v17 = vld [vmem:[#allocation11 + $0x238] sm:$0xff]  }
 0x341   :  { %v968_v22 = vpop.f32.mrb[36].mxu1 }
 0x342   :  { %v7128_v23 = vpop.f32.mrb[37].mxu1 }
 0x343   :  { %v971_v24 = vpop.f32.mrb[38].mxu1 }
 0x344   :  { %v1039_v25 = vpack.c.bf16 %v971_v24, %v968_v22  ;;  %v7129_v26 = vpop.f32.mrb[39].mxu1  ;;  %v7613_v24 = vld [vmem:[#allocation11 + $0x218] sm:$0xff]  }
 0x349   :  { %v976_v27 = vpop.f32.mrb[40].mxu1 }
 0x34a   :  { %v7132_v29 = vpop.f32.mrb[41].mxu1 }
 0x34b   :  { %v979_v30 = vpop.f32.mrb[42].mxu1  ;;  %v7615_v29 = vld [vmem:[#allocation11 + $0x228] sm:$0xff]  }
 0x34c   :  { %v1040_v31 = vpack.c.bf16 %v979_v30, %v976_v27  ;;  %v7133_v34 = vpop.f32.mrb[43].mxu1  ;;  %v7616_v30 = vld [vmem:[#allocation11 + $0x230] sm:$0xff]  }
 0x34e   :  { %1691 = vmatprep.mubr.bf16.mxu0 %v1040_v31 }
 0x34f   :  { %1692 = vmatmul.mubr.bf16.gmra.mrb[36].mxu0 %v1039_v25 }
 0x350   :  { %1732 = vmatprep.mubr.bf16.mxu0 %v829_v59 }
 0x351   :  { %v984_v52 = vpop.f32.mrb[44].mxu1 }
 0x352   :  { %v7136_v37 = vpop.f32.mrb[45].mxu1 }
 0x353   :  { %v987_v39 = vpop.f32.mrb[46].mxu1 }
 0x354   :  { %v1041_v60 = vpack.c.bf16 %v987_v39, %v984_v52  ;;  %v7137_v43 = vpop.f32.mrb[47].mxu1 }
 0x357   :  { %1733 = vmatmul.mubr.bf16.vlgmr.msra.gmra.mrb[40].mxu0 %v828_v47 }
 0x358   :  { %6583 = vmatpush3.bf16.msra.mxu0 %v7595_v42 }
 0x359   :  { %v992_v50 = vpop.f32.mrb[48].mxu1  ;;  %6584 = vmatprep.subr.bf16.mxu0 %v7596_v48 }
 0x35a   :  { %v7140_v54 = vpop.f32.mrb[49].mxu1 }
 0x35b   :  { %v995_v55 = vpop.f32.mrb[50].mxu1 }
 0x35c   :  { %v1042_v57 = vpack.c.bf16 %v995_v55, %v992_v50  ;;  %6585 = vmatpush3.bf16.msra.mxu0 %v7597_v49  ;;  %v7141_v59 = vpop.f32.mrb[51].mxu1 }
 0x35d   :  { %6586 = vmatprep.subr.bf16.mxu0 %v7598_v53 }
 0x35e   :  { %1740 = vmatprep.mubr.bf16.mxu0 %v1042_v57 }
 0x35f   :  { %1741 = vmatmul.mubr.bf16.gmra.mrb[44].mxu0 %v1041_v60 }
 0x360   :  { %6587 = vmatpush3.bf16.msra.mxu0 %v7599_v58  ;;  %1781 = vmatprep.mubr.bf16.mxu0 %v831_v28 }
 0x361   :  { %6588 = vmatprep.subr.bf16.mxu0 %v7600_v35  ;;  %v1000_v45 = vpop.f32.mrb[52].mxu1 }
 0x362   :  { %v7144_v47 = vpop.f32.mrb[53].mxu1 }
 0x363   :  { %v1003_v41 = vpop.f32.mrb[54].mxu1 }
 0x364   :  { %6589 = vmatpush3.bf16.msra.mxu0 %v7601_v38  ;;  %v1043_v62 = vpack.c.bf16 %v1003_v41, %v1000_v45  ;;  %v7145_v51 = vpop.f32.mrb[55].mxu1 }
 0x365   :  { %6590 = vmatprep.subr.bf16.mxu0 %v7602_v40 }
 0x368   :  { %6591 = vmatpush3.bf16.msra.mxu0 %v7603_v61 }
 0x369   :  { %6592 = vmatprep.subr.bf16.mxu0 %v7604_v2  ;;  %v1008_v1 = vpop.f32.mrb[56].mxu1 }
 0x36a   :  { %v7148_v4 = vpop.f32.mrb[57].mxu1 }
 0x36b   :  { %v1011_v6 = vpop.f32.mrb[58].mxu1 }
 0x36c   :  { %6593 = vmatpush3.bf16.msra.mxu0 %v7605_v56  ;;  %v1044_v5 = vpack.c.bf16 %v1011_v6, %v1008_v1  ;;  %v7149_v28 = vpop.f32.mrb[59].mxu1 }
 0x36d   :  { %6594 = vmatprep.subr.bf16.mxu0 %v7606_v3 }
 0x370   :  { %6595 = vmatpush3.bf16.msra.mxu0 %v7607_v15 }
 0x371   :  { %6596 = vmatprep.subr.bf16.mxu0 %v7608_v7  ;;  %v1016_v8 = vpop.f32.mrb[60].mxu1 }
 0x372   :  { %v7152_v9 = vpop.f32.mrb[61].mxu1 }
 0x373   :  { %v1019_v10 = vpop.f32.mrb[62].mxu1 }
 0x374   :  { %6597 = vmatpush3.bf16.msra.mxu0 %v7609_v36  ;;  %v1045_v11 = vpack.c.bf16 %v1019_v10, %v1016_v8  ;;  %v7153_v12 = vpop.f32.mrb[63].mxu1 }
 0x375   :  { %7162 = vmatprep.subr.bf16.mxu0 %v7610_v46 }
 0x377   :  { %1782 = vmatmul.mubr.bf16.vlgmr.msra.gmra.mrb[48].mxu0 %v830_v0 }
 0x378   :  { %7163 = vmatpush3.bf16.msra.mxu0 %v7610_v46  ;;  %1789 = vmatprep.mubr.bf16.mxu0 %v1044_v5 }
 0x379   :  { %v1024_v14 = vpop.f32.mrb[64].mxu1  ;;  %7164 = vmatprep.subr.bf16.mxu0 %v7611_v13 }
 0x37a   :  { %v7156_v18 = vpop.f32.mrb[65].mxu1 }
 0x37b   :  { %v1027_v21 = vpop.f32.mrb[66].mxu1 }
 0x37c   :  { %7165 = vmatpush3.bf16.msra.mxu0 %v7611_v13  ;;  %v1046_v22 = vpack.c.bf16 %v1027_v21, %v1024_v14  ;;  %v7157_v23 = vpop.f32.mrb[67].mxu1 }
 0x37d   :  { %7166 = vmatprep.subr.bf16.mxu0 %v7612_v16 }
 0x37e   :  { %1838 = vmatprep.mubr.bf16.mxu1 %v1046_v22 }
 0x37f   :  { %1790 = vmatmul.mubr.bf16.gmra.mrb[52].mxu0 %v1043_v62  ;;  %1839 = vmatmul.mubr.bf16.gmra.mrb[76].mxu1 %v1045_v11 }
 0x380   :  { %7167 = vmatpush3.bf16.msra.mxu0 %v7612_v16  ;;  %7178 = vmatprep.mubr.bf16.mxu0 %v834_v19 }
 0x381   :  { %7168 = vmatprep.subr.bf16.mxu0 %v7613_v24  ;;  %v1032_v63 = vpop.f32.mrb[68].mxu1  ;;  %7184 = vmatprep.mubr.msk.bf16.mxu1 %vm8193_vm0, %v8192_v32 }
 0x382   :  { %v7160_v0 = vpop.f32.mrb[69].mxu1 }
 0x383   :  { %v1035_v25 = vpop.f32.mrb[70].mxu1 }
 0x384   :  { %7169 = vmatpush3.bf16.msra.mxu0 %v7613_v24  ;;  %v1047_v26 = vpack.c.bf16 %v1035_v25, %v1032_v63  ;;  %v7161_v27 = vpop.f32.mrb[71].mxu1 }
 0x385   :  { %7170 = vmatprep.subr.bf16.mxu0 %v7614_v44 }
 0x388   :  { %7171 = vmatpush3.bf16.msra.mxu0 %v7614_v44 }
 0x389   :  { %7172 = vmatprep.subr.bf16.mxu0 %v7615_v29 }
 0x38c   :  { %7173 = vmatpush3.bf16.msra.mxu0 %v7615_v29 }
 0x38d   :  { %7174 = vmatprep.subr.bf16.mxu0 %v7616_v30 }
 0x390   :  { %7175 = vmatpush3.bf16.msra.mxu0 %v7616_v30 }
 0x391   :  { %7176 = vmatprep.subr.bf16.mxu0 %v7617_v17 }
 0x394   :  { %7177 = vmatpush3.bf16.msra.mxu0 %v7617_v17 }
 0x395   :  { %7220 = vmatprep.subr.bf16.mxu0 %v8192_v32 }
 0x397   :  { %7179 = vmatmul.mubr.bf16.vlgmr.msra.gmra.mrb[56].mxu0 %v1047_v26 }
 0x398   :  { %7222 = vmatprep.mubr.msk.bf16.mxu0 %vm8193_vm0, %v8192_v32 }
 0x3da   :  { %v6542_v20 = vpop.f32.mrb[32].mxu0 }
 0x3db   :  { %v6543_v19 = vpop.f32.mrb[33].mxu0 }
 0x3dc   :  { %v6544_v31 = vadd.f32 %v6543_v19, %v6542_v20  ;;  %v6545_v34 = vpop.f32.mrb[34].mxu0 }
 0x3dd   :  { %v6546_v52 = vpop.f32.mrb[35].mxu0 }
 0x3de   :  { %v6547_v37 = vadd.f32 %v6546_v52, %v6545_v34 }
 0x40a   :  { %v6626_v39 = vpop.f32.mrb[72].mxu1 }
 0x40b   :  { %v6627_v60 = vpop.f32.mrb[73].mxu1 }
 0x40c   :  { %v6628_v42 = vadd.f32 %v6627_v60, %v6626_v39  ;;  %v6629_v43 = vpop.f32.mrb[74].mxu1 }
 0x40d   :  { %v6630_v48 = vpop.f32.mrb[75].mxu1 }
 0x40e   :  { %v6631_v49 = vadd.f32 %v6630_v48, %v6629_v43 }
 0x422   :  { %v6548_v50 = vpop.f32.mrb[36].mxu0 }
 0x423   :  { %v6549_v53 = vpop.f32.mrb[37].mxu0 }
 0x424   :  { %v6550_v54 = vadd.f32 %v6549_v53, %v6548_v50  ;;  %v6551_v55 = vpop.f32.mrb[38].mxu0 }
 0x425   :  { %v6552_v57 = vpop.f32.mrb[39].mxu0 }
 0x426   :  { %v6553_v58 = vadd.f32 %v6552_v57, %v6551_v55 }
 0x42a   :  { %v6570_v59 = vpop.f32.mrb[40].mxu0 }
 0x42b   :  { %v6571_v35 = vpop.f32.mrb[41].mxu0 }
 0x42c   :  { %v6572_v38 = vadd.f32 %v6571_v35, %v6570_v59  ;;  %v6573_v40 = vpop.f32.mrb[42].mxu0 }
 0x42d   :  { %v6574_v45 = vpop.f32.mrb[43].mxu0 }
 0x42e   :  { %v1735_v47 = vadd.f32 %v6572_v38, %v6544_v31  ;;  %v6575_v41 = vadd.f32 %v6574_v45, %v6573_v40 }
 0x430   :  { %v1738_v61 = vadd.f32 %v6575_v41, %v6547_v37 }
 0x432   :  { %v6576_v62 = vpop.f32.mrb[44].mxu0 }
 0x433   :  { %v6577_v51 = vpop.f32.mrb[45].mxu0 }
 0x434   :  { %v6578_v2 = vadd.f32 %v6577_v51, %v6576_v62  ;;  %v6579_v56 = vpop.f32.mrb[46].mxu0 }
 0x435   :  { %v6580_v3 = vpop.f32.mrb[47].mxu0 }
 0x436   :  { %v1743_v1 = vadd.f32 %v6578_v2, %v6550_v54  ;;  %v6581_v4 = vadd.f32 %v6580_v3, %v6579_v56 }
 0x438   :  { %v1746_v6 = vadd.f32 %v6581_v4, %v6553_v58 }
 0x44a   :  { %v6598_v15 = vpop.f32.mrb[48].mxu0 }
 0x44b   :  { %v6599_v5 = vpop.f32.mrb[49].mxu0 }
 0x44c   :  { %v6600_v28 = vadd.f32 %v6599_v5, %v6598_v15  ;;  %v6601_v7 = vpop.f32.mrb[50].mxu0  ;;  %v620_v15 = vld [vmem:[#allocation17 + $0x1] sm:$0x1] }
 0x44d   :  { %v6602_v36 = vpop.f32.mrb[51].mxu0 }
 0x44e   :  { %v1784_v8 = vadd.f32 %v6600_v28, %v1735_v47  ;;  %v6603_v46 = vadd.f32 %v6602_v36, %v6601_v7  ;;  %v621_v7 = vld [vmem:[#allocation18 + $0x1] sm:$0x1] }
 0x450   :  { %v1787_v9 = vadd.f32 %v6603_v46, %v1738_v61  ;;  %v1833_v10 = vadd.f32 %v6628_v42, %v1784_v8 }
 0x452   :  { %v6604_v11 = vpop.f32.mrb[52].mxu0  ;;  %v6632_v12 = vpop.f32.mrb[76].mxu1  ;;  %v1836_v13 = vadd.f32 %v6631_v49, %v1787_v9 }
 0x453   :  { %v6605_v14 = vpop.f32.mrb[53].mxu0  ;;  %v6633_v16 = vpop.f32.mrb[77].mxu1 }
 0x454   :  { %v6606_v18 = vadd.f32 %v6605_v14, %v6604_v11  ;;  %v6607_v21 = vpop.f32.mrb[54].mxu0  ;;  %v6634_v22 = vadd.f32 %v6633_v16, %v6632_v12  ;;  %v6635_v23 = vpop.f32.mrb[78].mxu1 }
 0x455   :  { %v6608_v24 = vpop.f32.mrb[55].mxu0  ;;  %v6636_v44 = vpop.f32.mrb[79].mxu1 }
 0x456   :  { %v1792_v63 = vadd.f32 %v6606_v18, %v1743_v1  ;;  %v6609_v0 = vadd.f32 %v6608_v24, %v6607_v21  ;;  %v6637_v25 = vadd.f32 %v6636_v44, %v6635_v23 }
 0x458   :  { %v1795_v26 = vadd.f32 %v6609_v0, %v1746_v6  ;;  %v1841_v27 = vadd.f32 %v6634_v22, %v1792_v63  ;;  %v7636_v63 = vld [vmem:[#allocation12 + $0x40] sm:$0xff]  }
 0x459   :  { %v7642_v0 = vld [vmem:[#allocation12 + $0xc0] sm:$0xff]  }
 0x45a   :  { %v1844_v29 = vadd.f32 %v6637_v25, %v1795_v26 }
 0x46a   :  { %v7180_v30 = vpop.f32.mrb[56].mxu0 }
 0x46b   :  { %v1890_v17 = vadd.f32 %v7180_v30, %v1841_v27  ;;  %v1881_v20 = vpop.f32.mrb[57].mxu0  ;;  %v7618_v27 = vld [vmem:[#allocation9] sm:$0xff]   ;;  %v7637_v30 = vld [vmem:[#allocation12] sm:$0xff]  }
 0x46c   :  { %v1882_v19 = vadd.f32 %v1881_v20, %v1833_v10  ;;  %v7181_v31 = vpop.f32.mrb[58].mxu0  ;;  %v7638_v20 = vld [vmem:[#allocation12 + $0x48] sm:$0xff]  }
 0x46d   :  { %v1893_v34 = vadd.f32 %v7181_v31, %v1844_v29  ;;  %v1884_v52 = vpop.f32.mrb[59].mxu0  ;;  %v1909_v43 = vmul.f32 %v1890_v17, %v1890_v17  ;;  %v7619_v29 = vld [vmem:[#allocation9] sm:$0xff]   ;;  %v7639_v31 = vld [vmem:[#allocation12 + $0x8] sm:$0xff]  }
 0x46e   :  { %v1885_v37 = vadd.f32 %v1884_v52, %v1836_v13  ;;  %v1907_v39 = vmul.f32 %v1882_v19, %v1882_v19  ;;  %v7640_v52 = vld [vmem:[#allocation12 + $0x50] sm:$0xff]  }
 0x46f   :  { %v1910_v50 = vmul.f32 %v1893_v34, %v1893_v34 }
 0x470   :  { %v1896_v60 = vadd.f32 %v1885_v37, %v1882_v19  ;;  %v1908_v42 = vmul.f32 %v1885_v37, %v1885_v37 }
 0x472   :  { %v1897_v48 = vadd.f32 %v1896_v60, %v1890_v17  ;;  %v1911_v49 = vadd.f32 %v1908_v42, %v1907_v39  ;;  %v7620_v39 = vld [vmem:[#allocation9 + $0x8] sm:$0xff]   ;;  %v7641_v42 = vld [vmem:[#allocation12 + $0x10] sm:$0xff]  }
 0x473   :  { %v7621_v60 = vld [vmem:[#allocation9 + $0x8] sm:$0xff]  }
 0x474   :  { %v1898_v53 = vadd.f32 %v1897_v48, %v1893_v34  ;;  %v1912_v54 = vadd.f32 %v1911_v49, %v1909_v43  ;;  %v7651_v43 = vld [vmem:[#allocation12 + $0x90] sm:$0xff]   ;;  %v7644_v48 = vld [vmem:[#allocation12 + $0x58] sm:$0xff]  }
 0x475   :  { %v7645_v49 = vld [vmem:[#allocation12 + $0x18] sm:$0xff]  }
 0x476   :  { %v1899_v55 = vrot.slane %v1898_v53, 4  ;;  %v1913_v57 = vadd.f32 %v1912_v54, %v1910_v50  ;;  %v7648_v50 = vld [vmem:[#allocation12 + $0x60] sm:$0xff]   ;;  %v7623_v54 = vld [vmem:[#allocation9 + $0x10] sm:$0xff]  }
 0x478   :  { %v1900_v58 = vadd.f32 %v1899_v55, %v1898_v53  ;;  %v1914_v59 = vrot.slane %v1913_v57, 4  ;;  %v7622_v53 = vld [vmem:[#allocation9 + $0x10] sm:$0xff]   ;;  %v7649_v55 = vld [vmem:[#allocation12 + $0x20] sm:$0xff]  }
 0x47a   :  { %v1901_v35 = vrot.slane %v1900_v58, 2  ;;  %v1915_v38 = vadd.f32 %v1914_v59, %v1913_v57  ;;  %v7652_v57 = vld [vmem:[#allocation12 + $0x68] sm:$0xff]   ;;  %v7625_v59 = vld [vmem:[#allocation9 + $0x18] sm:$0xff]  }
 0x47c   :  { %v1902_v40 = vadd.f32 %v1901_v35, %v1900_v58  ;;  %v1916_v45 = vrot.slane %v1915_v38, 2  ;;  %v7624_v58 = vld [vmem:[#allocation9 + $0x18] sm:$0xff]   ;;  %v7626_v35 = vld [vmem:[#allocation9 + $0x20] sm:$0xff]  }
 0x47e   :  { %v1903_v47 = vrot.slane %v1902_v40, 1  ;;  %v1917_v41 = vadd.f32 %v1916_v45, %v1915_v38  ;;  %v7627_v38 = vld [vmem:[#allocation9 + $0x20] sm:$0xff]   ;;  %v7629_v45 = vld [vmem:[#allocation9 + $0x28] sm:$0xff]  }
 0x480   :  { %v1904_v61 = vadd.f32 %v1903_v47, %v1902_v40  ;;  %v1918_v62 = vrot.slane %v1917_v41, 1  ;;  %v7628_v40 = vld [vmem:[#allocation9 + $0x28] sm:$0xff]   ;;  %v7630_v47 = vld [vmem:[#allocation9 + $0x30] sm:$0xff]  }
 0x482   :  { %v1906_v51 = vmul.f32 0.03125, %v1904_v61  ;;  %v1919_v2 = vadd.f32 %v1918_v62, %v1917_v41  ;;  %v7631_v41 = vld [vmem:[#allocation9 + $0x30] sm:$0xff]   ;;  %v7632_v61 = vld [vmem:[#allocation9 + $0x38] sm:$0xff]  }
 0x483   :  { %v7633_v62 = vld [vmem:[#allocation9 + $0x38] sm:$0xff]  }
 0x484   :  { %v1920_v56 = vmul.f32 0.03125, %v1919_v2  ;;  %v1921_v3 = vmul.f32 %v1906_v51, %v1906_v51  ;;  %v7635_v2 = vld [vmem:[#allocation9 + $0x40] sm:$0xff]  }
 0x486   :  { %v1922_v1 = vsub.f32 %v1920_v56, %v1921_v3  ;;  %v7653_v56 = vld [vmem:[#allocation12 + $0x28] sm:$0xff]   ;;  %v7654_v3 = vld [vmem:[#allocation12 + $0x70] sm:$0xff]  }
 0x488   :  { %v1923_v4 = vmax.f32 %v1922_v1, 0.0  ;;  %v7655_v1 = vld [vmem:[#allocation12 + $0xd8] sm:$0xff]  }
 0x48a   :  { %v1924_v6 = vadd.f32 1e-05, %v1923_v4  ;;  %v7656_v4 = vld [vmem:[#allocation12 + $0x30] sm:$0xff]  }
 0x48c   :  { %7890 = vrsqrt.f32 %v1924_v6  ;;  %v7657_v6 = vld [vmem:[#allocation12 + $0x98] sm:$0xff]  }
 0x496   :  { %v7891_v5 = vpop.eup %7890 }
 0x497   :  { %v1926_v28 = vmul.f32 %v7891_v5, %v620_v15  ;;  %v7658_v15 = vld [vmem:[#allocation12 + $0x78] sm:$0xff]  }
 0x498   :  { %v7659_v5 = vld [vmem:[#allocation12 + $0x38] sm:$0xff]  }
 0x499   :  { %v1927_v36 = vmul.f32 %v1926_v28, %v1906_v51  ;;  %v1932_v8 = vrot.slane %v1926_v28, %v8478_v33  ;;  %v7634_v51 = vld [vmem:[#allocation9 + $0x40] sm:$0xff]   ;;  %v7660_v28 = vld [vmem:[#allocation12 + $0x140] sm:$0xff]  }
 0x49b   :  { %v1928_v46 = vsub.f32 %v621_v7, %v1927_v36  ;;  %v1934_v9 = vmul.f32 %v1932_v8, %v1885_v37  ;;  %v1933_v10 = vmul.f32 %v1932_v8, %v1882_v19  ;;  %v1935_v11 = vmul.f32 %v1932_v8, %v1890_v17  ;;  %v7643_v17 = vld [vmem:[#allocation12 + $0x80] sm:$0xff]   ;;  %v7646_v19 = vld [vmem:[#allocation12 + $0xc8] sm:$0xff]   ;;  %v7650_v37 = vld [vmem:[#allocation12 + $0xd0] sm:$0xff]  }
 0x49c   :  { %v1936_v12 = vmul.f32 %v1932_v8, %v1893_v34  ;;  %v7647_v34 = vld [vmem:[#allocation12 + $0x88] sm:$0xff]   ;;  %v7661_v7 = vld [vmem:[#allocation12 + $0xe0] sm:$0xff]  }
 0x49d   :  { %v1940_v13 = vrot.slane %v1928_v46, %v8478_v33  ;;  %v7663_v36 = vld [vmem:[#allocation12 + $0xa0] sm:$0xff]   ;;  %v7665_v8 = vld [vmem:[#allocation12 + $0xe8] sm:$0xff]  }
 0x49e   :  { %v7667_v46 = vld [vmem:[#allocation12 + $0xa8] sm:$0xff]  }
 0x49f   :  { %v1942_v14 = vadd.f32 %v1940_v13, %v1934_v9  ;;  %v1941_v16 = vadd.f32 %v1940_v13, %v1933_v10  ;;  %v1943_v18 = vadd.f32 %v1940_v13, %v1935_v11  ;;  %v1944_v21 = vadd.f32 %v1940_v13, %v1936_v12  ;;  %v7669_v9 = vld [vmem:[#allocation12 + $0xf0] sm:$0xff]   ;;  %v7673_v11 = vld [vmem:[#allocation12 + $0xf8] sm:$0xff]   ;;  %v7678_v13 = vld [vmem:[#allocation12 + $0x1c0] sm:$0xff]  }
 0x4a0   :  { %v7671_v10 = vld [vmem:[#allocation12 + $0xb0] sm:$0xff]   ;;  %v7675_v12 = vld [vmem:[#allocation12 + $0xb8] sm:$0xff]  }
 0x4a1   :  { %v1946_v22 = vmax.f32 %v1942_v14, 0.0  ;;  %v1945_v23 = vmax.f32 %v1941_v16, 0.0  ;;  %v1947_v24 = vmax.f32 %v1943_v18, 0.0  ;;  %v1948_v44 = vmax.f32 %v1944_v21, 0.0 }
 0x4a3   :  { %v1951_v25 = vpack.c.bf16 %v1946_v22, %v1945_v23  ;;  %v1952_v26 = vpack.c.bf16 %v1948_v44, %v1947_v24 }
 0x4a5   :  { %7183 = vmatpush3.bf16.msra.mxu1 %v1951_v25  ;;  %7221 = vmatpush3.bf16.msra.mxu0 %v1952_v26 }
 0x4a6   :  { %6668 = vmatprep.subr.bf16.mxu1 %v7636_v63  ;;  %6696 = vmatprep.subr.bf16.mxu0 %v7642_v0 }
 0x4a8   :  { %7185 = vmatmul.mubr.msk.bf16.vlgmr.msra.gmra.mrb[80].mxu1 %vm2016_vm2, %v7618_v27  ;;  %7223 = vmatmul.mubr.msk.bf16.vlgmr.msra.gmra.mrb[60].mxu0 %vm2016_vm2, %v7619_v29 }
 0x4a9   :  { %7188 = vmatprep.mubr.msk.bf16.mxu1 %vm8193_vm0, %v8192_v32  ;;  %7226 = vmatprep.mubr.msk.bf16.mxu0 %vm8193_vm0, %v8192_v32 }
 0x4aa   :  { %6669 = vmatpush3.bf16.msra.mxu1 %v7637_v30  ;;  %6697 = vmatpush3.bf16.msra.mxu0 %v7643_v17 }
 0x4ab   :  { %6670 = vmatprep.subr.bf16.mxu1 %v7638_v20  ;;  %6698 = vmatprep.subr.bf16.mxu0 %v7646_v19 }
 0x4ae   :  { %6671 = vmatpush3.bf16.msra.mxu1 %v7639_v31  ;;  %6699 = vmatpush3.bf16.msra.mxu0 %v7647_v34  ;;  %v7662_v31 = vld [vmem:[#allocation12 + $0x100] sm:$0xff]  }
 0x4af   :  { %6672 = vmatprep.subr.bf16.mxu1 %v7640_v52  ;;  %6700 = vmatprep.subr.bf16.mxu0 %v7650_v37  ;;  %v7664_v37 = vld [vmem:[#allocation12 + $0x148] sm:$0xff]  }
 0x4b0   :  { %7189 = vmatmul.mubr.msk.bf16.gmra.mrb[84].mxu1 %vm2016_vm2, %v7620_v39  ;;  %7227 = vmatmul.mubr.msk.bf16.gmra.mrb[64].mxu0 %vm2016_vm2, %v7621_v60  ;;  %v7666_v39 = vld [vmem:[#allocation12 + $0x108] sm:$0xff]  }
 0x4b1   :  { %7192 = vmatprep.mubr.msk.bf16.mxu1 %vm8193_vm0, %v8192_v32  ;;  %7230 = vmatprep.mubr.msk.bf16.mxu0 %vm8193_vm0, %v8192_v32 }
 0x4b2   :  { %6673 = vmatpush3.bf16.msra.mxu1 %v7641_v42  ;;  %6701 = vmatpush3.bf16.msra.mxu0 %v7651_v43  ;;  %v7668_v43 = vld [vmem:[#allocation12 + $0x150] sm:$0xff]  }
 0x4b3   :  { %6674 = vmatprep.subr.bf16.mxu1 %v7644_v48  ;;  %6702 = vmatprep.subr.bf16.mxu0 %v7655_v1 }
 0x4b6   :  { %6675 = vmatpush3.bf16.msra.mxu1 %v7645_v49  ;;  %6703 = vmatpush3.bf16.msra.mxu0 %v7657_v6 }
 0x4b7   :  { %6676 = vmatprep.subr.bf16.mxu1 %v7648_v50  ;;  %6704 = vmatprep.subr.bf16.mxu0 %v7661_v7  ;;  %v7683_v7 = vld [vmem:[#allocation12 + $0x188] sm:$0xff]  }
 0x4b8   :  { %7193 = vmatmul.mubr.msk.bf16.gmra.mrb[88].mxu1 %vm2016_vm2, %v7622_v53  ;;  %7231 = vmatmul.mubr.msk.bf16.gmra.mrb[68].mxu0 %vm2016_vm2, %v7623_v54 }
 0x4b9   :  { %7196 = vmatprep.mubr.msk.bf16.mxu1 %vm8193_vm0, %v8192_v32  ;;  %7234 = vmatprep.mubr.msk.bf16.mxu0 %vm8193_vm0, %v8192_v32 }
 0x4ba   :  { %6677 = vmatpush3.bf16.msra.mxu1 %v7649_v55  ;;  %6705 = vmatpush3.bf16.msra.mxu0 %v7663_v36 }
 0x4bb   :  { %6678 = vmatprep.subr.bf16.mxu1 %v7652_v57  ;;  %6706 = vmatprep.subr.bf16.mxu0 %v7665_v8  ;;  %v7670_v57 = vld [vmem:[#allocation12 + $0x110] sm:$0xff]  }
 0x4be   :  { %6679 = vmatpush3.bf16.msra.mxu1 %v7653_v56  ;;  %6707 = vmatpush3.bf16.msra.mxu0 %v7667_v46  ;;  %v7684_v46 = vld [vmem:[#allocation12 + $0x170] sm:$0xff]  }
 0x4bf   :  { %6680 = vmatprep.subr.bf16.mxu1 %v7654_v3  ;;  %6708 = vmatprep.subr.bf16.mxu0 %v7669_v9  ;;  %v7677_v3 = vld [vmem:[#allocation12 + $0x120] sm:$0xff]   ;;  %v7686_v9 = vld [vmem:[#allocation12 + $0x1d0] sm:$0xff]  }
 0x4c0   :  { %7197 = vmatmul.mubr.msk.bf16.gmra.mrb[92].mxu1 %vm2016_vm2, %v7624_v58  ;;  %7235 = vmatmul.mubr.msk.bf16.gmra.mrb[72].mxu0 %vm2016_vm2, %v7625_v59 }
 0x4c1   :  { %7200 = vmatprep.mubr.msk.bf16.mxu1 %vm8193_vm0, %v8192_v32  ;;  %7238 = vmatprep.mubr.msk.bf16.mxu0 %vm8193_vm0, %v8192_v32 }
 0x4c2   :  { %6681 = vmatpush3.bf16.msra.mxu1 %v7656_v4  ;;  %6709 = vmatpush3.bf16.msra.mxu0 %v7671_v10  ;;  %v7679_v4 = vld [vmem:[#allocation12 + $0x180] sm:$0xff]  }
 0x4c3   :  { %6682 = vmatprep.subr.bf16.mxu1 %v7658_v15  ;;  %6710 = vmatprep.subr.bf16.mxu0 %v7673_v11  ;;  %v7680_v15 = vld [vmem:[#allocation12 + $0x168] sm:$0xff]  }
 0x4c6   :  { %6683 = vmatpush3.bf16.msra.mxu1 %v7659_v5  ;;  %6711 = vmatpush3.bf16.msra.mxu0 %v7675_v12  ;;  %v7682_v5 = vld [vmem:[#allocation12 + $0x1c8] sm:$0xff]  }
 0x4c7   :  { %6724 = vmatprep.subr.bf16.mxu1 %v7660_v28  ;;  %6752 = vmatprep.subr.bf16.mxu0 %v7678_v13  ;;  %v7681_v28 = vld [vmem:[#allocation12 + $0x128] sm:$0xff]  }
 0x4c8   :  { %7201 = vmatmul.mubr.msk.bf16.gmra.mrb[96].mxu1 %vm2016_vm2, %v7626_v35  ;;  %7239 = vmatmul.mubr.msk.bf16.gmra.mrb[76].mxu0 %vm2016_vm2, %v7627_v38  ;;  %v7672_v35 = vld [vmem:[#allocation12 + $0x158] sm:$0xff]  }
 0x4c9   :  { %7204 = vmatprep.mubr.msk.bf16.mxu1 %vm8193_vm0, %v8192_v32  ;;  %7242 = vmatprep.mubr.msk.bf16.mxu0 %vm8193_vm0, %v8192_v32  ;;  %v7674_v38 = vld [vmem:[#allocation12 + $0x118] sm:$0xff]  }
 0x4d0   :  { %7205 = vmatmul.mubr.msk.bf16.gmra.mrb[100].mxu1 %vm2016_vm2, %v7628_v40  ;;  %7243 = vmatmul.mubr.msk.bf16.gmra.mrb[80].mxu0 %vm2016_vm2, %v7629_v45 }
 0x4d1   :  { %7208 = vmatprep.mubr.msk.bf16.mxu1 %vm8193_vm0, %v8192_v32  ;;  %7246 = vmatprep.mubr.msk.bf16.mxu0 %vm8193_vm0, %v8192_v32 }
 0x4d8   :  { %7209 = vmatmul.mubr.msk.bf16.gmra.mrb[104].mxu1 %vm2016_vm2, %v7630_v47  ;;  %7247 = vmatmul.mubr.msk.bf16.gmra.mrb[84].mxu0 %vm2016_vm2, %v7631_v41  ;;  %v7676_v47 = vld [vmem:[#allocation12 + $0x160] sm:$0xff]  }
 0x4d9   :  { %7212 = vmatprep.mubr.msk.bf16.mxu1 %vm8193_vm0, %v8192_v32  ;;  %7250 = vmatprep.mubr.msk.bf16.mxu0 %vm8193_vm0, %v8192_v32 }
 0x4e0   :  { %7213 = vmatmul.mubr.msk.bf16.gmra.mrb[108].mxu1 %vm2016_vm2, %v7632_v61  ;;  %7251 = vmatmul.mubr.msk.bf16.gmra.mrb[88].mxu0 %vm2016_vm2, %v7633_v62 }
 0x4e1   :  { %7216 = vmatprep.mubr.msk.bf16.mxu1 %vm8193_vm0, %v8192_v32  ;;  %7254 = vmatprep.mubr.msk.bf16.mxu0 %vm8193_vm0, %v8192_v32 }
 0x4e8   :  { %7217 = vmatmul.mubr.msk.bf16.gmra.mrb[112].mxu1 %vm2016_vm2, %v7634_v51  ;;  %7255 = vmatmul.mubr.msk.bf16.gmra.mrb[92].mxu0 %vm2016_vm2, %v7635_v2 }
 0x57b   :  { %v2078_v14 = vpop.f32.mrb[80].mxu1  ;;  %v2291_v16 = vpop.f32.mrb[60].mxu0 }
 0x57c   :  { %v7186_v18 = vpop.f32.mrb[81].mxu1  ;;  %v7224_v21 = vpop.f32.mrb[61].mxu0 }
 0x57d   :  { %v2081_v22 = vpop.f32.mrb[82].mxu1  ;;  %v2294_v23 = vpop.f32.mrb[62].mxu0  ;;  %v7685_v18 = vld [vmem:[#allocation12 + $0x130] sm:$0xff]  }
 0x57e   :  { %v2149_v24 = vpack.c.bf16 %v2081_v22, %v2078_v14  ;;  %v7187_v44 = vpop.f32.mrb[83].mxu1  ;;  %v2362_v63 = vpack.c.bf16 %v2294_v23, %v2291_v16  ;;  %v7225_v0 = vpop.f32.mrb[63].mxu0  ;;  %v7687_v22 = vld [vmem:[#allocation12 + $0x190] sm:$0xff]  }
 0x57f   :  { %v7690_v44 = vld [vmem:[#allocation12 + $0x1d8] sm:$0xff]  }
 0x580   :  { %v7691_v0 = vld [vmem:[#allocation12 + $0x198] sm:$0xff]  }
 0x583   :  { %v2086_v25 = vpop.f32.mrb[84].mxu1  ;;  %v2299_v26 = vpop.f32.mrb[64].mxu0 }
 0x584   :  { %v7190_v27 = vpop.f32.mrb[85].mxu1  ;;  %v7228_v29 = vpop.f32.mrb[65].mxu0 }
 0x585   :  { %v2089_v30 = vpop.f32.mrb[86].mxu1  ;;  %v2302_v17 = vpop.f32.mrb[66].mxu0  ;;  %v7692_v27 = vld [vmem:[#allocation12 + $0x200] sm:$0xff]  }
 0x586   :  { %v2150_v20 = vpack.c.bf16 %v2089_v30, %v2086_v25  ;;  %v7191_v19 = vpop.f32.mrb[87].mxu1  ;;  %v2363_v34 = vpack.c.bf16 %v2302_v17, %v2299_v26  ;;  %v7229_v52 = vpop.f32.mrb[67].mxu0  ;;  %v7693_v29 = vld [vmem:[#allocation12 + $0x1e0] sm:$0xff]  }
 0x588   :  { %3006 = vmatprep.mubr.bf16.mxu1 %v2150_v20 }
 0x589   :  { %3007 = vmatmul.mubr.bf16.vlgmr.msra.gmra.mrb[116].mxu1 %v2149_v24  ;;  %v7688_v24 = vld [vmem:[#allocation12 + $0x178] sm:$0xff]  }
 0x58a   :  { %6725 = vmatpush3.bf16.msra.mxu1 %v7662_v31  ;;  %3014 = vmatprep.mubr.bf16.mxu1 %v2363_v34 }
 0x58b   :  { %v2094_v60 = vpop.f32.mrb[88].mxu1  ;;  %6726 = vmatprep.subr.bf16.mxu1 %v7664_v37  ;;  %v8647_v42 = vpop.f32.mrb[68].mxu0  ;;  %v7694_v37 = vld [vmem:[#allocation12 + $0x1a0] sm:$0xff]  }
 0x58c   :  { %v7194_v48 = vpop.f32.mrb[89].mxu1  ;;  %v7232_v49 = vpop.f32.mrb[69].mxu0 }
 0x58d   :  { %v2097_v50 = vpop.f32.mrb[90].mxu1  ;;  %v2310_v53 = vpop.f32.mrb[70].mxu0 }
 0x58e   :  { %v2151_v54 = vpack.c.bf16 %v2097_v50, %v2094_v60  ;;  %6727 = vmatpush3.bf16.msra.mxu1 %v7666_v39  ;;  %v7195_v55 = vpop.f32.mrb[91].mxu1  ;;  %v2364_v58 = vpack.c.bf16 %v2310_v53, %v8647_v42  ;;  %v7233_v59 = vpop.f32.mrb[71].mxu0  ;;  %v7695_v60 = vld [vmem:[#allocation12 + $0x208] sm:$0xff]   ;;  %v7698_v50 = vld [vmem:[#allocation12 + $0x210] sm:$0xff]  }
 0x58f   :  { %6728 = vmatprep.subr.bf16.mxu1 %v7668_v43  ;;  %v7696_v42 = vld [vmem:[#allocation12 + $0x1e8] sm:$0xff]   ;;  %v7699_v53 = vld [vmem:[#allocation12 + $0x1f0] sm:$0xff]  }
 0x590   :  { %v7697_v43 = vld [vmem:[#allocation12 + $0x1a8] sm:$0xff]  }
 0x591   :  { %3015 = vmatmul.mubr.bf16.gmra.mrb[120].mxu1 %v2362_v63  ;;  %v7689_v63 = vld [vmem:[#allocation12 + $0x138] sm:$0xff]  }
 0x592   :  { %6729 = vmatpush3.bf16.msra.mxu1 %v7670_v57 }
 0x593   :  { %v2102_v40 = vpop.f32.mrb[92].mxu1  ;;  %6730 = vmatprep.subr.bf16.mxu1 %v7672_v35  ;;  %v2315_v45 = vpop.f32.mrb[72].mxu0 }
 0x594   :  { %v7198_v41 = vpop.f32.mrb[93].mxu1  ;;  %v7236_v61 = vpop.f32.mrb[73].mxu0 }
 0x595   :  { %v2105_v62 = vpop.f32.mrb[94].mxu1  ;;  %v2318_v51 = vpop.f32.mrb[74].mxu0  ;;  %v7702_v41 = vld [vmem:[#allocation12 + $0x1f8] sm:$0xff]  }
 0x596   :  { %v2152_v2 = vpack.c.bf16 %v2105_v62, %v2102_v40  ;;  %6731 = vmatpush3.bf16.msra.mxu1 %v7674_v38  ;;  %v7199_v56 = vpop.f32.mrb[95].mxu1  ;;  %v2365_v1 = vpack.c.bf16 %v2318_v51, %v2315_v45  ;;  %v7237_v6 = vpop.f32.mrb[75].mxu0  ;;  %v7700_v40 = vld [vmem:[#allocation12 + $0x1b0] sm:$0xff]   ;;  %v7703_v61 = vld [vmem:[#allocation12 + $0x1b8] sm:$0xff]  }
 0x597   :  { %6732 = vmatprep.subr.bf16.mxu1 %v7676_v47  ;;  %v7701_v47 = vld [vmem:[#allocation12 + $0x218] sm:$0xff]  }
 0x598   :  { %3055 = vmatprep.mubr.bf16.mxu0 %v2152_v2  ;;  %v7704_v2 = vld [vmem:[#allocation12 + $0x220] sm:$0xff]  }
 0x599   :  { %3056 = vmatmul.mubr.bf16.vlgmr.msra.gmra.mrb[96].mxu0 %v2151_v54 }
 0x59a   :  { %6733 = vmatpush3.bf16.msra.mxu1 %v7677_v3  ;;  %6753 = vmatpush3.bf16.msra.mxu0 %v7679_v4 }
 0x59b   :  { %v2110_v36 = vpop.f32.mrb[96].mxu1  ;;  %6734 = vmatprep.subr.bf16.mxu1 %v7680_v15  ;;  %6754 = vmatprep.subr.bf16.mxu0 %v7682_v5  ;;  %v8650_v8 = vpop.f32.mrb[76].mxu0 }
 0x59c   :  { %v7202_v10 = vpop.f32.mrb[97].mxu1  ;;  %3063 = vmatprep.mubr.bf16.mxu0 %v2365_v1  ;;  %v7240_v11 = vpop.f32.mrb[77].mxu0 }
 0x59d   :  { %v2113_v12 = vpop.f32.mrb[98].mxu1  ;;  %v8652_v13 = vpop.f32.mrb[78].mxu0 }
 0x59e   :  { %v2153_v14 = vpack.c.bf16 %v2113_v12, %v2110_v36  ;;  %6735 = vmatpush3.bf16.msra.mxu1 %v7681_v28  ;;  %v7203_v16 = vpop.f32.mrb[99].mxu1  ;;  %6755 = vmatpush3.bf16.msra.mxu0 %v7683_v7  ;;  %v2366_v21 = vpack.c.bf16 %v8652_v13, %v8650_v8  ;;  %v7241_v23 = vpop.f32.mrb[79].mxu0  ;;  %v7705_v7 = vld [vmem:[#allocation12 + $0x228] sm:$0xff]  }
 0x59f   :  { %6736 = vmatprep.subr.bf16.mxu1 %v7684_v46  ;;  %6756 = vmatprep.subr.bf16.mxu0 %v7686_v9  ;;  %v7706_v46 = vld [vmem:[#allocation12 + $0x230] sm:$0xff]  }
 0x5a1   :  { %3064 = vmatmul.mubr.bf16.gmra.mrb[100].mxu0 %v2364_v58 }
 0x5a2   :  { %6737 = vmatpush3.bf16.msra.mxu1 %v7685_v18  ;;  %6757 = vmatpush3.bf16.msra.mxu0 %v7687_v22 }
 0x5a3   :  { %v2118_v25 = vpop.f32.mrb[100].mxu1  ;;  %6738 = vmatprep.subr.bf16.mxu1 %v7688_v24  ;;  %6758 = vmatprep.subr.bf16.mxu0 %v7690_v44  ;;  %v2331_v26 = vpop.f32.mrb[80].mxu0 }
 0x5a4   :  { %v7206_v30 = vpop.f32.mrb[101].mxu1  ;;  %v7244_v17 = vpop.f32.mrb[81].mxu0 }
 0x5a5   :  { %v2121_v20 = vpop.f32.mrb[102].mxu1  ;;  %v2334_v19 = vpop.f32.mrb[82].mxu0 }
 0x5a6   :  { %v2154_v31 = vpack.c.bf16 %v2121_v20, %v2118_v25  ;;  %6739 = vmatpush3.bf16.msra.mxu1 %v7689_v63  ;;  %v7207_v34 = vpop.f32.mrb[103].mxu1  ;;  %6759 = vmatpush3.bf16.msra.mxu0 %v7691_v0  ;;  %v2367_v52 = vpack.c.bf16 %v2334_v19, %v2331_v26  ;;  %v7245_v39 = vpop.f32.mrb[83].mxu0 }
 0x5a7   :  { %7258 = vmatprep.subr.bf16.mxu1 %v7692_v27  ;;  %6760 = vmatprep.subr.bf16.mxu0 %v7693_v29 }
 0x5a8   :  { %3104 = vmatprep.mubr.bf16.mxu1 %v2154_v31 }
 0x5a9   :  { %3105 = vmatmul.mubr.bf16.vlgmr.msra.gmra.mrb[124].mxu1 %v2153_v14 }
 0x5aa   :  { %7259 = vmatpush3.bf16.msra.mxu1 %v7692_v27  ;;  %6761 = vmatpush3.bf16.msra.mxu0 %v7694_v37 }
 0x5ab   :  { %7260 = vmatprep.subr.bf16.mxu1 %v7695_v60  ;;  %6762 = vmatprep.subr.bf16.mxu0 %v7696_v42  ;;  %v2126_v48 = vpop.f32.mrb[104].mxu1  ;;  %v2339_v49 = vpop.f32.mrb[84].mxu0 }
 0x5ac   :  { %3112 = vmatprep.mubr.bf16.mxu1 %v2367_v52  ;;  %v7210_v54 = vpop.f32.mrb[105].mxu1  ;;  %v7248_v55 = vpop.f32.mrb[85].mxu0 }
 0x5ad   :  { %v2129_v57 = vpop.f32.mrb[106].mxu1  ;;  %v2342_v58 = vpop.f32.mrb[86].mxu0 }
 0x5ae   :  { %7261 = vmatpush3.bf16.msra.mxu1 %v7695_v60  ;;  %6763 = vmatpush3.bf16.msra.mxu0 %v7697_v43  ;;  %v2155_v59 = vpack.c.bf16 %v2129_v57, %v2126_v48  ;;  %v7211_v35 = vpop.f32.mrb[107].mxu1  ;;  %v2368_v38 = vpack.c.bf16 %v2342_v58, %v2339_v49  ;;  %v7249_v45 = vpop.f32.mrb[87].mxu0 }
 0x5af   :  { %7262 = vmatprep.subr.bf16.mxu1 %v7698_v50  ;;  %6764 = vmatprep.subr.bf16.mxu0 %v7699_v53 }
 0x5b1   :  { %3113 = vmatmul.mubr.bf16.gmra.mrb[128].mxu1 %v2366_v21  ;;  %v7707_v21 = vld [vmem:[#allocation12 + $0x238] sm:$0xff]  }
 0x5b2   :  { %7263 = vmatpush3.bf16.msra.mxu1 %v7698_v50  ;;  %6765 = vmatpush3.bf16.msra.mxu0 %v7700_v40 }
 0x5b3   :  { %v2134_v62 = vpop.f32.mrb[108].mxu1  ;;  %7264 = vmatprep.subr.bf16.mxu1 %v7701_v47  ;;  %6766 = vmatprep.subr.bf16.mxu0 %v7702_v41  ;;  %v2347_v51 = vpop.f32.mrb[88].mxu0 }
 0x5b4   :  { %v7214_v56 = vpop.f32.mrb[109].mxu1  ;;  %v7252_v3 = vpop.f32.mrb[89].mxu0 }
 0x5b5   :  { %v2137_v1 = vpop.f32.mrb[110].mxu1  ;;  %v2350_v4 = vpop.f32.mrb[90].mxu0 }
 0x5b6   :  { %v2156_v6 = vpack.c.bf16 %v2137_v1, %v2134_v62  ;;  %7265 = vmatpush3.bf16.msra.mxu1 %v7701_v47  ;;  %6767 = vmatpush3.bf16.msra.mxu0 %v7703_v61  ;;  %v7215_v15 = vpop.f32.mrb[111].mxu1  ;;  %v2369_v5 = vpack.c.bf16 %v2350_v4, %v2347_v51  ;;  %v7253_v28 = vpop.f32.mrb[91].mxu0 }
 0x5b7   :  { %7266 = vmatprep.subr.bf16.mxu1 %v7704_v2  ;;  %7278 = vmatprep.subr.bf16.mxu0 %v8192_v32 }
 0x5b8   :  { %3153 = vmatprep.mubr.bf16.mxu0 %v2156_v6 }
 0x5b9   :  { %3154 = vmatmul.mubr.bf16.vlgmr.msra.gmra.mrb[104].mxu0 %v2155_v59 }
 0x5ba   :  { %7267 = vmatpush3.bf16.msra.mxu1 %v7704_v2  ;;  %3161 = vmatprep.mubr.bf16.mxu0 %v2369_v5 }
 0x5bb   :  { %7268 = vmatprep.subr.bf16.mxu1 %v7705_v7  ;;  %v2142_v36 = vpop.f32.mrb[112].mxu1  ;;  %v2355_v8 = vpop.f32.mrb[92].mxu0 }
 0x5bc   :  { %v7218_v9 = vpop.f32.mrb[113].mxu1  ;;  %v7256_v10 = vpop.f32.mrb[93].mxu0 }
 0x5bd   :  { %v2145_v11 = vpop.f32.mrb[114].mxu1  ;;  %v2358_v12 = vpop.f32.mrb[94].mxu0 }
 0x5be   :  { %7269 = vmatpush3.bf16.msra.mxu1 %v7705_v7  ;;  %v2157_v13 = vpack.c.bf16 %v2145_v11, %v2142_v36  ;;  %v7219_v14 = vpop.f32.mrb[115].mxu1  ;;  %v2370_v16 = vpack.c.bf16 %v2358_v12, %v2355_v8  ;;  %v7257_v18 = vpop.f32.mrb[95].mxu0 }
 0x5bf   :  { %7270 = vmatprep.subr.bf16.mxu1 %v7706_v46 }
 0x5c0   :  { %7274 = vmatprep.mubr.bf16.mxu1 %v2157_v13 }
 0x5c1   :  { %3162 = vmatmul.mubr.bf16.gmra.mrb[108].mxu0 %v2368_v38 }
 0x5c2   :  { %7271 = vmatpush3.bf16.msra.mxu1 %v7706_v46  ;;  %7280 = vmatprep.mubr.msk.bf16.mxu0 %vm8193_vm0, %v8192_v32 }
 0x5c3   :  { %7272 = vmatprep.subr.bf16.mxu1 %v7707_v21 }
 0x5c6   :  { %7273 = vmatpush3.bf16.msra.mxu1 %v7707_v21 }
 0x5c7   :  { %7316 = vmatprep.subr.bf16.mxu1 %v8192_v32 }
 0x5c9   :  { %7275 = vmatmul.mubr.bf16.vlgmr.msra.gmra.mrb[132].mxu1 %v2370_v16 }
 0x5ca   :  { %7318 = vmatprep.mubr.msk.bf16.mxu1 %vm8193_vm0, %v8192_v32 }
 0x65c   :  { %v6684_v22 = vpop.f32.mrb[116].mxu1 }
 0x65d   :  { %v6685_v23 = vpop.f32.mrb[117].mxu1 }
 0x65e   :  { %v6686_v24 = vadd.f32 %v6685_v23, %v6684_v22  ;;  %v6687_v44 = vpop.f32.mrb[118].mxu1 }
 0x65f   :  { %v6688_v63 = vpop.f32.mrb[119].mxu1 }
 0x660   :  { %v6689_v0 = vadd.f32 %v6688_v63, %v6687_v44 }
 0x664   :  { %v6690_v25 = vpop.f32.mrb[120].mxu1 }
 0x665   :  { %v6691_v26 = vpop.f32.mrb[121].mxu1 }
 0x666   :  { %v6692_v27 = vadd.f32 %v6691_v26, %v6690_v25  ;;  %v6693_v29 = vpop.f32.mrb[122].mxu1 }
 0x667   :  { %v6694_v30 = vpop.f32.mrb[123].mxu1 }
 0x668   :  { %v6695_v17 = vadd.f32 %v6694_v30, %v6693_v29 }
 0x66c   :  { %v6712_v20 = vpop.f32.mrb[96].mxu0 }
 0x66d   :  { %v6713_v19 = vpop.f32.mrb[97].mxu0 }
 0x66e   :  { %v6714_v31 = vadd.f32 %v6713_v19, %v6712_v20  ;;  %v6715_v34 = vpop.f32.mrb[98].mxu0 }
 0x66f   :  { %v6716_v52 = vpop.f32.mrb[99].mxu0 }
 0x670   :  { %v3058_v37 = vadd.f32 %v6714_v31, %v6686_v24  ;;  %v6717_v39 = vadd.f32 %v6716_v52, %v6715_v34 }
 0x672   :  { %v3061_v60 = vadd.f32 %v6717_v39, %v6689_v0 }
 0x674   :  { %v6718_v42 = vpop.f32.mrb[100].mxu0 }
 0x675   :  { %v6719_v43 = vpop.f32.mrb[101].mxu0 }
 0x676   :  { %v6720_v48 = vadd.f32 %v6719_v43, %v6718_v42  ;;  %v6721_v49 = vpop.f32.mrb[102].mxu0 }
 0x677   :  { %v6722_v50 = vpop.f32.mrb[103].mxu0 }
 0x678   :  { %v3066_v53 = vadd.f32 %v6720_v48, %v6692_v27  ;;  %v6723_v54 = vadd.f32 %v6722_v50, %v6721_v49 }
 0x67a   :  { %v3069_v55 = vadd.f32 %v6723_v54, %v6695_v17 }
 0x67c   :  { %v6740_v57 = vpop.f32.mrb[124].mxu1 }
 0x67d   :  { %v6741_v58 = vpop.f32.mrb[125].mxu1 }
 0x67e   :  { %v6742_v59 = vadd.f32 %v6741_v58, %v6740_v57  ;;  %v6743_v35 = vpop.f32.mrb[126].mxu1 }
 0x67f   :  { %v6744_v38 = vpop.f32.mrb[127].mxu1 }
 0x680   :  { %v3107_v40 = vadd.f32 %v6742_v59, %v3058_v37  ;;  %v6745_v45 = vadd.f32 %v6744_v38, %v6743_v35 }
 0x682   :  { %v3110_v47 = vadd.f32 %v6745_v45, %v3061_v60  ;;  %v1949_v45 = vld [vmem:[#allocation17 + $0x2] sm:$0x1] }
 0x684   :  { %v6746_v41 = vpop.f32.mrb[128].mxu1 }
 0x685   :  { %v6747_v61 = vpop.f32.mrb[129].mxu1 }
 0x686   :  { %v6748_v62 = vadd.f32 %v6747_v61, %v6746_v41  ;;  %v6749_v51 = vpop.f32.mrb[130].mxu1  ;;  %v1950_v61 = vld [vmem:[#allocation18 + $0x2] sm:$0x1] }
 0x687   :  { %v6750_v2 = vpop.f32.mrb[131].mxu1 }
 0x688   :  { %v3115_v56 = vadd.f32 %v6748_v62, %v3066_v53  ;;  %v6751_v3 = vadd.f32 %v6750_v2, %v6749_v51 }
 0x68a   :  { %v3118_v1 = vadd.f32 %v6751_v3, %v3069_v55 }
 0x68c   :  { %v6768_v4 = vpop.f32.mrb[104].mxu0 }
 0x68d   :  { %v6769_v6 = vpop.f32.mrb[105].mxu0 }
 0x68e   :  { %v6770_v15 = vadd.f32 %v6769_v6, %v6768_v4  ;;  %v6771_v5 = vpop.f32.mrb[106].mxu0 }
 0x68f   :  { %v6772_v28 = vpop.f32.mrb[107].mxu0 }
 0x690   :  { %v6773_v7 = vadd.f32 %v6772_v28, %v6771_v5  ;;  %v3156_v36 = vadd.f32 %v6770_v15, %v3107_v40 }
 0x692   :  { %v3159_v8 = vadd.f32 %v6773_v7, %v3110_v47 }
 0x694   :  { %v6774_v46 = vpop.f32.mrb[108].mxu0 }
 0x695   :  { %v6775_v9 = vpop.f32.mrb[109].mxu0 }
 0x696   :  { %v6776_v10 = vadd.f32 %v6775_v9, %v6774_v46  ;;  %v6777_v11 = vpop.f32.mrb[110].mxu0 }
 0x697   :  { %v6778_v12 = vpop.f32.mrb[111].mxu0 }
 0x698   :  { %v6779_v13 = vadd.f32 %v6778_v12, %v6777_v11  ;;  %v3164_v14 = vadd.f32 %v6776_v10, %v3115_v56  ;;  %v7726_v10 = vld [vmem:[#allocation14 + $0x40] sm:$0xff]  }
 0x699   :  { %v7732_v11 = vld [vmem:[#allocation14 + $0xc0] sm:$0xff]  }
 0x69a   :  { %v3167_v16 = vadd.f32 %v6779_v13, %v3118_v1 }
 0x69c   :  { %v7276_v18 = vpop.f32.mrb[132].mxu1 }
 0x69d   :  { %v3213_v21 = vadd.f32 %v7276_v18, %v3164_v14  ;;  %v3204_v22 = vpop.f32.mrb[133].mxu1  ;;  %v7708_v14 = vld [vmem:[#allocation9] sm:$0xff]   ;;  %v7727_v18 = vld [vmem:[#allocation14] sm:$0xff]  }
 0x69e   :  { %v3205_v23 = vadd.f32 %v3204_v22, %v3156_v36  ;;  %v7277_v24 = vpop.f32.mrb[134].mxu1  ;;  %v7728_v22 = vld [vmem:[#allocation14 + $0x48] sm:$0xff]  }
 0x69f   :  { %v3216_v44 = vadd.f32 %v7277_v24, %v3167_v16  ;;  %v3207_v63 = vpop.f32.mrb[135].mxu1  ;;  %v3231_v29 = vmul.f32 %v3213_v21, %v3213_v21  ;;  %v7709_v16 = vld [vmem:[#allocation9] sm:$0xff]   ;;  %v7729_v24 = vld [vmem:[#allocation14 + $0x8] sm:$0xff]  }
 0x6a0   :  { %v3208_v0 = vadd.f32 %v3207_v63, %v3159_v8  ;;  %v3229_v25 = vmul.f32 %v3205_v23, %v3205_v23  ;;  %v7730_v63 = vld [vmem:[#allocation14 + $0x50] sm:$0xff]  }
 0x6a1   :  { %v3232_v20 = vmul.f32 %v3216_v44, %v3216_v44 }
 0x6a2   :  { %v3219_v26 = vadd.f32 %v3208_v0, %v3205_v23  ;;  %v3230_v27 = vmul.f32 %v3208_v0, %v3208_v0 }
 0x6a4   :  { %v3220_v30 = vadd.f32 %v3219_v26, %v3213_v21  ;;  %v3233_v17 = vadd.f32 %v3230_v27, %v3229_v25  ;;  %v7710_v25 = vld [vmem:[#allocation9 + $0x8] sm:$0xff]   ;;  %v7731_v27 = vld [vmem:[#allocation14 + $0x10] sm:$0xff]  }
 0x6a5   :  { %v7711_v26 = vld [vmem:[#allocation9 + $0x8] sm:$0xff]  }
 0x6a6   :  { %v3221_v19 = vadd.f32 %v3220_v30, %v3216_v44  ;;  %v3234_v31 = vadd.f32 %v3233_v17, %v3231_v29  ;;  %v7741_v29 = vld [vmem:[#allocation14 + $0x90] sm:$0xff]   ;;  %v7734_v30 = vld [vmem:[#allocation14 + $0x58] sm:$0xff]  }
 0x6a7   :  { %v7735_v17 = vld [vmem:[#allocation14 + $0x18] sm:$0xff]  }
 0x6a8   :  { %v3222_v34 = vrot.slane %v3221_v19, 4  ;;  %v3235_v52 = vadd.f32 %v3234_v31, %v3232_v20  ;;  %v7738_v20 = vld [vmem:[#allocation14 + $0x60] sm:$0xff]   ;;  %v7713_v31 = vld [vmem:[#allocation9 + $0x10] sm:$0xff]  }
 0x6aa   :  { %v3223_v37 = vadd.f32 %v3222_v34, %v3221_v19  ;;  %v3236_v39 = vrot.slane %v3235_v52, 4  ;;  %v7712_v19 = vld [vmem:[#allocation9 + $0x10] sm:$0xff]   ;;  %v7739_v34 = vld [vmem:[#allocation14 + $0x20] sm:$0xff]  }
 0x6ac   :  { %v3224_v60 = vrot.slane %v3223_v37, 2  ;;  %v3237_v42 = vadd.f32 %v3236_v39, %v3235_v52  ;;  %v7742_v52 = vld [vmem:[#allocation14 + $0x68] sm:$0xff]   ;;  %v7715_v39 = vld [vmem:[#allocation9 + $0x18] sm:$0xff]  }
 0x6ae   :  { %v3225_v43 = vadd.f32 %v3224_v60, %v3223_v37  ;;  %v3238_v48 = vrot.slane %v3237_v42, 2  ;;  %v7714_v37 = vld [vmem:[#allocation9 + $0x18] sm:$0xff]   ;;  %v7716_v60 = vld [vmem:[#allocation9 + $0x20] sm:$0xff]  }
 0x6b0   :  { %v3226_v49 = vrot.slane %v3225_v43, 1  ;;  %v3239_v50 = vadd.f32 %v3238_v48, %v3237_v42  ;;  %v7717_v42 = vld [vmem:[#allocation9 + $0x20] sm:$0xff]   ;;  %v7719_v48 = vld [vmem:[#allocation9 + $0x28] sm:$0xff]  }
 0x6b2   :  { %v3227_v53 = vadd.f32 %v3226_v49, %v3225_v43  ;;  %v3240_v54 = vrot.slane %v3239_v50, 1  ;;  %v7718_v43 = vld [vmem:[#allocation9 + $0x28] sm:$0xff]   ;;  %v7720_v49 = vld [vmem:[#allocation9 + $0x30] sm:$0xff]  }
 0x6b4   :  { %v3228_v55 = vmul.f32 0.03125, %v3227_v53  ;;  %v3241_v57 = vadd.f32 %v3240_v54, %v3239_v50  ;;  %v7721_v50 = vld [vmem:[#allocation9 + $0x30] sm:$0xff]   ;;  %v7722_v53 = vld [vmem:[#allocation9 + $0x38] sm:$0xff]  }
 0x6b5   :  { %v7723_v54 = vld [vmem:[#allocation9 + $0x38] sm:$0xff]  }
 0x6b6   :  { %v3242_v58 = vmul.f32 0.03125, %v3241_v57  ;;  %v3243_v59 = vmul.f32 %v3228_v55, %v3228_v55  ;;  %v7725_v57 = vld [vmem:[#allocation9 + $0x40] sm:$0xff]  }
 0x6b8   :  { %v3244_v35 = vsub.f32 %v3242_v58, %v3243_v59  ;;  %v7743_v58 = vld [vmem:[#allocation14 + $0x28] sm:$0xff]   ;;  %v7744_v59 = vld [vmem:[#allocation14 + $0x70] sm:$0xff]  }
 0x6ba   :  { %v3245_v38 = vmax.f32 %v3244_v35, 0.0  ;;  %v7745_v35 = vld [vmem:[#allocation14 + $0xd8] sm:$0xff]  }
 0x6bc   :  { %v3246_v40 = vadd.f32 1e-05, %v3245_v38  ;;  %v7746_v38 = vld [vmem:[#allocation14 + $0x30] sm:$0xff]  }
 0x6be   :  { %7892 = vrsqrt.f32 %v3246_v40  ;;  %v7747_v40 = vld [vmem:[#allocation14 + $0x98] sm:$0xff]  }
 0x6c8   :  { %v7893_v47 = vpop.eup %7892 }
 0x6c9   :  { %v3248_v41 = vmul.f32 %v7893_v47, %v1949_v45  ;;  %v7748_v45 = vld [vmem:[#allocation14 + $0x78] sm:$0xff]  }
 0x6ca   :  { %v7749_v47 = vld [vmem:[#allocation14 + $0x38] sm:$0xff]  }
 0x6cb   :  { %v3249_v62 = vmul.f32 %v3248_v41, %v3228_v55  ;;  %v3254_v51 = vrot.slane %v3248_v41, %v8478_v33  ;;  %v7724_v55 = vld [vmem:[#allocation9 + $0x40] sm:$0xff]   ;;  %v7750_v41 = vld [vmem:[#allocation14 + $0x140] sm:$0xff]  }
 0x6cd   :  { %v3250_v2 = vsub.f32 %v1950_v61, %v3249_v62  ;;  %v3256_v56 = vmul.f32 %v3254_v51, %v3208_v0  ;;  %v3255_v3 = vmul.f32 %v3254_v51, %v3205_v23  ;;  %v3257_v1 = vmul.f32 %v3254_v51, %v3213_v21  ;;  %v7733_v21 = vld [vmem:[#allocation14 + $0x80] sm:$0xff]   ;;  %v7736_v23 = vld [vmem:[#allocation14 + $0xc8] sm:$0xff]   ;;  %v7740_v0 = vld [vmem:[#allocation14 + $0xd0] sm:$0xff]  }
 0x6ce   :  { %v3258_v4 = vmul.f32 %v3254_v51, %v3216_v44  ;;  %v7737_v44 = vld [vmem:[#allocation14 + $0x88] sm:$0xff]   ;;  %v7751_v61 = vld [vmem:[#allocation14 + $0xe0] sm:$0xff]  }
 0x6cf   :  { %v3262_v6 = vrot.slane %v3250_v2, %v8478_v33  ;;  %v7753_v62 = vld [vmem:[#allocation14 + $0xa0] sm:$0xff]   ;;  %v7755_v51 = vld [vmem:[#allocation14 + $0xe8] sm:$0xff]  }
 0x6d0   :  { %v7757_v2 = vld [vmem:[#allocation14 + $0xa8] sm:$0xff]  }
 0x6d1   :  { %v3264_v15 = vadd.f32 %v3262_v6, %v3256_v56  ;;  %v3263_v5 = vadd.f32 %v3262_v6, %v3255_v3  ;;  %v3265_v28 = vadd.f32 %v3262_v6, %v3257_v1  ;;  %v3266_v7 = vadd.f32 %v3262_v6, %v3258_v4  ;;  %v7759_v56 = vld [vmem:[#allocation14 + $0xf0] sm:$0xff]   ;;  %v7763_v1 = vld [vmem:[#allocation14 + $0xf8] sm:$0xff]   ;;  %v7768_v6 = vld [vmem:[#allocation14 + $0x1c0] sm:$0xff]  }
 0x6d2   :  { %v7761_v3 = vld [vmem:[#allocation14 + $0xb0] sm:$0xff]   ;;  %v7765_v4 = vld [vmem:[#allocation14 + $0xb8] sm:$0xff]  }
 0x6d3   :  { %v3268_v36 = vmax.f32 %v3264_v15, 0.0  ;;  %v3267_v8 = vmax.f32 %v3263_v5, 0.0  ;;  %v3269_v46 = vmax.f32 %v3265_v28, 0.0  ;;  %v3270_v9 = vmax.f32 %v3266_v7, 0.0 }
 0x6d5   :  { %v3273_v12 = vpack.c.bf16 %v3268_v36, %v3267_v8  ;;  %v3274_v13 = vpack.c.bf16 %v3270_v9, %v3269_v46 }
 0x6d7   :  { %7279 = vmatpush3.bf16.msra.mxu0 %v3273_v12  ;;  %7317 = vmatpush3.bf16.msra.mxu1 %v3274_v13 }
 0x6d8   :  { %6810 = vmatprep.subr.bf16.mxu0 %v7726_v10  ;;  %6838 = vmatprep.subr.bf16.mxu1 %v7732_v11 }
 0x6da   :  { %7281 = vmatmul.mubr.msk.bf16.vlgmr.msra.gmra.mrb[112].mxu0 %vm2016_vm2, %v7708_v14  ;;  %7319 = vmatmul.mubr.msk.bf16.vlgmr.msra.gmra.mrb[136].mxu1 %vm2016_vm2, %v7709_v16 }
 0x6db   :  { %7284 = vmatprep.mubr.msk.bf16.mxu0 %vm8193_vm0, %v8192_v32  ;;  %7322 = vmatprep.mubr.msk.bf16.mxu1 %vm8193_vm0, %v8192_v32 }
 0x6dc   :  { %6811 = vmatpush3.bf16.msra.mxu0 %v7727_v18  ;;  %6839 = vmatpush3.bf16.msra.mxu1 %v7733_v21 }
 0x6dd   :  { %6812 = vmatprep.subr.bf16.mxu0 %v7728_v22  ;;  %6840 = vmatprep.subr.bf16.mxu1 %v7736_v23 }
 0x6e0   :  { %6813 = vmatpush3.bf16.msra.mxu0 %v7729_v24  ;;  %6841 = vmatpush3.bf16.msra.mxu1 %v7737_v44  ;;  %v7752_v24 = vld [vmem:[#allocation14 + $0x100] sm:$0xff]  }
 0x6e1   :  { %6814 = vmatprep.subr.bf16.mxu0 %v7730_v63  ;;  %6842 = vmatprep.subr.bf16.mxu1 %v7740_v0  ;;  %v7754_v0 = vld [vmem:[#allocation14 + $0x148] sm:$0xff]  }
 0x6e2   :  { %7285 = vmatmul.mubr.msk.bf16.gmra.mrb[116].mxu0 %vm2016_vm2, %v7710_v25  ;;  %7323 = vmatmul.mubr.msk.bf16.gmra.mrb[140].mxu1 %vm2016_vm2, %v7711_v26  ;;  %v7756_v25 = vld [vmem:[#allocation14 + $0x108] sm:$0xff]  }
 0x6e3   :  { %7288 = vmatprep.mubr.msk.bf16.mxu0 %vm8193_vm0, %v8192_v32  ;;  %7326 = vmatprep.mubr.msk.bf16.mxu1 %vm8193_vm0, %v8192_v32 }
 0x6e4   :  { %6815 = vmatpush3.bf16.msra.mxu0 %v7731_v27  ;;  %6843 = vmatpush3.bf16.msra.mxu1 %v7741_v29  ;;  %v7758_v29 = vld [vmem:[#allocation14 + $0x150] sm:$0xff]  }
 0x6e5   :  { %6816 = vmatprep.subr.bf16.mxu0 %v7734_v30  ;;  %6844 = vmatprep.subr.bf16.mxu1 %v7745_v35 }
 0x6e8   :  { %6817 = vmatpush3.bf16.msra.mxu0 %v7735_v17  ;;  %6845 = vmatpush3.bf16.msra.mxu1 %v7747_v40 }
 0x6e9   :  { %6818 = vmatprep.subr.bf16.mxu0 %v7738_v20  ;;  %6846 = vmatprep.subr.bf16.mxu1 %v7751_v61  ;;  %v7773_v61 = vld [vmem:[#allocation14 + $0x188] sm:$0xff]  }
 0x6ea   :  { %7289 = vmatmul.mubr.msk.bf16.gmra.mrb[120].mxu0 %vm2016_vm2, %v7712_v19  ;;  %7327 = vmatmul.mubr.msk.bf16.gmra.mrb[144].mxu1 %vm2016_vm2, %v7713_v31 }
 0x6eb   :  { %7292 = vmatprep.mubr.msk.bf16.mxu0 %vm8193_vm0, %v8192_v32  ;;  %7330 = vmatprep.mubr.msk.bf16.mxu1 %vm8193_vm0, %v8192_v32 }
 0x6ec   :  { %6819 = vmatpush3.bf16.msra.mxu0 %v7739_v34  ;;  %6847 = vmatpush3.bf16.msra.mxu1 %v7753_v62 }
 0x6ed   :  { %6820 = vmatprep.subr.bf16.mxu0 %v7742_v52  ;;  %6848 = vmatprep.subr.bf16.mxu1 %v7755_v51  ;;  %v7760_v52 = vld [vmem:[#allocation14 + $0x110] sm:$0xff]  }
 0x6f0   :  { %6821 = vmatpush3.bf16.msra.mxu0 %v7743_v58  ;;  %6849 = vmatpush3.bf16.msra.mxu1 %v7757_v2  ;;  %v7774_v2 = vld [vmem:[#allocation14 + $0x170] sm:$0xff]  }
 0x6f1   :  { %6822 = vmatprep.subr.bf16.mxu0 %v7744_v59  ;;  %6850 = vmatprep.subr.bf16.mxu1 %v7759_v56  ;;  %v7767_v59 = vld [vmem:[#allocation14 + $0x120] sm:$0xff]   ;;  %v7776_v56 = vld [vmem:[#allocation14 + $0x1d0] sm:$0xff]  }
 0x6f2   :  { %7293 = vmatmul.mubr.msk.bf16.gmra.mrb[124].mxu0 %vm2016_vm2, %v7714_v37  ;;  %7331 = vmatmul.mubr.msk.bf16.gmra.mrb[148].mxu1 %vm2016_vm2, %v7715_v39 }
 0x6f3   :  { %7296 = vmatprep.mubr.msk.bf16.mxu0 %vm8193_vm0, %v8192_v32  ;;  %7334 = vmatprep.mubr.msk.bf16.mxu1 %vm8193_vm0, %v8192_v32 }
 0x6f4   :  { %6823 = vmatpush3.bf16.msra.mxu0 %v7746_v38  ;;  %6851 = vmatpush3.bf16.msra.mxu1 %v7761_v3  ;;  %v7769_v38 = vld [vmem:[#allocation14 + $0x180] sm:$0xff]  }
 0x6f5   :  { %6824 = vmatprep.subr.bf16.mxu0 %v7748_v45  ;;  %6852 = vmatprep.subr.bf16.mxu1 %v7763_v1  ;;  %v7770_v45 = vld [vmem:[#allocation14 + $0x168] sm:$0xff]  }
 0x6f8   :  { %6825 = vmatpush3.bf16.msra.mxu0 %v7749_v47  ;;  %6853 = vmatpush3.bf16.msra.mxu1 %v7765_v4  ;;  %v7772_v47 = vld [vmem:[#allocation14 + $0x1c8] sm:$0xff]  }
 0x6f9   :  { %6866 = vmatprep.subr.bf16.mxu0 %v7750_v41  ;;  %6894 = vmatprep.subr.bf16.mxu1 %v7768_v6  ;;  %v7771_v41 = vld [vmem:[#allocation14 + $0x128] sm:$0xff]  }
 0x6fa   :  { %7297 = vmatmul.mubr.msk.bf16.gmra.mrb[128].mxu0 %vm2016_vm2, %v7716_v60  ;;  %7335 = vmatmul.mubr.msk.bf16.gmra.mrb[152].mxu1 %vm2016_vm2, %v7717_v42  ;;  %v7762_v60 = vld [vmem:[#allocation14 + $0x158] sm:$0xff]  }
 0x6fb   :  { %7300 = vmatprep.mubr.msk.bf16.mxu0 %vm8193_vm0, %v8192_v32  ;;  %7338 = vmatprep.mubr.msk.bf16.mxu1 %vm8193_vm0, %v8192_v32  ;;  %v7764_v42 = vld [vmem:[#allocation14 + $0x118] sm:$0xff]  }
 0x702   :  { %7301 = vmatmul.mubr.msk.bf16.gmra.mrb[132].mxu0 %vm2016_vm2, %v7718_v43  ;;  %7339 = vmatmul.mubr.msk.bf16.gmra.mrb[156].mxu1 %vm2016_vm2, %v7719_v48 }
 0x703   :  { %7304 = vmatprep.mubr.msk.bf16.mxu0 %vm8193_vm0, %v8192_v32  ;;  %7342 = vmatprep.mubr.msk.bf16.mxu1 %vm8193_vm0, %v8192_v32 }
 0x70a   :  { %7305 = vmatmul.mubr.msk.bf16.gmra.mrb[136].mxu0 %vm2016_vm2, %v7720_v49  ;;  %7343 = vmatmul.mubr.msk.bf16.gmra.mrb[160].mxu1 %vm2016_vm2, %v7721_v50  ;;  %v7766_v49 = vld [vmem:[#allocation14 + $0x160] sm:$0xff]  }
 0x70b   :  { %7308 = vmatprep.mubr.msk.bf16.mxu0 %vm8193_vm0, %v8192_v32  ;;  %7346 = vmatprep.mubr.msk.bf16.mxu1 %vm8193_vm0, %v8192_v32 }
 0x712   :  { %7309 = vmatmul.mubr.msk.bf16.gmra.mrb[140].mxu0 %vm2016_vm2, %v7722_v53  ;;  %7347 = vmatmul.mubr.msk.bf16.gmra.mrb[164].mxu1 %vm2016_vm2, %v7723_v54 }
 0x713   :  { %7312 = vmatprep.mubr.msk.bf16.mxu0 %vm8193_vm0, %v8192_v32  ;;  %7350 = vmatprep.mubr.msk.bf16.mxu1 %vm8193_vm0, %v8192_v32 }
 0x71a   :  { %7313 = vmatmul.mubr.msk.bf16.gmra.mrb[144].mxu0 %vm2016_vm2, %v7724_v55  ;;  %7351 = vmatmul.mubr.msk.bf16.gmra.mrb[168].mxu1 %vm2016_vm2, %v7725_v57 }
 0x7ad   :  { %v3399_v15 = vpop.f32.mrb[112].mxu0  ;;  %v3612_v5 = vpop.f32.mrb[136].mxu1 }
 0x7ae   :  { %v7282_v28 = vpop.f32.mrb[113].mxu0  ;;  %v7320_v7 = vpop.f32.mrb[137].mxu1 }
 0x7af   :  { %v3402_v36 = vpop.f32.mrb[114].mxu0  ;;  %v3615_v8 = vpop.f32.mrb[138].mxu1  ;;  %v7775_v28 = vld [vmem:[#allocation14 + $0x130] sm:$0xff]  }
 0x7b0   :  { %v3470_v46 = vpack.c.bf16 %v3402_v36, %v3399_v15  ;;  %v7283_v9 = vpop.f32.mrb[115].mxu0  ;;  %v3683_v10 = vpack.c.bf16 %v3615_v8, %v3612_v5  ;;  %v7321_v11 = vpop.f32.mrb[139].mxu1  ;;  %v7777_v36 = vld [vmem:[#allocation14 + $0x190] sm:$0xff]  }
 0x7b1   :  { %v7780_v9 = vld [vmem:[#allocation14 + $0x1d8] sm:$0xff]  }
 0x7b2   :  { %v7781_v11 = vld [vmem:[#allocation14 + $0x198] sm:$0xff]  }
 0x7b5   :  { %v3407_v12 = vpop.f32.mrb[116].mxu0  ;;  %v3620_v13 = vpop.f32.mrb[140].mxu1 }
 0x7b6   :  { %v7286_v14 = vpop.f32.mrb[117].mxu0  ;;  %v7324_v16 = vpop.f32.mrb[141].mxu1 }
 0x7b7   :  { %v3410_v18 = vpop.f32.mrb[118].mxu0  ;;  %v3623_v21 = vpop.f32.mrb[142].mxu1  ;;  %v7782_v14 = vld [vmem:[#allocation14 + $0x200] sm:$0xff]  }
 0x7b8   :  { %v3471_v22 = vpack.c.bf16 %v3410_v18, %v3407_v12  ;;  %v7287_v23 = vpop.f32.mrb[119].mxu0  ;;  %v3684_v44 = vpack.c.bf16 %v3623_v21, %v3620_v13  ;;  %v7325_v63 = vpop.f32.mrb[143].mxu1  ;;  %v7783_v16 = vld [vmem:[#allocation14 + $0x1e0] sm:$0xff]  }
 0x7ba   :  { %4327 = vmatprep.mubr.bf16.mxu0 %v3471_v22 }
 0x7bb   :  { %4328 = vmatmul.mubr.bf16.vlgmr.msra.gmra.mrb[148].mxu0 %v3470_v46  ;;  %v7778_v46 = vld [vmem:[#allocation14 + $0x178] sm:$0xff]  }
 0x7bc   :  { %6867 = vmatpush3.bf16.msra.mxu0 %v7752_v24  ;;  %4335 = vmatprep.mubr.bf16.mxu0 %v3684_v44 }
 0x7bd   :  { %v3415_v26 = vpop.f32.mrb[120].mxu0  ;;  %6868 = vmatprep.subr.bf16.mxu0 %v7754_v0  ;;  %v8714_v27 = vpop.f32.mrb[144].mxu1  ;;  %v7784_v0 = vld [vmem:[#allocation14 + $0x1a0] sm:$0xff]  }
 0x7be   :  { %v7290_v30 = vpop.f32.mrb[121].mxu0  ;;  %v7328_v17 = vpop.f32.mrb[145].mxu1 }
 0x7bf   :  { %v3418_v20 = vpop.f32.mrb[122].mxu0  ;;  %v3631_v19 = vpop.f32.mrb[146].mxu1 }
 0x7c0   :  { %v3472_v31 = vpack.c.bf16 %v3418_v20, %v3415_v26  ;;  %6869 = vmatpush3.bf16.msra.mxu0 %v7756_v25  ;;  %v7291_v34 = vpop.f32.mrb[123].mxu0  ;;  %v3685_v37 = vpack.c.bf16 %v3631_v19, %v8714_v27  ;;  %v7329_v39 = vpop.f32.mrb[147].mxu1  ;;  %v7785_v26 = vld [vmem:[#allocation14 + $0x208] sm:$0xff]   ;;  %v7788_v20 = vld [vmem:[#allocation14 + $0x210] sm:$0xff]  }
 0x7c1   :  { %6870 = vmatprep.subr.bf16.mxu0 %v7758_v29  ;;  %v7786_v27 = vld [vmem:[#allocation14 + $0x1e8] sm:$0xff]   ;;  %v7789_v19 = vld [vmem:[#allocation14 + $0x1f0] sm:$0xff]  }
 0x7c2   :  { %v7787_v29 = vld [vmem:[#allocation14 + $0x1a8] sm:$0xff]  }
 0x7c3   :  { %4336 = vmatmul.mubr.bf16.gmra.mrb[152].mxu0 %v3683_v10  ;;  %v7779_v10 = vld [vmem:[#allocation14 + $0x138] sm:$0xff]  }
 0x7c4   :  { %6871 = vmatpush3.bf16.msra.mxu0 %v7760_v52 }
 0x7c5   :  { %v3423_v43 = vpop.f32.mrb[124].mxu0  ;;  %6872 = vmatprep.subr.bf16.mxu0 %v7762_v60  ;;  %v3636_v48 = vpop.f32.mrb[148].mxu1 }
 0x7c6   :  { %v7294_v50 = vpop.f32.mrb[125].mxu0  ;;  %v7332_v53 = vpop.f32.mrb[149].mxu1 }
 0x7c7   :  { %v3426_v54 = vpop.f32.mrb[126].mxu0  ;;  %v3639_v55 = vpop.f32.mrb[150].mxu1  ;;  %v7792_v50 = vld [vmem:[#allocation14 + $0x1f8] sm:$0xff]  }
 0x7c8   :  { %v3473_v57 = vpack.c.bf16 %v3426_v54, %v3423_v43  ;;  %6873 = vmatpush3.bf16.msra.mxu0 %v7764_v42  ;;  %v7295_v58 = vpop.f32.mrb[127].mxu0  ;;  %v3686_v35 = vpack.c.bf16 %v3639_v55, %v3636_v48  ;;  %v7333_v40 = vpop.f32.mrb[151].mxu1  ;;  %v7790_v43 = vld [vmem:[#allocation14 + $0x1b0] sm:$0xff]   ;;  %v7793_v53 = vld [vmem:[#allocation14 + $0x1b8] sm:$0xff]  }
 0x7c9   :  { %6874 = vmatprep.subr.bf16.mxu0 %v7766_v49  ;;  %v7791_v49 = vld [vmem:[#allocation14 + $0x218] sm:$0xff]  }
 0x7ca   :  { %4376 = vmatprep.mubr.bf16.mxu1 %v3473_v57  ;;  %v7794_v57 = vld [vmem:[#allocation14 + $0x220] sm:$0xff]  }
 0x7cb   :  { %4377 = vmatmul.mubr.bf16.vlgmr.msra.gmra.mrb[172].mxu1 %v3472_v31 }
 0x7cc   :  { %6875 = vmatpush3.bf16.msra.mxu0 %v7767_v59  ;;  %6895 = vmatpush3.bf16.msra.mxu1 %v7769_v38 }
 0x7cd   :  { %v3431_v62 = vpop.f32.mrb[128].mxu0  ;;  %6876 = vmatprep.subr.bf16.mxu0 %v7770_v45  ;;  %6896 = vmatprep.subr.bf16.mxu1 %v7772_v47  ;;  %v8717_v51 = vpop.f32.mrb[152].mxu1 }
 0x7ce   :  { %v7298_v3 = vpop.f32.mrb[129].mxu0  ;;  %4384 = vmatprep.mubr.bf16.mxu1 %v3686_v35  ;;  %v7336_v1 = vpop.f32.mrb[153].mxu1 }
 0x7cf   :  { %v3434_v4 = vpop.f32.mrb[130].mxu0  ;;  %v8719_v6 = vpop.f32.mrb[154].mxu1 }
 0x7d0   :  { %v3474_v15 = vpack.c.bf16 %v3434_v4, %v3431_v62  ;;  %6877 = vmatpush3.bf16.msra.mxu0 %v7771_v41  ;;  %v7299_v5 = vpop.f32.mrb[131].mxu0  ;;  %6897 = vmatpush3.bf16.msra.mxu1 %v7773_v61  ;;  %v3687_v7 = vpack.c.bf16 %v8719_v6, %v8717_v51  ;;  %v7337_v8 = vpop.f32.mrb[155].mxu1  ;;  %v7795_v61 = vld [vmem:[#allocation14 + $0x228] sm:$0xff]  }
 0x7d1   :  { %6878 = vmatprep.subr.bf16.mxu0 %v7774_v2  ;;  %6898 = vmatprep.subr.bf16.mxu1 %v7776_v56  ;;  %v7796_v2 = vld [vmem:[#allocation14 + $0x230] sm:$0xff]  }
 0x7d3   :  { %4385 = vmatmul.mubr.bf16.gmra.mrb[176].mxu1 %v3685_v37 }
 0x7d4   :  { %6879 = vmatpush3.bf16.msra.mxu0 %v7775_v28  ;;  %6899 = vmatpush3.bf16.msra.mxu1 %v7777_v36 }
 0x7d5   :  { %v3439_v12 = vpop.f32.mrb[132].mxu0  ;;  %6880 = vmatprep.subr.bf16.mxu0 %v7778_v46  ;;  %6900 = vmatprep.subr.bf16.mxu1 %v7780_v9  ;;  %v3652_v13 = vpop.f32.mrb[156].mxu1 }
 0x7d6   :  { %v7302_v18 = vpop.f32.mrb[133].mxu0  ;;  %v7340_v21 = vpop.f32.mrb[157].mxu1 }
 0x7d7   :  { %v3442_v22 = vpop.f32.mrb[134].mxu0  ;;  %v3655_v23 = vpop.f32.mrb[158].mxu1 }
 0x7d8   :  { %v3475_v24 = vpack.c.bf16 %v3442_v22, %v3439_v12  ;;  %6881 = vmatpush3.bf16.msra.mxu0 %v7779_v10  ;;  %v7303_v44 = vpop.f32.mrb[135].mxu0  ;;  %6901 = vmatpush3.bf16.msra.mxu1 %v7781_v11  ;;  %v3688_v63 = vpack.c.bf16 %v3655_v23, %v3652_v13  ;;  %v7341_v25 = vpop.f32.mrb[159].mxu1 }
 0x7d9   :  { %7354 = vmatprep.subr.bf16.mxu0 %v7782_v14  ;;  %6902 = vmatprep.subr.bf16.mxu1 %v7783_v16 }
 0x7da   :  { %4425 = vmatprep.mubr.bf16.mxu0 %v3475_v24 }
 0x7db   :  { %4426 = vmatmul.mubr.bf16.vlgmr.msra.gmra.mrb[156].mxu0 %v3474_v15 }
 0x7dc   :  { %7355 = vmatpush3.bf16.msra.mxu0 %v7782_v14  ;;  %6903 = vmatpush3.bf16.msra.mxu1 %v7784_v0 }
 0x7dd   :  { %7356 = vmatprep.subr.bf16.mxu0 %v7785_v26  ;;  %6904 = vmatprep.subr.bf16.mxu1 %v7786_v27  ;;  %v3447_v30 = vpop.f32.mrb[136].mxu0  ;;  %v3660_v17 = vpop.f32.mrb[160].mxu1 }
 0x7de   :  { %4433 = vmatprep.mubr.bf16.mxu0 %v3688_v63  ;;  %v7306_v31 = vpop.f32.mrb[137].mxu0  ;;  %v7344_v34 = vpop.f32.mrb[161].mxu1 }
 0x7df   :  { %v3450_v52 = vpop.f32.mrb[138].mxu0  ;;  %v3663_v37 = vpop.f32.mrb[162].mxu1 }
 0x7e0   :  { %7357 = vmatpush3.bf16.msra.mxu0 %v7785_v26  ;;  %6905 = vmatpush3.bf16.msra.mxu1 %v7787_v29  ;;  %v3476_v39 = vpack.c.bf16 %v3450_v52, %v3447_v30  ;;  %v7307_v60 = vpop.f32.mrb[139].mxu0  ;;  %v3689_v42 = vpack.c.bf16 %v3663_v37, %v3660_v17  ;;  %v7345_v48 = vpop.f32.mrb[163].mxu1 }
 0x7e1   :  { %7358 = vmatprep.subr.bf16.mxu0 %v7788_v20  ;;  %6906 = vmatprep.subr.bf16.mxu1 %v7789_v19 }
 0x7e3   :  { %4434 = vmatmul.mubr.bf16.gmra.mrb[160].mxu0 %v3687_v7  ;;  %v7797_v7 = vld [vmem:[#allocation14 + $0x238] sm:$0xff]  }
 0x7e4   :  { %7359 = vmatpush3.bf16.msra.mxu0 %v7788_v20  ;;  %6907 = vmatpush3.bf16.msra.mxu1 %v7790_v43 }
 0x7e5   :  { %v3455_v54 = vpop.f32.mrb[140].mxu0  ;;  %7360 = vmatprep.subr.bf16.mxu0 %v7791_v49  ;;  %6908 = vmatprep.subr.bf16.mxu1 %v7792_v50  ;;  %v3668_v55 = vpop.f32.mrb[164].mxu1 }
 0x7e6   :  { %v7310_v58 = vpop.f32.mrb[141].mxu0  ;;  %v7348_v59 = vpop.f32.mrb[165].mxu1 }
 0x7e7   :  { %v3458_v35 = vpop.f32.mrb[142].mxu0  ;;  %v3671_v38 = vpop.f32.mrb[166].mxu1 }
 0x7e8   :  { %v3477_v40 = vpack.c.bf16 %v3458_v35, %v3455_v54  ;;  %7361 = vmatpush3.bf16.msra.mxu0 %v7791_v49  ;;  %6909 = vmatpush3.bf16.msra.mxu1 %v7793_v53  ;;  %v7311_v45 = vpop.f32.mrb[143].mxu0  ;;  %v3690_v47 = vpack.c.bf16 %v3671_v38, %v3668_v55  ;;  %v7349_v41 = vpop.f32.mrb[167].mxu1 }
 0x7e9   :  { %7362 = vmatprep.subr.bf16.mxu0 %v7794_v57  ;;  %7374 = vmatprep.subr.bf16.mxu1 %v8192_v32 }
 0x7ea   :  { %4474 = vmatprep.mubr.bf16.mxu1 %v3477_v40 }
 0x7eb   :  { %4475 = vmatmul.mubr.bf16.vlgmr.msra.gmra.mrb[180].mxu1 %v3476_v39 }
 0x7ec   :  { %7363 = vmatpush3.bf16.msra.mxu0 %v7794_v57  ;;  %4482 = vmatprep.mubr.bf16.mxu1 %v3690_v47 }
 0x7ed   :  { %7364 = vmatprep.subr.bf16.mxu0 %v7795_v61  ;;  %v3463_v62 = vpop.f32.mrb[144].mxu0  ;;  %v3676_v51 = vpop.f32.mrb[168].mxu1 }
 0x7ee   :  { %v7314_v56 = vpop.f32.mrb[145].mxu0  ;;  %v7352_v3 = vpop.f32.mrb[169].mxu1 }
 0x7ef   :  { %v3466_v1 = vpop.f32.mrb[146].mxu0  ;;  %v3679_v4 = vpop.f32.mrb[170].mxu1 }
 0x7f0   :  { %7365 = vmatpush3.bf16.msra.mxu0 %v7795_v61  ;;  %v3478_v6 = vpack.c.bf16 %v3466_v1, %v3463_v62  ;;  %v7315_v15 = vpop.f32.mrb[147].mxu0  ;;  %v3691_v5 = vpack.c.bf16 %v3679_v4, %v3676_v51  ;;  %v7353_v28 = vpop.f32.mrb[171].mxu1 }
 0x7f1   :  { %7366 = vmatprep.subr.bf16.mxu0 %v7796_v2 }
 0x7f2   :  { %7370 = vmatprep.mubr.bf16.mxu0 %v3478_v6 }
 0x7f3   :  { %4483 = vmatmul.mubr.bf16.gmra.mrb[184].mxu1 %v3689_v42 }
 0x7f4   :  { %7367 = vmatpush3.bf16.msra.mxu0 %v7796_v2  ;;  %7376 = vmatprep.mubr.msk.bf16.mxu1 %vm8193_vm0, %v8192_v32 }
 0x7f5   :  { %7368 = vmatprep.subr.bf16.mxu0 %v7797_v7 }
 0x7f8   :  { %7369 = vmatpush3.bf16.msra.mxu0 %v7797_v7 }
 0x7f9   :  { %7412 = vmatprep.subr.bf16.mxu0 %v8192_v32 }
 0x7fb   :  { %7371 = vmatmul.mubr.bf16.vlgmr.msra.gmra.mrb[164].mxu0 %v3691_v5 }
 0x7fc   :  { %7414 = vmatprep.mubr.msk.bf16.mxu0 %vm8193_vm0, %v8192_v32 }
 0x88e   :  { %v6826_v36 = vpop.f32.mrb[148].mxu0 }
 0x88f   :  { %v6827_v8 = vpop.f32.mrb[149].mxu0 }
 0x890   :  { %v6828_v46 = vadd.f32 %v6827_v8, %v6826_v36  ;;  %v6829_v9 = vpop.f32.mrb[150].mxu0 }
 0x891   :  { %v6830_v10 = vpop.f32.mrb[151].mxu0 }
 0x892   :  { %v6831_v11 = vadd.f32 %v6830_v10, %v6829_v9 }
 0x896   :  { %v6832_v12 = vpop.f32.mrb[152].mxu0 }
 0x897   :  { %v6833_v13 = vpop.f32.mrb[153].mxu0 }
 0x898   :  { %v6834_v14 = vadd.f32 %v6833_v13, %v6832_v12  ;;  %v6835_v16 = vpop.f32.mrb[154].mxu0 }
 0x899   :  { %v6836_v18 = vpop.f32.mrb[155].mxu0 }
 0x89a   :  { %v6837_v21 = vadd.f32 %v6836_v18, %v6835_v16 }
 0x89e   :  { %v6854_v22 = vpop.f32.mrb[172].mxu1 }
 0x89f   :  { %v6855_v23 = vpop.f32.mrb[173].mxu1 }
 0x8a0   :  { %v6856_v24 = vadd.f32 %v6855_v23, %v6854_v22  ;;  %v6857_v44 = vpop.f32.mrb[174].mxu1 }
 0x8a1   :  { %v6858_v63 = vpop.f32.mrb[175].mxu1 }
 0x8a2   :  { %v4379_v0 = vadd.f32 %v6856_v24, %v6828_v46  ;;  %v6859_v25 = vadd.f32 %v6858_v63, %v6857_v44 }
 0x8a4   :  { %v4382_v26 = vadd.f32 %v6859_v25, %v6831_v11 }
 0x8a6   :  { %v6860_v27 = vpop.f32.mrb[176].mxu1 }
 0x8a7   :  { %v6861_v29 = vpop.f32.mrb[177].mxu1 }
 0x8a8   :  { %v6862_v30 = vadd.f32 %v6861_v29, %v6860_v27  ;;  %v6863_v17 = vpop.f32.mrb[178].mxu1 }
 0x8a9   :  { %v6864_v20 = vpop.f32.mrb[179].mxu1 }
 0x8aa   :  { %v4387_v19 = vadd.f32 %v6862_v30, %v6834_v14  ;;  %v6865_v31 = vadd.f32 %v6864_v20, %v6863_v17 }
 0x8ac   :  { %v4390_v34 = vadd.f32 %v6865_v31, %v6837_v21 }
 0x8ae   :  { %v6882_v52 = vpop.f32.mrb[156].mxu0 }
 0x8af   :  { %v6883_v37 = vpop.f32.mrb[157].mxu0 }
 0x8b0   :  { %v6884_v39 = vadd.f32 %v6883_v37, %v6882_v52  ;;  %v6885_v60 = vpop.f32.mrb[158].mxu0 }
 0x8b1   :  { %v6886_v42 = vpop.f32.mrb[159].mxu0 }
 0x8b2   :  { %v4428_v43 = vadd.f32 %v6884_v39, %v4379_v0  ;;  %v6887_v48 = vadd.f32 %v6886_v42, %v6885_v60 }
 0x8b4   :  { %v4431_v49 = vadd.f32 %v6887_v48, %v4382_v26  ;;  %v3271_v48 = vld [vmem:[#allocation17 + $0x3] sm:$0x1] }
 0x8b6   :  { %v6888_v50 = vpop.f32.mrb[160].mxu0 }
 0x8b7   :  { %v6889_v53 = vpop.f32.mrb[161].mxu0 }
 0x8b8   :  { %v6890_v54 = vadd.f32 %v6889_v53, %v6888_v50  ;;  %v6891_v55 = vpop.f32.mrb[162].mxu0  ;;  %v3272_v53 = vld [vmem:[#allocation18 + $0x3] sm:$0x1] }
 0x8b9   :  { %v6892_v57 = vpop.f32.mrb[163].mxu0 }
 0x8ba   :  { %v4436_v58 = vadd.f32 %v6890_v54, %v4387_v19  ;;  %v6893_v59 = vadd.f32 %v6892_v57, %v6891_v55 }
 0x8bc   :  { %v4439_v35 = vadd.f32 %v6893_v59, %v4390_v34 }
 0x8be   :  { %v6910_v38 = vpop.f32.mrb[180].mxu1 }
 0x8bf   :  { %v6911_v40 = vpop.f32.mrb[181].mxu1 }
 0x8c0   :  { %v6912_v45 = vadd.f32 %v6911_v40, %v6910_v38  ;;  %v6913_v47 = vpop.f32.mrb[182].mxu1 }
 0x8c1   :  { %v6914_v41 = vpop.f32.mrb[183].mxu1 }
 0x8c2   :  { %v6915_v61 = vadd.f32 %v6914_v41, %v6913_v47  ;;  %v4477_v62 = vadd.f32 %v6912_v45, %v4428_v43 }
 0x8c4   :  { %v4480_v51 = vadd.f32 %v6915_v61, %v4431_v49 }
 0x8c6   :  { %v6916_v2 = vpop.f32.mrb[184].mxu1 }
 0x8c7   :  { %v6917_v56 = vpop.f32.mrb[185].mxu1 }
 0x8c8   :  { %v6918_v3 = vadd.f32 %v6917_v56, %v6916_v2  ;;  %v6919_v1 = vpop.f32.mrb[186].mxu1 }
 0x8c9   :  { %v6920_v4 = vpop.f32.mrb[187].mxu1 }
 0x8ca   :  { %v6921_v6 = vadd.f32 %v6920_v4, %v6919_v1  ;;  %v4485_v15 = vadd.f32 %v6918_v3, %v4436_v58  ;;  %v7816_v3 = vld [vmem:[#allocation15 + $0x40] sm:$0xff]  }
 0x8cb   :  { %v7822_v1 = vld [vmem:[#allocation15 + $0xc0] sm:$0xff]  }
 0x8cc   :  { %v4488_v5 = vadd.f32 %v6921_v6, %v4439_v35 }
 0x8ce   :  { %v7372_v28 = vpop.f32.mrb[164].mxu0 }
 0x8cf   :  { %v4534_v7 = vadd.f32 %v7372_v28, %v4485_v15  ;;  %v4525_v36 = vpop.f32.mrb[165].mxu0  ;;  %v7798_v15 = vld [vmem:[#allocation9] sm:$0xff]   ;;  %v7817_v28 = vld [vmem:[#allocation15] sm:$0xff]  }
 0x8d0   :  { %v4526_v8 = vadd.f32 %v4525_v36, %v4477_v62  ;;  %v7373_v46 = vpop.f32.mrb[166].mxu0  ;;  %v7818_v36 = vld [vmem:[#allocation15 + $0x48] sm:$0xff]  }
 0x8d1   :  { %v4537_v9 = vadd.f32 %v7373_v46, %v4488_v5  ;;  %v4528_v10 = vpop.f32.mrb[167].mxu0  ;;  %v4552_v16 = vmul.f32 %v4534_v7, %v4534_v7  ;;  %v7800_v5 = vld [vmem:[#allocation9] sm:$0xff]   ;;  %v7819_v46 = vld [vmem:[#allocation15 + $0x8] sm:$0xff]  }
 0x8d2   :  { %v4529_v11 = vadd.f32 %v4528_v10, %v4480_v51  ;;  %v4550_v12 = vmul.f32 %v4526_v8, %v4526_v8  ;;  %v7820_v10 = vld [vmem:[#allocation15 + $0x50] sm:$0xff]  }
 0x8d3   :  { %v4553_v22 = vmul.f32 %v4537_v9, %v4537_v9 }
 0x8d4   :  { %v4540_v13 = vadd.f32 %v4529_v11, %v4526_v8  ;;  %v4551_v14 = vmul.f32 %v4529_v11, %v4529_v11 }
 0x8d6   :  { %v4541_v18 = vadd.f32 %v4540_v13, %v4534_v7  ;;  %v4554_v21 = vadd.f32 %v4551_v14, %v4550_v12  ;;  %v7799_v12 = vld [vmem:[#allocation9 + $0x8] sm:$0xff]   ;;  %v7821_v14 = vld [vmem:[#allocation15 + $0x10] sm:$0xff]  }
 0x8d7   :  { %v7802_v13 = vld [vmem:[#allocation9 + $0x8] sm:$0xff]  }
 0x8d8   :  { %v4542_v23 = vadd.f32 %v4541_v18, %v4537_v9  ;;  %v4555_v24 = vadd.f32 %v4554_v21, %v4552_v16  ;;  %v7831_v16 = vld [vmem:[#allocation15 + $0x90] sm:$0xff]   ;;  %v7824_v18 = vld [vmem:[#allocation15 + $0x58] sm:$0xff]  }
 0x8d9   :  { %v7825_v21 = vld [vmem:[#allocation15 + $0x18] sm:$0xff]  }
 0x8da   :  { %v4543_v44 = vrot.slane %v4542_v23, 4  ;;  %v4556_v63 = vadd.f32 %v4555_v24, %v4553_v22  ;;  %v7828_v22 = vld [vmem:[#allocation15 + $0x60] sm:$0xff]   ;;  %v7804_v24 = vld [vmem:[#allocation9 + $0x10] sm:$0xff]  }
 0x8dc   :  { %v4544_v0 = vadd.f32 %v4543_v44, %v4542_v23  ;;  %v4557_v25 = vrot.slane %v4556_v63, 4  ;;  %v7801_v23 = vld [vmem:[#allocation9 + $0x10] sm:$0xff]   ;;  %v7829_v44 = vld [vmem:[#allocation15 + $0x20] sm:$0xff]  }
 0x8de   :  { %v4545_v26 = vrot.slane %v4544_v0, 2  ;;  %v4558_v27 = vadd.f32 %v4557_v25, %v4556_v63  ;;  %v7832_v63 = vld [vmem:[#allocation15 + $0x68] sm:$0xff]   ;;  %v7803_v25 = vld [vmem:[#allocation9 + $0x18] sm:$0xff]  }
 0x8e0   :  { %v4546_v29 = vadd.f32 %v4545_v26, %v4544_v0  ;;  %v4559_v30 = vrot.slane %v4558_v27, 2  ;;  %v7833_v0 = vld [vmem:[#allocation15 + $0x28] sm:$0xff]   ;;  %v7806_v26 = vld [vmem:[#allocation9 + $0x18] sm:$0xff]  }
 0x8e2   :  { %v4547_v17 = vrot.slane %v4546_v29, 1  ;;  %v4560_v20 = vadd.f32 %v4559_v30, %v4558_v27  ;;  %v7805_v27 = vld [vmem:[#allocation9 + $0x20] sm:$0xff]   ;;  %v7807_v30 = vld [vmem:[#allocation9 + $0x28] sm:$0xff]  }
 0x8e4   :  { %v4548_v19 = vadd.f32 %v4547_v17, %v4546_v29  ;;  %v4561_v31 = vrot.slane %v4560_v20, 1  ;;  %v7808_v29 = vld [vmem:[#allocation9 + $0x20] sm:$0xff]   ;;  %v7810_v17 = vld [vmem:[#allocation9 + $0x28] sm:$0xff]  }
 0x8e6   :  { %v4549_v34 = vmul.f32 0.03125, %v4548_v19  ;;  %v4562_v52 = vadd.f32 %v4561_v31, %v4560_v20  ;;  %v7809_v20 = vld [vmem:[#allocation9 + $0x30] sm:$0xff]   ;;  %v7811_v31 = vld [vmem:[#allocation9 + $0x38] sm:$0xff]  }
 0x8e7   :  { %v7812_v19 = vld [vmem:[#allocation9 + $0x30] sm:$0xff]  }
 0x8e8   :  { %v4563_v37 = vmul.f32 0.03125, %v4562_v52  ;;  %v4564_v39 = vmul.f32 %v4549_v34, %v4549_v34  ;;  %v7814_v52 = vld [vmem:[#allocation9 + $0x40] sm:$0xff]  }
 0x8ea   :  { %v4565_v60 = vsub.f32 %v4563_v37, %v4564_v39  ;;  %v7815_v37 = vld [vmem:[#allocation9 + $0x40] sm:$0xff]   ;;  %v7834_v39 = vld [vmem:[#allocation15 + $0x70] sm:$0xff]  }
 0x8ec   :  { %v4566_v42 = vmax.f32 %v4565_v60, 0.0  ;;  %v7835_v60 = vld [vmem:[#allocation15 + $0xd8] sm:$0xff]  }
 0x8ee   :  { %v4567_v43 = vadd.f32 1e-05, %v4566_v42  ;;  %v7836_v42 = vld [vmem:[#allocation15 + $0x30] sm:$0xff]  }
 0x8f0   :  { %7894 = vrsqrt.f32 %v4567_v43  ;;  %v7837_v43 = vld [vmem:[#allocation15 + $0x98] sm:$0xff]  }
 0x8fa   :  { %v7895_v49 = vpop.eup %7894 }
 0x8fb   :  { %v4569_v50 = vmul.f32 %v7895_v49, %v3271_v48  ;;  %v7838_v48 = vld [vmem:[#allocation15 + $0x78] sm:$0xff]  }
 0x8fc   :  { %v7839_v49 = vld [vmem:[#allocation15 + $0x38] sm:$0xff]  }
 0x8fd   :  { %v4570_v54 = vmul.f32 %v4569_v50, %v4549_v34  ;;  %v4575_v55 = vrot.slane %v4569_v50, %v8478_v33  ;;  %v7813_v34 = vld [vmem:[#allocation9 + $0x38] sm:$0xff]   ;;  %v7840_v50 = vld [vmem:[#allocation15 + $0x140] sm:$0xff]  }
 0x8ff   :  { %v4571_v57 = vsub.f32 %v3272_v53, %v4570_v54  ;;  %v4577_v58 = vmul.f32 %v4575_v55, %v4529_v11  ;;  %v4576_v59 = vmul.f32 %v4575_v55, %v4526_v8  ;;  %v4578_v35 = vmul.f32 %v4575_v55, %v4534_v7  ;;  %v7823_v7 = vld [vmem:[#allocation15 + $0x80] sm:$0xff]   ;;  %v7826_v8 = vld [vmem:[#allocation15 + $0xc8] sm:$0xff]   ;;  %v7830_v11 = vld [vmem:[#allocation15 + $0xd0] sm:$0xff]  }
 0x900   :  { %v4579_v38 = vmul.f32 %v4575_v55, %v4537_v9  ;;  %v7827_v9 = vld [vmem:[#allocation15 + $0x88] sm:$0xff]   ;;  %v7843_v53 = vld [vmem:[#allocation15 + $0xa0] sm:$0xff]  }
 0x901   :  { %v4583_v40 = vrot.slane %v4571_v57, %v8478_v33  ;;  %v7845_v54 = vld [vmem:[#allocation15 + $0xe8] sm:$0xff]   ;;  %v7849_v57 = vld [vmem:[#allocation15 + $0xf0] sm:$0xff]  }
 0x902   :  { %v7847_v55 = vld [vmem:[#allocation15 + $0xa8] sm:$0xff]  }
 0x903   :  { %v4585_v45 = vadd.f32 %v4583_v40, %v4577_v58  ;;  %v4584_v47 = vadd.f32 %v4583_v40, %v4576_v59  ;;  %v4586_v41 = vadd.f32 %v4583_v40, %v4578_v35  ;;  %v4587_v61 = vadd.f32 %v4583_v40, %v4579_v38  ;;  %v7851_v58 = vld [vmem:[#allocation15 + $0xb0] sm:$0xff]   ;;  %v7853_v59 = vld [vmem:[#allocation15 + $0xf8] sm:$0xff]   ;;  %v7858_v38 = vld [vmem:[#allocation15 + $0x1c0] sm:$0xff]  }
 0x904   :  { %v7855_v35 = vld [vmem:[#allocation15 + $0xb8] sm:$0xff]  }
 0x905   :  { %v4589_v62 = vmax.f32 %v4585_v45, 0.0  ;;  %v4588_v51 = vmax.f32 %v4584_v47, 0.0  ;;  %v4590_v2 = vmax.f32 %v4586_v41, 0.0  ;;  %v4591_v56 = vmax.f32 %v4587_v61, 0.0 }
 0x907   :  { %v4594_v4 = vpack.c.bf16 %v4589_v62, %v4588_v51  ;;  %v4595_v6 = vpack.c.bf16 %v4591_v56, %v4590_v2 }
 0x909   :  { %7375 = vmatpush3.bf16.msra.mxu1 %v4594_v4  ;;  %7413 = vmatpush3.bf16.msra.mxu0 %v4595_v6 }
 0x90a   :  { %6952 = vmatprep.subr.bf16.mxu1 %v7816_v3  ;;  %6980 = vmatprep.subr.bf16.mxu0 %v7822_v1 }
 0x90c   :  { %7377 = vmatmul.mubr.msk.bf16.vlgmr.msra.gmra.mrb[188].mxu1 %vm2016_vm2, %v7798_v15  ;;  %7415 = vmatmul.mubr.msk.bf16.vlgmr.msra.gmra.mrb[168].mxu0 %vm2016_vm2, %v7800_v5 }
 0x90d   :  { %7380 = vmatprep.mubr.msk.bf16.mxu1 %vm8193_vm0, %v8192_v32  ;;  %7418 = vmatprep.mubr.msk.bf16.mxu0 %vm8193_vm0, %v8192_v32 }
 0x90e   :  { %6953 = vmatpush3.bf16.msra.mxu1 %v7817_v28  ;;  %6981 = vmatpush3.bf16.msra.mxu0 %v7823_v7 }
 0x90f   :  { %6954 = vmatprep.subr.bf16.mxu1 %v7818_v36  ;;  %6982 = vmatprep.subr.bf16.mxu0 %v7826_v8  ;;  %v7842_v36 = vld [vmem:[#allocation15 + $0x100] sm:$0xff]  }
 0x912   :  { %6955 = vmatpush3.bf16.msra.mxu1 %v7819_v46  ;;  %6983 = vmatpush3.bf16.msra.mxu0 %v7827_v9 }
 0x913   :  { %6956 = vmatprep.subr.bf16.mxu1 %v7820_v10  ;;  %6984 = vmatprep.subr.bf16.mxu0 %v7830_v11  ;;  %v7844_v10 = vld [vmem:[#allocation15 + $0x148] sm:$0xff]  }
 0x914   :  { %7381 = vmatmul.mubr.msk.bf16.gmra.mrb[192].mxu1 %vm2016_vm2, %v7799_v12  ;;  %7419 = vmatmul.mubr.msk.bf16.gmra.mrb[172].mxu0 %vm2016_vm2, %v7802_v13  ;;  %v7846_v11 = vld [vmem:[#allocation15 + $0x108] sm:$0xff]   ;;  %v7848_v13 = vld [vmem:[#allocation15 + $0x150] sm:$0xff]  }
 0x915   :  { %7384 = vmatprep.mubr.msk.bf16.mxu1 %vm8193_vm0, %v8192_v32  ;;  %7422 = vmatprep.mubr.msk.bf16.mxu0 %vm8193_vm0, %v8192_v32 }
 0x916   :  { %6957 = vmatpush3.bf16.msra.mxu1 %v7821_v14  ;;  %6985 = vmatpush3.bf16.msra.mxu0 %v7831_v16 }
 0x917   :  { %6958 = vmatprep.subr.bf16.mxu1 %v7824_v18  ;;  %6986 = vmatprep.subr.bf16.mxu0 %v7835_v60 }
 0x91a   :  { %6959 = vmatpush3.bf16.msra.mxu1 %v7825_v21  ;;  %6987 = vmatpush3.bf16.msra.mxu0 %v7837_v43  ;;  %v7860_v43 = vld [vmem:[#allocation15 + $0x168] sm:$0xff]  }
 0x91b   :  { %6960 = vmatprep.subr.bf16.mxu1 %v7828_v22 }
 0x91c   :  { %7385 = vmatmul.mubr.msk.bf16.gmra.mrb[196].mxu1 %vm2016_vm2, %v7801_v23  ;;  %7423 = vmatmul.mubr.msk.bf16.gmra.mrb[176].mxu0 %vm2016_vm2, %v7804_v24  ;;  %v7850_v24 = vld [vmem:[#allocation15 + $0x110] sm:$0xff]  }
 0x91d   :  { %7388 = vmatprep.mubr.msk.bf16.mxu1 %vm8193_vm0, %v8192_v32  ;;  %7426 = vmatprep.mubr.msk.bf16.mxu0 %vm8193_vm0, %v8192_v32 }
 0x91e   :  { %6961 = vmatpush3.bf16.msra.mxu1 %v7829_v44 }
 0x91f   :  { %6962 = vmatprep.subr.bf16.mxu1 %v7832_v63 }
 0x922   :  { %6963 = vmatpush3.bf16.msra.mxu1 %v7833_v0 }
 0x923   :  { %6964 = vmatprep.subr.bf16.mxu1 %v7834_v39 }
 0x924   :  { %7389 = vmatmul.mubr.msk.bf16.gmra.mrb[200].mxu1 %vm2016_vm2, %v7803_v25  ;;  %7427 = vmatmul.mubr.msk.bf16.gmra.mrb[180].mxu0 %vm2016_vm2, %v7806_v26  ;;  %v7852_v25 = vld [vmem:[#allocation15 + $0x158] sm:$0xff]  }
 0x925   :  { %7392 = vmatprep.mubr.msk.bf16.mxu1 %vm8193_vm0, %v8192_v32  ;;  %7430 = vmatprep.mubr.msk.bf16.mxu0 %vm8193_vm0, %v8192_v32  ;;  %v7854_v26 = vld [vmem:[#allocation15 + $0x118] sm:$0xff]  }
 0x926   :  { %6965 = vmatpush3.bf16.msra.mxu1 %v7836_v42 }
 0x927   :  { %6966 = vmatprep.subr.bf16.mxu1 %v7838_v48  ;;  %v7862_v48 = vld [vmem:[#allocation15 + $0x1c8] sm:$0xff]  }
 0x92a   :  { %6967 = vmatpush3.bf16.msra.mxu1 %v7839_v49  ;;  %v7861_v49 = vld [vmem:[#allocation15 + $0x128] sm:$0xff]  }
 0x92b   :  { %7008 = vmatprep.subr.bf16.mxu1 %v7840_v50  ;;  %v7863_v50 = vld [vmem:[#allocation15 + $0x188] sm:$0xff]  }
 0x92c   :  { %7393 = vmatmul.mubr.msk.bf16.gmra.mrb[204].mxu1 %vm2016_vm2, %v7805_v27  ;;  %7431 = vmatmul.mubr.msk.bf16.gmra.mrb[184].mxu0 %vm2016_vm2, %v7808_v29  ;;  %v7856_v29 = vld [vmem:[#allocation15 + $0x160] sm:$0xff]  }
 0x92d   :  { %7396 = vmatprep.mubr.msk.bf16.mxu1 %vm8193_vm0, %v8192_v32  ;;  %7434 = vmatprep.mubr.msk.bf16.mxu0 %vm8193_vm0, %v8192_v32 }
 0x934   :  { %7397 = vmatmul.mubr.msk.bf16.gmra.mrb[208].mxu1 %vm2016_vm2, %v7807_v30  ;;  %7435 = vmatmul.mubr.msk.bf16.gmra.mrb[188].mxu0 %vm2016_vm2, %v7810_v17 }
 0x935   :  { %7400 = vmatprep.mubr.msk.bf16.mxu1 %vm8193_vm0, %v8192_v32  ;;  %7438 = vmatprep.mubr.msk.bf16.mxu0 %vm8193_vm0, %v8192_v32 }
 0x93c   :  { %7401 = vmatmul.mubr.msk.bf16.gmra.mrb[212].mxu1 %vm2016_vm2, %v7809_v20  ;;  %7439 = vmatmul.mubr.msk.bf16.gmra.mrb[192].mxu0 %vm2016_vm2, %v7812_v19 }
 0x93d   :  { %7404 = vmatprep.mubr.msk.bf16.mxu1 %vm8193_vm0, %v8192_v32  ;;  %7442 = vmatprep.mubr.msk.bf16.mxu0 %vm8193_vm0, %v8192_v32 }
 0x944   :  { %7405 = vmatmul.mubr.msk.bf16.gmra.mrb[216].mxu1 %vm2016_vm2, %v7811_v31  ;;  %7443 = vmatmul.mubr.msk.bf16.gmra.mrb[196].mxu0 %vm2016_vm2, %v7813_v34 }
 0x945   :  { %7408 = vmatprep.mubr.msk.bf16.mxu1 %vm8193_vm0, %v8192_v32  ;;  %7446 = vmatprep.mubr.msk.bf16.mxu0 %vm8193_vm0, %v8192_v32  ;;  %v7841_v32 = vld [vmem:[#allocation15 + $0xe0] sm:$0xff]  }
 0x946   :  { %6988 = vmatprep.subr.bf16.mxu0 %v7841_v32 }
 0x947   :  { %6989 = vmatpush3.bf16.msra.mxu0 %v7843_v53  ;;  %v7864_v53 = vld [vmem:[#allocation15 + $0x170] sm:$0xff]  }
 0x948   :  { %6990 = vmatprep.subr.bf16.mxu0 %v7845_v54  ;;  %v7866_v54 = vld [vmem:[#allocation15 + $0x1d0] sm:$0xff]  }
 0x94b   :  { %6991 = vmatpush3.bf16.msra.mxu0 %v7847_v55 }
 0x94c   :  { %7409 = vmatmul.mubr.msk.bf16.gmra.mrb[220].mxu1 %vm2016_vm2, %v7814_v52  ;;  %7447 = vmatmul.mubr.msk.bf16.gmra.mrb[200].mxu0 %vm2016_vm2, %v7815_v37  ;;  %v7857_v52 = vld [vmem:[#allocation15 + $0x120] sm:$0xff]  }
 0x94d   :  { %6992 = vmatprep.subr.bf16.mxu0 %v7849_v57  ;;  %v7859_v37 = vld [vmem:[#allocation15 + $0x180] sm:$0xff]  }
 0x94f   :  { %6993 = vmatpush3.bf16.msra.mxu0 %v7851_v58 }
 0x950   :  { %6994 = vmatprep.subr.bf16.mxu0 %v7853_v59 }
 0x953   :  { %6995 = vmatpush3.bf16.msra.mxu0 %v7855_v35 }
 0x954   :  { %7036 = vmatprep.subr.bf16.mxu0 %v7858_v38 }
 0x9df   :  { %v4720_v40 = vpop.f32.mrb[188].mxu1  ;;  %v4933_v45 = vpop.f32.mrb[168].mxu0 }
 0x9e0   :  { %v7378_v47 = vpop.f32.mrb[189].mxu1  ;;  %v7416_v41 = vpop.f32.mrb[169].mxu0 }
 0x9e1   :  { %v4723_v61 = vpop.f32.mrb[190].mxu1  ;;  %v4936_v62 = vpop.f32.mrb[170].mxu0  ;;  %v7867_v47 = vld [vmem:[#allocation15 + $0x190] sm:$0xff]  }
 0x9e2   :  { %v4791_v51 = vpack.c.bf16 %v4723_v61, %v4720_v40  ;;  %v7379_v2 = vpop.f32.mrb[191].mxu1  ;;  %v5004_v56 = vpack.c.bf16 %v4936_v62, %v4933_v45  ;;  %v7417_v3 = vpop.f32.mrb[171].mxu0  ;;  %v7865_v40 = vld [vmem:[#allocation15 + $0x130] sm:$0xff]   ;;  %v7868_v62 = vld [vmem:[#allocation15 + $0x178] sm:$0xff]  }
 0x9e3   :  { %v7869_v2 = vld [vmem:[#allocation15 + $0x138] sm:$0xff]  }
 0x9e7   :  { %v4728_v1 = vpop.f32.mrb[192].mxu1  ;;  %v4941_v4 = vpop.f32.mrb[172].mxu0 }
 0x9e8   :  { %v7382_v6 = vpop.f32.mrb[193].mxu1  ;;  %v7420_v15 = vpop.f32.mrb[173].mxu0 }
 0x9e9   :  { %v4731_v5 = vpop.f32.mrb[194].mxu1  ;;  %v4944_v28 = vpop.f32.mrb[174].mxu0 }
 0x9ea   :  { %v4792_v7 = vpack.c.bf16 %v4731_v5, %v4728_v1  ;;  %v5005_v8 = vpack.c.bf16 %v4944_v28, %v4941_v4  ;;  %v7383_v46 = vpop.f32.mrb[195].mxu1  ;;  %v7421_v9 = vpop.f32.mrb[175].mxu0  ;;  %v7872_v1 = vld [vmem:[#allocation15 + $0x200] sm:$0xff]  }
 0x9eb   :  { %v7873_v4 = vld [vmem:[#allocation15 + $0x1e0] sm:$0xff]  }
 0x9ec   :  { %5648 = vmatprep.mubr.bf16.mxu1 %v4792_v7 }
 0x9ed   :  { %5649 = vmatmul.mubr.bf16.vlgmr.msra.gmra.mrb[224].mxu1 %v4791_v51  ;;  %v7870_v51 = vld [vmem:[#allocation15 + $0x1d8] sm:$0xff]  }
 0x9ee   :  { %7009 = vmatpush3.bf16.msra.mxu1 %v7842_v36  ;;  %5656 = vmatprep.mubr.bf16.mxu1 %v5005_v8  ;;  %v7874_v8 = vld [vmem:[#allocation15 + $0x1a0] sm:$0xff]  }
 0x9ef   :  { %7010 = vmatprep.subr.bf16.mxu1 %v7844_v10  ;;  %v4736_v12 = vpop.f32.mrb[196].mxu1  ;;  %v8781_v14 = vpop.f32.mrb[176].mxu0 }
 0x9f0   :  { %v7386_v16 = vpop.f32.mrb[197].mxu1  ;;  %v7424_v18 = vpop.f32.mrb[177].mxu0 }
 0x9f1   :  { %v4739_v21 = vpop.f32.mrb[198].mxu1  ;;  %v4952_v22 = vpop.f32.mrb[178].mxu0  ;;  %v7878_v16 = vld [vmem:[#allocation15 + $0x210] sm:$0xff]  }
 0x9f2   :  { %7011 = vmatpush3.bf16.msra.mxu1 %v7846_v11  ;;  %v4793_v23 = vpack.c.bf16 %v4739_v21, %v4736_v12  ;;  %v7387_v44 = vpop.f32.mrb[199].mxu1  ;;  %v5006_v63 = vpack.c.bf16 %v4952_v22, %v8781_v14  ;;  %v7425_v0 = vpop.f32.mrb[179].mxu0  ;;  %v7875_v11 = vld [vmem:[#allocation15 + $0x208] sm:$0xff]   ;;  %v7879_v18 = vld [vmem:[#allocation15 + $0x1f0] sm:$0xff]  }
 0x9f3   :  { %7012 = vmatprep.subr.bf16.mxu1 %v7848_v13  ;;  %v7876_v12 = vld [vmem:[#allocation15 + $0x1e8] sm:$0xff]  }
 0x9f4   :  { %v7877_v13 = vld [vmem:[#allocation15 + $0x1a8] sm:$0xff]  }
 0x9f5   :  { %5657 = vmatmul.mubr.bf16.gmra.mrb[228].mxu1 %v5004_v56  ;;  %v7871_v56 = vld [vmem:[#allocation15 + $0x198] sm:$0xff]  }
 0x9f6   :  { %7013 = vmatpush3.bf16.msra.mxu1 %v7850_v24 }
 0x9f7   :  { %v4744_v27 = vpop.f32.mrb[200].mxu1  ;;  %7014 = vmatprep.subr.bf16.mxu1 %v7852_v25  ;;  %v4957_v30 = vpop.f32.mrb[180].mxu0  ;;  %v7880_v25 = vld [vmem:[#allocation15 + $0x1b0] sm:$0xff]  }
 0x9f8   :  { %v7390_v17 = vpop.f32.mrb[201].mxu1  ;;  %v7428_v20 = vpop.f32.mrb[181].mxu0 }
 0x9f9   :  { %v4747_v19 = vpop.f32.mrb[202].mxu1  ;;  %v4960_v31 = vpop.f32.mrb[182].mxu0  ;;  %v7883_v17 = vld [vmem:[#allocation15 + $0x1b8] sm:$0xff]  }
 0x9fa   :  { %v4794_v34 = vpack.c.bf16 %v4747_v19, %v4744_v27  ;;  %7015 = vmatpush3.bf16.msra.mxu1 %v7854_v26  ;;  %v5007_v39 = vpack.c.bf16 %v4960_v31, %v4957_v30  ;;  %v7391_v60 = vpop.f32.mrb[203].mxu1  ;;  %v7429_v42 = vpop.f32.mrb[183].mxu0  ;;  %v7882_v30 = vld [vmem:[#allocation15 + $0x1f8] sm:$0xff]   ;;  %v7884_v19 = vld [vmem:[#allocation15 + $0x220] sm:$0xff]  }
 0x9fb   :  { %7016 = vmatprep.subr.bf16.mxu1 %v7856_v29  ;;  %v7881_v29 = vld [vmem:[#allocation15 + $0x218] sm:$0xff]  }
 0x9fc   :  { %5697 = vmatprep.mubr.bf16.mxu0 %v4794_v34 }
 0x9fd   :  { %5698 = vmatmul.mubr.bf16.vlgmr.msra.gmra.mrb[204].mxu0 %v4793_v23 }
 0x9fe   :  { %7017 = vmatpush3.bf16.msra.mxu1 %v7857_v52  ;;  %7037 = vmatpush3.bf16.msra.mxu0 %v7859_v37 }
 0x9ff   :  { %7018 = vmatprep.subr.bf16.mxu1 %v7860_v43  ;;  %7038 = vmatprep.subr.bf16.mxu0 %v7862_v48  ;;  %v4752_v32 = vpop.f32.mrb[204].mxu1  ;;  %v8784_v55 = vpop.f32.mrb[184].mxu0 }
 0xa00   :  { %v7394_v57 = vpop.f32.mrb[205].mxu1  ;;  %5705 = vmatprep.mubr.bf16.mxu0 %v5007_v39  ;;  %v7432_v58 = vpop.f32.mrb[185].mxu0 }
 0xa01   :  { %v4755_v59 = vpop.f32.mrb[206].mxu1  ;;  %v8786_v35 = vpop.f32.mrb[186].mxu0 }
 0xa02   :  { %7019 = vmatpush3.bf16.msra.mxu1 %v7861_v49  ;;  %7039 = vmatpush3.bf16.msra.mxu0 %v7863_v50  ;;  %v4795_v38 = vpack.c.bf16 %v4755_v59, %v4752_v32  ;;  %v7395_v45 = vpop.f32.mrb[207].mxu1  ;;  %v5008_v41 = vpack.c.bf16 %v8786_v35, %v8784_v55  ;;  %v7433_v61 = vpop.f32.mrb[187].mxu0  ;;  %v7885_v49 = vld [vmem:[#allocation15 + $0x228] sm:$0xff]   ;;  %v7886_v50 = vld [vmem:[#allocation15 + $0x230] sm:$0xff]  }
 0xa03   :  { %7020 = vmatprep.subr.bf16.mxu1 %v7864_v53  ;;  %7040 = vmatprep.subr.bf16.mxu0 %v7866_v54  ;;  %v7887_v45 = vld [vmem:[#allocation15 + $0x238] sm:$0xff]  }
 0xa05   :  { %5706 = vmatmul.mubr.bf16.gmra.mrb[208].mxu0 %v5006_v63 }
 0xa06   :  { %7021 = vmatpush3.bf16.msra.mxu1 %v7865_v40  ;;  %7041 = vmatpush3.bf16.msra.mxu0 %v7867_v47 }
 0xa07   :  { %v4760_v3 = vpop.f32.mrb[208].mxu1  ;;  %7022 = vmatprep.subr.bf16.mxu1 %v7868_v62  ;;  %7042 = vmatprep.subr.bf16.mxu0 %v7870_v51  ;;  %v4973_v6 = vpop.f32.mrb[188].mxu0 }
 0xa08   :  { %v7398_v15 = vpop.f32.mrb[209].mxu1  ;;  %v7436_v5 = vpop.f32.mrb[189].mxu0 }
 0xa09   :  { %v4763_v28 = vpop.f32.mrb[210].mxu1  ;;  %v4976_v7 = vpop.f32.mrb[190].mxu0 }
 0xa0a   :  { %v4796_v36 = vpack.c.bf16 %v4763_v28, %v4760_v3  ;;  %7023 = vmatpush3.bf16.msra.mxu1 %v7869_v2  ;;  %7043 = vmatpush3.bf16.msra.mxu0 %v7871_v56  ;;  %v5009_v46 = vpack.c.bf16 %v4976_v7, %v4973_v6  ;;  %v7399_v9 = vpop.f32.mrb[211].mxu1  ;;  %v7437_v10 = vpop.f32.mrb[191].mxu0 }
 0xa0b   :  { %7450 = vmatprep.subr.bf16.mxu1 %v7872_v1  ;;  %7044 = vmatprep.subr.bf16.mxu0 %v7873_v4 }
 0xa0c   :  { %5746 = vmatprep.mubr.bf16.mxu1 %v4796_v36 }
 0xa0d   :  { %5747 = vmatmul.mubr.bf16.vlgmr.msra.gmra.mrb[232].mxu1 %v4795_v38 }
 0xa0e   :  { %7451 = vmatpush3.bf16.msra.mxu1 %v7872_v1  ;;  %7045 = vmatpush3.bf16.msra.mxu0 %v7874_v8 }
 0xa0f   :  { %7452 = vmatprep.subr.bf16.mxu1 %v7875_v11  ;;  %7046 = vmatprep.subr.bf16.mxu0 %v7876_v12  ;;  %v4768_v14 = vpop.f32.mrb[212].mxu1  ;;  %v4981_v21 = vpop.f32.mrb[192].mxu0 }
 0xa10   :  { %v7402_v22 = vpop.f32.mrb[213].mxu1  ;;  %5754 = vmatprep.mubr.bf16.mxu1 %v5009_v46  ;;  %v7440_v23 = vpop.f32.mrb[193].mxu0 }
 0xa11   :  { %v4771_v24 = vpop.f32.mrb[214].mxu1  ;;  %v4984_v44 = vpop.f32.mrb[194].mxu0 }
 0xa12   :  { %7453 = vmatpush3.bf16.msra.mxu1 %v7875_v11  ;;  %7047 = vmatpush3.bf16.msra.mxu0 %v7877_v13  ;;  %v4797_v63 = vpack.c.bf16 %v4771_v24, %v4768_v14  ;;  %v7403_v0 = vpop.f32.mrb[215].mxu1  ;;  %v5010_v26 = vpack.c.bf16 %v4984_v44, %v4981_v21  ;;  %v7441_v27 = vpop.f32.mrb[195].mxu0 }
 0xa13   :  { %7454 = vmatprep.subr.bf16.mxu1 %v7878_v16  ;;  %7048 = vmatprep.subr.bf16.mxu0 %v7879_v18 }
 0xa15   :  { %5755 = vmatmul.mubr.bf16.gmra.mrb[236].mxu1 %v5008_v41 }
 0xa16   :  { %7455 = vmatpush3.bf16.msra.mxu1 %v7878_v16  ;;  %7049 = vmatpush3.bf16.msra.mxu0 %v7880_v25 }
 0xa17   :  { %v4776_v20 = vpop.f32.mrb[216].mxu1  ;;  %7456 = vmatprep.subr.bf16.mxu1 %v7881_v29  ;;  %7050 = vmatprep.subr.bf16.mxu0 %v7882_v30  ;;  %v4989_v31 = vpop.f32.mrb[196].mxu0 }
 0xa18   :  { %v7406_v34 = vpop.f32.mrb[217].mxu1  ;;  %v7444_v52 = vpop.f32.mrb[197].mxu0 }
 0xa19   :  { %v4779_v37 = vpop.f32.mrb[218].mxu1  ;;  %v4992_v39 = vpop.f32.mrb[198].mxu0 }
 0xa1a   :  { %v4798_v60 = vpack.c.bf16 %v4779_v37, %v4776_v20  ;;  %7457 = vmatpush3.bf16.msra.mxu1 %v7881_v29  ;;  %7051 = vmatpush3.bf16.msra.mxu0 %v7883_v17  ;;  %v5011_v42 = vpack.c.bf16 %v4992_v39, %v4989_v31  ;;  %v7407_v43 = vpop.f32.mrb[219].mxu1  ;;  %v7445_v48 = vpop.f32.mrb[199].mxu0 }
 0xa1b   :  { %7458 = vmatprep.subr.bf16.mxu1 %v7884_v19 }
 0xa1c   :  { %5795 = vmatprep.mubr.bf16.mxu0 %v4798_v60 }
 0xa1d   :  { %5796 = vmatmul.mubr.bf16.vlgmr.msra.gmra.mrb[212].mxu0 %v4797_v63 }
 0xa1e   :  { %7459 = vmatpush3.bf16.msra.mxu1 %v7884_v19  ;;  %5803 = vmatprep.mubr.bf16.mxu0 %v5011_v42 }
 0xa1f   :  { %7460 = vmatprep.subr.bf16.mxu1 %v7885_v49  ;;  %v4784_v32 = vpop.f32.mrb[220].mxu1  ;;  %v4997_v53 = vpop.f32.mrb[200].mxu0 }
 0xa20   :  { %v7410_v54 = vpop.f32.mrb[221].mxu1  ;;  %v7448_v55 = vpop.f32.mrb[201].mxu0 }
 0xa21   :  { %v4787_v57 = vpop.f32.mrb[222].mxu1  ;;  %v5000_v58 = vpop.f32.mrb[202].mxu0 }
 0xa22   :  { %7461 = vmatpush3.bf16.msra.mxu1 %v7885_v49  ;;  %v4799_v59 = vpack.c.bf16 %v4787_v57, %v4784_v32  ;;  %v5012_v35 = vpack.c.bf16 %v5000_v58, %v4997_v53  ;;  %v7411_v38 = vpop.f32.mrb[223].mxu1  ;;  %v7449_v40 = vpop.f32.mrb[203].mxu0 }
 0xa23   :  { %7462 = vmatprep.subr.bf16.mxu1 %v7886_v50 }
 0xa24   :  { %7466 = vmatprep.mubr.bf16.mxu1 %v4799_v59 }
 0xa25   :  { %5804 = vmatmul.mubr.bf16.gmra.mrb[216].mxu0 %v5010_v26 }
 0xa26   :  { %7463 = vmatpush3.bf16.msra.mxu1 %v7886_v50 }
 0xa27   :  { %7464 = vmatprep.subr.bf16.mxu1 %v7887_v45 }
 0xa2a   :  { %7465 = vmatpush3.bf16.msra.mxu1 %v7887_v45 }
 0xa2d   :  { %7467 = vmatmul.mubr.bf16.vlgmr.msra.gmra.mrb[240].mxu1 %v5012_v35 }
 0xac0   :  { %v6968_v47 = vpop.f32.mrb[224].mxu1 }
 0xac1   :  { %v6969_v41 = vpop.f32.mrb[225].mxu1 }
 0xac2   :  { %v6970_v61 = vadd.f32 %v6969_v41, %v6968_v47  ;;  %v6971_v62 = vpop.f32.mrb[226].mxu1 }
 0xac3   :  { %v6972_v51 = vpop.f32.mrb[227].mxu1 }
 0xac4   :  { %v6973_v2 = vadd.f32 %v6972_v51, %v6971_v62 }
 0xac8   :  { %v6974_v56 = vpop.f32.mrb[228].mxu1 }
 0xac9   :  { %v6975_v3 = vpop.f32.mrb[229].mxu1 }
 0xaca   :  { %v6976_v1 = vadd.f32 %v6975_v3, %v6974_v56  ;;  %v6977_v4 = vpop.f32.mrb[230].mxu1 }
 0xacb   :  { %v6978_v6 = vpop.f32.mrb[231].mxu1 }
 0xacc   :  { %v6979_v15 = vadd.f32 %v6978_v6, %v6977_v4 }
 0xad0   :  { %v6996_v5 = vpop.f32.mrb[204].mxu0 }
 0xad1   :  { %v6997_v28 = vpop.f32.mrb[205].mxu0 }
 0xad2   :  { %v6998_v7 = vadd.f32 %v6997_v28, %v6996_v5  ;;  %v6999_v36 = vpop.f32.mrb[206].mxu0 }
 0xad3   :  { %v7000_v8 = vpop.f32.mrb[207].mxu0 }
 0xad4   :  { %v5700_v46 = vadd.f32 %v6998_v7, %v6970_v61  ;;  %v7001_v9 = vadd.f32 %v7000_v8, %v6999_v36 }
 0xad6   :  { %v5703_v10 = vadd.f32 %v7001_v9, %v6973_v2 }
 0xad8   :  { %v7002_v11 = vpop.f32.mrb[208].mxu0 }
 0xad9   :  { %v7003_v12 = vpop.f32.mrb[209].mxu0 }
 0xada   :  { %v7004_v13 = vadd.f32 %v7003_v12, %v7002_v11  ;;  %v7005_v14 = vpop.f32.mrb[210].mxu0 }
 0xadb   :  { %v7006_v16 = vpop.f32.mrb[211].mxu0 }
 0xadc   :  { %v5708_v18 = vadd.f32 %v7004_v13, %v6976_v1  ;;  %v7007_v21 = vadd.f32 %v7006_v16, %v7005_v14 }
 0xade   :  { %v5711_v22 = vadd.f32 %v7007_v21, %v6979_v15 }
 0xae0   :  { %v7024_v23 = vpop.f32.mrb[232].mxu1 }
 0xae1   :  { %v7025_v24 = vpop.f32.mrb[233].mxu1 }
 0xae2   :  { %v7026_v44 = vadd.f32 %v7025_v24, %v7024_v23  ;;  %v7027_v63 = vpop.f32.mrb[234].mxu1 }
 0xae3   :  { %v7028_v0 = vpop.f32.mrb[235].mxu1 }
 0xae4   :  { %v5749_v25 = vadd.f32 %v7026_v44, %v5700_v46  ;;  %v7029_v26 = vadd.f32 %v7028_v0, %v7027_v63 }
 0xae6   :  { %v5752_v27 = vadd.f32 %v7029_v26, %v5703_v10 }
 0xae8   :  { %v7030_v29 = vpop.f32.mrb[236].mxu1 }
 0xae9   :  { %v7031_v30 = vpop.f32.mrb[237].mxu1 }
 0xaea   :  { %v7032_v17 = vadd.f32 %v7031_v30, %v7030_v29  ;;  %v7033_v20 = vpop.f32.mrb[238].mxu1  ;;  %v4593_v29 = vld [vmem:[#allocation18 + $0x4] sm:$0x1] }
 0xaeb   :  { %v7034_v19 = vpop.f32.mrb[239].mxu1 }
 0xaec   :  { %v5757_v31 = vadd.f32 %v7032_v17, %v5708_v18  ;;  %v7035_v34 = vadd.f32 %v7034_v19, %v7033_v20 }
 0xaee   :  { %v5760_v52 = vadd.f32 %v7035_v34, %v5711_v22 }
 0xaf0   :  { %v7052_v37 = vpop.f32.mrb[212].mxu0 }
 0xaf1   :  { %v7053_v39 = vpop.f32.mrb[213].mxu0 }
 0xaf2   :  { %v7054_v60 = vadd.f32 %v7053_v39, %v7052_v37  ;;  %v7055_v42 = vpop.f32.mrb[214].mxu0 }
 0xaf3   :  { %v7056_v43 = vpop.f32.mrb[215].mxu0 }
 0xaf4   :  { %v7057_v48 = vadd.f32 %v7056_v43, %v7055_v42  ;;  %v5798_v49 = vadd.f32 %v7054_v60, %v5749_v25  ;;  %v4592_v25 = vld [vmem:[#allocation17 + $0x4] sm:$0x1] }
 0xaf6   :  { %v5801_v50 = vadd.f32 %v7057_v48, %v5752_v27 }
 0xaf8   :  { %v7058_v32 = vpop.f32.mrb[216].mxu0 }
 0xaf9   :  { %v7059_v53 = vpop.f32.mrb[217].mxu0 }
 0xafa   :  { %v7060_v54 = vadd.f32 %v7059_v53, %v7058_v32  ;;  %v7061_v55 = vpop.f32.mrb[218].mxu0 }
 0xafb   :  { %v7062_v57 = vpop.f32.mrb[219].mxu0 }
 0xafc   :  { %v7063_v58 = vadd.f32 %v7062_v57, %v7061_v55  ;;  %v5806_v59 = vadd.f32 %v7060_v54, %v5757_v31 }
 0xafe   :  { %v5809_v35 = vadd.f32 %v7063_v58, %v5760_v52 }
 0xb00   :  { %v7468_v38 = vpop.f32.mrb[240].mxu1 }
 0xb01   :  { %v5855_v40 = vadd.f32 %v7468_v38, %v5806_v59  ;;  %v5846_v45 = vpop.f32.mrb[241].mxu1 }
 0xb02   :  { %v5847_v47 = vadd.f32 %v5846_v45, %v5798_v49  ;;  %v7469_v41 = vpop.f32.mrb[242].mxu1 }
 0xb03   :  { %v5858_v61 = vadd.f32 %v7469_v41, %v5809_v35  ;;  %v5849_v62 = vpop.f32.mrb[243].mxu1  ;;  %v5873_v1 = vmul.f32 %v5855_v40, %v5855_v40 }
 0xb04   :  { %v5850_v51 = vadd.f32 %v5849_v62, %v5801_v50  ;;  %v5871_v2 = vmul.f32 %v5847_v47, %v5847_v47 }
 0xb05   :  { %v5874_v15 = vmul.f32 %v5858_v61, %v5858_v61 }
 0xb06   :  { %v5861_v56 = vadd.f32 %v5850_v51, %v5847_v47  ;;  %v5872_v3 = vmul.f32 %v5850_v51, %v5850_v51 }
 0xb08   :  { %v5862_v4 = vadd.f32 %v5861_v56, %v5855_v40  ;;  %v5875_v6 = vadd.f32 %v5872_v3, %v5871_v2 }
 0xb0a   :  { %v5863_v5 = vadd.f32 %v5862_v4, %v5858_v61  ;;  %v5876_v28 = vadd.f32 %v5875_v6, %v5873_v1 }
 0xb0c   :  { %v5864_v7 = vrot.slane %v5863_v5, 4  ;;  %v5877_v36 = vadd.f32 %v5876_v28, %v5874_v15 }
 0xb0e   :  { %v5865_v8 = vadd.f32 %v5864_v7, %v5863_v5  ;;  %v5878_v46 = vrot.slane %v5877_v36, 4 }
 0xb10   :  { %v5866_v9 = vrot.slane %v5865_v8, 2  ;;  %v5879_v10 = vadd.f32 %v5878_v46, %v5877_v36 }
 0xb12   :  { %v5867_v11 = vadd.f32 %v5866_v9, %v5865_v8  ;;  %v5880_v12 = vrot.slane %v5879_v10, 2 }
 0xb14   :  { %v5868_v13 = vrot.slane %v5867_v11, 1  ;;  %v5881_v14 = vadd.f32 %v5880_v12, %v5879_v10 }
 0xb16   :  { %v5869_v16 = vadd.f32 %v5868_v13, %v5867_v11  ;;  %v5882_v18 = vrot.slane %v5881_v14, 1 }
 0xb18   :  { %v5870_v21 = vmul.f32 0.03125, %v5869_v16  ;;  %v5883_v22 = vadd.f32 %v5882_v18, %v5881_v14 }
 0xb1a   :  { %v5884_v23 = vmul.f32 0.03125, %v5883_v22  ;;  %v5885_v24 = vmul.f32 %v5870_v21, %v5870_v21 }
 0xb1c   :  { %v5886_v44 = vsub.f32 %v5884_v23, %v5885_v24 }
 0xb1e   :  { %v5887_v63 = vmax.f32 %v5886_v44, 0.0 }
 0xb20   :  { %v5888_v0 = vadd.f32 1e-05, %v5887_v63 }
 0xb22   :  { %7896 = vrsqrt.f32 %v5888_v0 }
 0xb2c   :  { %v7897_v26 = vpop.eup %7896 }
 0xb2d   :  { %v5890_v27 = vmul.f32 %v7897_v26, %v4592_v25 }
 0xb2f   :  { %v5891_v30 = vmul.f32 %v5890_v27, %v5870_v21  ;;  %v5896_v17 = vrot.slane %v5890_v27, %v8478_v33 }
 0xb31   :  { %v5892_v20 = vsub.f32 %v4593_v29, %v5891_v30  ;;  %v5897_v19 = vmul.f32 %v5896_v17, %v5847_v47  ;;  %v5898_v31 = vmul.f32 %v5896_v17, %v5850_v51  ;;  %v5899_v34 = vmul.f32 %v5896_v17, %v5855_v40 }
 0xb32   :  { %v5900_v52 = vmul.f32 %v5896_v17, %v5858_v61 }
 0xb33   :  { %v5904_v37 = vrot.slane %v5892_v20, %v8478_v33 }
 0xb35   :  { %v5905_v39 = vadd.f32 %v5904_v37, %v5897_v19  ;;  %v5906_v60 = vadd.f32 %v5904_v37, %v5898_v31  ;;  %v5907_v42 = vadd.f32 %v5904_v37, %v5899_v34  ;;  %v5908_v43 = vadd.f32 %v5904_v37, %v5900_v52 }
 0xb37   :  { %v5909_v48 = vmax.f32 %v5905_v39, 0.0  ;;  %v5910_v49 = vmax.f32 %v5906_v60, 0.0  ;;  %v5911_v50 = vmax.f32 %v5907_v42, 0.0  ;;  %v5912_v32 = vmax.f32 %v5908_v43, 0.0 }
 0xb39   :  { %v5917_v53 = vadd.f32 %v5910_v49, %v5909_v48  ;;  %5913 = vst [vmem:[#allocation20] sm:$0xff] %v5909_v48  ;;  %5914 = vst [vmem:[#allocation20 + $0x8] sm:$0xff] %v5910_v49  ;;  %v5927_v54 = vadd.f32 %v5912_v32, %v5911_v50 }
 0xb3a   :  { %5915 = vst [vmem:[#allocation20 + $0x10] sm:$0xff] %v5911_v50  ;;  %5916 = vst [vmem:[#allocation20 + $0x18] sm:$0xff] %v5912_v32 }
 0xb3b   :  { %8129 = shalt.err (!%p8126_p0)
}
 0xb3c   :  { %s8130_s19 = scalar_lea.hbm %s8829_s10, 512 }
 0xb3d   :  { %p8131_p1 = scmp.ne.s32.totalorder %s8829_s10, %s8130_s19  ;;  %p8134_p2 = scmp.lt.u32.totalorder %s8130_s19, %s8829_s10 }
 0xb3f   :  { %p8136_p3 = pnand %p8134_p2, %p8131_p1 }
 0xb41   :  { %8139 = shalt.err (!%p8136_p3)
}
 0xb42   :  { %5947 = dma.vmem_to_hbm [thread:$0]  %s5942_s3, 512, %s8829_s10, [#allocation5], %s8185_s7, %s8185_s7, %s8186_s20   ;;  %v5918_v33 = vrot.slane %v5917_v53, 4  ;;  %v5928_v55 = vrot.slane %v5927_v54, 4 }
 0xb43   :  { %s8195_s24 = smov [#allocation21]  }
 0xb44   :  { %v5919_v57 = vadd.f32 %v5918_v33, %v5917_v53  ;;  %v5929_v58 = vadd.f32 %v5928_v55, %v5927_v54  ;;  %s5954_s6 = sshll.u32 %s8195_s24, 4  ;;  %s5955_s6 = int_to_ptr.vmem [resolvable:$true] %s5954_s6 }
 0xb45   :  { %s8140_s10 = scalar_lea.vmem %s5955_s6, 32  ;;  %p8145_p5 = scmp.lt.s32.totalorder %s5955_s6, %s5955_s6 }
 0xb46   :  { %v5920_v59 = vrot.slane %v5919_v57, 2  ;;  %v5930_v35 = vrot.slane %v5929_v58, 2  ;;  %p8141_p4 = scmp.ne.s32.totalorder %s5955_s6, %s8140_s10  ;;  %p8146_p6 = scmp.lt.s32.totalorder %s8140_s10, %s8140_s10 }
 0xb48   :  { %v5921_v38 = vadd.f32 %v5920_v59, %v5919_v57  ;;  %v5931_v40 = vadd.f32 %v5930_v35, %v5929_v58  ;;  %p8147_p7 = por %p8146_p6, %p8145_p5 }
 0xb4a   :  { %v5922_v45 = vrot.slane %v5921_v38, 1  ;;  %v5932_v47 = vrot.slane %v5931_v40, 1  ;;  %p8148_p8 = pnand %p8147_p7, %p8141_p4 }
 0xb4c   :  { %v5923_v41 = vadd.f32 %v5922_v45, %v5921_v38  ;;  %v5933_v61 = vadd.f32 %v5932_v47, %v5931_v40 }
 0xb4e   :  { %v5925_v62 = vmul.f32 0.0625, %v5923_v41  ;;  %v5934_v51 = vmul.f32 0.0625, %v5933_v61 }
 0xb50   :  { %5926 = vst [vmem:[#allocation21] sm:$0x1] %v5925_v62  ;;  %5935 = vst [vmem:[#allocation21 + $0x1] sm:$0x1] %v5934_v51 }
 0xb51   :  { %8151 = shalt.err (!%p8148_p8)
}
 0xb52   :  { %s8152_s27 = scalar_lea.hbm %s8830_s11, 32 }
 0xb53   :  { %p8153_p9 = scmp.ne.s32.totalorder %s8830_s11, %s8152_s27  ;;  %p8156_p10 = scmp.lt.u32.totalorder %s8152_s27, %s8830_s11 }
 0xb55   :  { %p8158_p11 = pnand %p8156_p10, %p8153_p9 }
 0xb57   :  { %8161 = shalt.err (!%p8158_p11)
}
 0xb58   :  { %5957 = dma.vmem_to_hbm [thread:$0]  %s5955_s6, 32, %s8830_s11, [#allocation22]  }
 0xb59   :  { %8174 = dma.done.wait [#allocation5], 512  }
 0xb5a   :  { %8175 = vsyncadd [#allocation5], 4294966784 }
 0xb5b   :  { %8176 = dma.done.wait [#allocation22], 32  }
 0xb5c   :  { %8177 = vsyncadd [#allocation22], 4294967264 }
 0xb5d   :  { %5964 = vsyncpa [#allocation4], 1 }
 0xb5e   :  { %5965 = vsyncpa [#allocation7], 1 }
 0xb5f   :  { %5966 = vsyncpa [#allocation10], 1 }
 0xb60   :  { %5967 = vsyncpa [#allocation13], 1 }
 0xb61   :  { %5968 = vsyncpa [#allocation16], 1 }
 0xb62   :  { %5969 = vsyncpa [#allocation19], 1 }
 0xb63   :  { %5970 = vsyncpa [#allocation5], 1 }
 0xb64   :  { %5971 = vsyncpa [#allocation22], 1 }

</bundles_post_ra>
